<compile_context>
chip_gen: v5e
topology: v5e:2x2
jax: 0.10.0
libtpu: 0.0.40
codegen_flags: <defaults>
</compile_context>

<pallas_src>
import jax
import jax.numpy as jnp
from jax.experimental import pallas as pl
from jax.experimental.pallas import tpu as pltpu


def _cos_attn_sig_kernel(x_ref, out_ref):
    # x_ref:   (1, C, N)   channels x flattened spatial positions, current batch
    # out_ref: (1, TQ, N)  sigmoid(cosine-normalized energy) tile for TQ query rows
    tq = out_ref.shape[1]
    qi = pl.program_id(1)
    start = pl.multiple_of(qi * tq, tq)

    k = x_ref[0].astype(jnp.float32)                          # (C, N)  lane-dense keys
    q = x_ref[0, :, pl.ds(start, tq)].astype(jnp.float32)     # (C, TQ) query columns
    qt = q.T                                                  # (TQ, C) tiny transpose

    # energy[i, j] = <x_i, x_j>, contracting channels on the MXU.
    energy = jnp.dot(qt, k, preferred_element_type=jnp.float32)   # (TQ, N)

    # L2 norms over channels.
    q_norm = jnp.sqrt(jnp.sum(qt * qt, axis=1, keepdims=True))    # (TQ, 1) lane reduce
    k_norm = jnp.sqrt(jnp.sum(k * k, axis=0, keepdims=True))      # (1, N)  sublane reduce
    nm = q_norm * k_norm                                          # (TQ, N)

    out_ref[0] = jax.nn.sigmoid(energy / (nm + 1e-6)).astype(out_ref.dtype)


def _pick_query_tile(N, C, budget_bytes=24 << 20):
    """Largest 128-multiple divisor of N whose double-buffered f32 tiles fit budget."""
    for tq in (1024, 512, 256, 128):
        if N % tq == 0 and (2 * tq * N + 2 * C * N) * 4 <= budget_bytes:
            return tq
    return 128 if N % 128 == 0 else N


def cos_attn_sig(x_nchw, out_dtype=jnp.float32):
    """x_nchw: (B, C, W, H). Returns attention map (B, N, N), N = W*H."""
    B, C, W, H = x_nchw.shape
    N = W * H

    x = x_nchw.reshape(B, C, N)          # free view: no extra HBM transpose pass
    TQ = _pick_query_tile(N, C)
    num_q_tiles = N // TQ                # TQ divides N by construction

    # Double-buffered VMEM footprint: output tile + key slab, plus margin.
    need_bytes = (2 * TQ * N + 2 * C * N) * 4
    vmem_limit = int(min(max(need_bytes + (8 << 20), 32 << 20), 48 << 20))

    return pl.pallas_call(
        _cos_attn_sig_kernel,
        out_shape=jax.ShapeDtypeStruct((B, N, N), out_dtype),
        grid_spec=pltpu.PrefetchScalarGridSpec(
            num_scalar_prefetch=0,
            grid=(B, num_q_tiles),
            in_specs=[
                # Full (C, N) slab per batch element; block index is independent of
                # the query-tile axis, so it stays resident across i (one DMA per b).
                pl.BlockSpec((1, C, N), lambda b, i: (b, 0, 0)),
            ],
            out_specs=pl.BlockSpec((1, TQ, N), lambda b, i: (b, i, 0)),
        ),
        compiler_params=pltpu.CompilerParams(
            dimension_semantics=("parallel", "parallel"),
            vmem_limit_bytes=vmem_limit,
        ),
    )(x)


def cos_attn_sig_ref(x_nchw):
    """Pure-JAX reference matching the PyTorch forward exactly."""
    B, C, W, H = x_nchw.shape
    N = W * H
    proj_query = x_nchw.reshape(B, C, N).transpose(0, 2, 1)      # (B, N, C)
    proj_key = x_nchw.reshape(B, C, N)                            # (B, C, N)
    q_norm = jnp.sqrt(jnp.sum(proj_query * proj_query, axis=2))   # (B, N)
    nm = q_norm[:, :, None] * q_norm[:, None, :]                  # (B, N, N)
    energy = jnp.einsum("bnc,bcm->bnm", proj_query, proj_key)     # (B, N, N)
    return jax.nn.sigmoid(energy / (nm + 1e-6))


if __name__ == "__main__":
    key = jax.random.PRNGKey(0)
    B, C, W, H = 2, 4, 16, 16            # N = 256
    x = jax.random.normal(key, (B, C, W, H), dtype=jnp.float32)

    attn = cos_attn_sig(x)
    attn = jax.block_until_ready(attn)

    ref = cos_attn_sig_ref(x)
    assert attn.shape == (B, W * H, W * H), attn.shape
    max_err = float(jnp.max(jnp.abs(attn - ref)))
    assert jnp.allclose(attn, ref, atol=1e-5, rtol=1e-5), max_err

    print("KERNEL_OK")
</pallas_src>

<mosaic_0001>
module attributes {stable_mosaic.version = 11 : i64} {
  func.func @_cos_attn_sig_kernel(%arg0: i32, %arg1: i32, %arg2: memref<1x4x256xf32, #tpu.memory_space<vmem>>, %arg3: memref<1x256x256xf32, #tpu.memory_space<vmem>>) attributes {dimension_semantics = [#tpu.dimension_semantics<parallel>, #tpu.dimension_semantics<parallel>], iteration_bounds = array<i64: 2, 1>, scalar_prefetch = 0 : i64, scratch_operands = 0 : i64, tpu.core_type = #tpu.core_type<tc>, window_params = [{transform_indices = @transform_0, window_bounds = array<i64: 1, 4, 256>}, {transform_indices = @transform_1, window_bounds = array<i64: 1, 256, 256>}]} {
    %c256_i32 = arith.constant 256 : i32
    %0 = arith.muli %arg1, %c256_i32 : i32
    %1 = tpu.assume_multiple %0, 256 : i32
    %c0 = arith.constant 0 : index
    %c0_0 = arith.constant 0 : index
    %c0_1 = arith.constant 0 : index
    %2 = vector.load %arg2[%c0, %c0_0, %c0_1] : memref<1x4x256xf32, #tpu.memory_space<vmem>>, vector<1x4x256xf32>
    %3 = vector.shape_cast %2 : vector<1x4x256xf32> to vector<4x256xf32>
    %c0_2 = arith.constant 0 : index
    %c0_3 = arith.constant 0 : index
    %4 = arith.index_cast %1 : i32 to index
    %5 = vector.load %arg2[%c0_2, %c0_3, %4] : memref<1x4x256xf32, #tpu.memory_space<vmem>>, vector<1x4x256xf32>
    %6 = vector.shape_cast %5 : vector<1x4x256xf32> to vector<4x256xf32>
    %7 = tpu.transpose %6, [1, 0] : vector<4x256xf32> -> vector<256x4xf32>
    %cst = arith.constant dense<0.000000e+00> : vector<256x256xf32>
    %8 = tpu.matmul %7, %3, %cst {dimension_numbers = #tpu.dot_dimension_numbers<[1], [0], [0], [1], [0, 0, 1, 1], [], []>} : vector<256x4xf32>, vector<4x256xf32>, vector<256x256xf32> -> vector<256x256xf32>
    %9 = arith.mulf %7, %7 : vector<256x4xf32>
    %cst_4 = arith.constant dense<0.000000e+00> : vector<256xf32>
    %10 = vector.multi_reduction <add>, %9, %cst_4 [1] : vector<256x4xf32> to vector<256xf32>
    %11 = vector.shape_cast %10 : vector<256xf32> to vector<256x1xf32>
    %12 = math.sqrt %11 : vector<256x1xf32>
    %13 = arith.mulf %3, %3 : vector<4x256xf32>
    %cst_5 = arith.constant dense<0.000000e+00> : vector<256xf32>
    %14 = vector.multi_reduction <add>, %13, %cst_5 [0] : vector<4x256xf32> to vector<256xf32>
    %15 = vector.shape_cast %14 : vector<256xf32> to vector<1x256xf32>
    %16 = math.sqrt %15 : vector<1x256xf32>
    %17 = vector.broadcast %12 : vector<256x1xf32> to vector<256x256xf32>
    %18 = vector.broadcast %16 : vector<1x256xf32> to vector<256x256xf32>
    %19 = arith.mulf %17, %18 : vector<256x256xf32>
    %cst_6 = arith.constant 9.99999997E-7 : f32
    %20 = vector.broadcast %cst_6 : f32 to vector<256x256xf32>
    %21 = arith.addf %19, %20 : vector<256x256xf32>
    %22 = arith.divf %8, %21 : vector<256x256xf32>
    %23 = arith.negf %22 : vector<256x256xf32>
    %24 = math.exp %23 : vector<256x256xf32>
    %cst_7 = arith.constant 1.000000e+00 : f32
    %25 = vector.broadcast %cst_7 : f32 to vector<256x256xf32>
    %26 = arith.addf %25, %24 : vector<256x256xf32>
    %27 = arith.divf %25, %26 : vector<256x256xf32>
    %c0_8 = arith.constant 0 : index
    %c0_9 = arith.constant 0 : index
    %c0_10 = arith.constant 0 : index
    %28 = vector.load %arg3[%c0_8, %c0_9, %c0_10] : memref<1x256x256xf32, #tpu.memory_space<vmem>>, vector<1x256x256xf32>
    %29 = vector.shape_cast %28 : vector<1x256x256xf32> to vector<256x256xf32>
    %30 = vector.shape_cast %27 : vector<256x256xf32> to vector<1x256x256xf32>
    tpu.vector_store %arg3[%c0_8, %c0_9, %c0_10], %30 {strides = array<i32>} : memref<1x256x256xf32, #tpu.memory_space<vmem>>, vector<1x256x256xf32>,
    return
  }
  func.func @transform_0(%arg0: i32, %arg1: i32) -> (i32, i32, i32) {
    %c0_i32 = arith.constant 0 : i32
    %c0_i32_0 = arith.constant 0 : i32
    %c0_i32_1 = arith.constant 0 : i32
    return %arg0, %c0_i32, %c0_i32_0 : i32, i32, i32
  }
  func.func @transform_1(%arg0: i32, %arg1: i32) -> (i32, i32, i32) {
    %c0_i32 = arith.constant 0 : i32
    %c0_i32_0 = arith.constant 0 : i32
    return %arg0, %arg1, %c0_i32 : i32, i32, i32
  }
}

</mosaic_0001>

<bundles_post_ra>
// kernel: tpu_custom_call.1
= control target key start
LH: loop header
LB: loop body
LE: loop exit
PB: predicated region body
PF: predicated region fallthrough
CT: control target
= control target key end

     0   :  { %6 = vsyncpa [#allocation3], 0  ;;  %s7206_s0 = inlined_call_operand.hbm [shape: f32[2,4,256], index: 0, kind: input, shape index: {}]   ;;  %s7207_s1 = inlined_call_operand.hbm [shape: f32[2,256,256], index: 1, kind: output, shape index: {}]  }
   0x1   :  { %8 = vsyncpa [#allocation3 + $0x1], 0 }
   0x2   :  { %9 = vsyncpa [#allocation4], 0 }
   0x3   :  { %11 = vsyncpa [#allocation4 + $0x1], 0  ;;  %s4381_s6 = smov 0   ;;  %s4383_s7 = smov 0  }
   0x4   :  { %s4385_s8 = smov 0   ;;  %s4387_s9 = smov 0  }
   0x5   :  { %s4389_s10 = smov 0   ;;  %s4391_s11 = smov 0  }
   0x6 LB: > { %s3589_s12 = sadd.s32 4294967295, %s4367_s11   ;;  %s3590_s13 = sadd.s32 4294967294, %s4367_s11   ;;  %s4367_s11 = sphi %s4391_s11, %s17_s11   ;;  %s4363_s10 = sphi %s4389_s10, %s7404_s10   ;;  %s4359_s9 = sphi %s4387_s9, %s7403_s9   ;;  %s4355_s8 = sphi %s4385_s8, %s7402_s8   ;;  %s4351_s7 = sphi %s4383_s7, %s7401_s7   ;;  %s4347_s6 = sphi %s4381_s6, %s7400_s6  }
   0x7   : > { %s29_s14 = sadd.s32 1, %s4363_s10  ;;  %s36_s15 = sadd.s32 1, %s4355_s8 }
   0x8   : > { %p31_p0 = scmp.ge.s32.totalorder %s29_s14, 2  ;;  %p43_p1 = scmp.ne.s32.totalorder %s4355_s8, %s4351_s7 }
   0x9   : > { %p44_p2 = scmp.eq.s32.totalorder %s4367_s11, 0  ;;  %p49_p3 = scmp.ne.s32.totalorder %s4351_s7, %s4347_s6 }
   0xa   : > { %s7406_s14 = smov (%p31_p0, %s29_s14), 0  ;;  %p50_p5 = scmp.eq.s32.totalorder %s3589_s12, 0 }
   0xb   : > { %p4422_p4 = por %p44_p2, %p43_p1  ;;  %s33_s17 = ssub.s32 %s4363_s10, %s7406_s14 }
   0xc   : > { %p75_p6 = scmp.eq.s32.totalorder %s3589_s12, 1  ;;  %p34_p7 = scmp.eq.s32.totalorder %s33_s17, 0 }
   0xd   : > { %p4428_p8 = por %p50_p5, %p49_p3  ;;  %p81_p10 = scmp.eq.s32.totalorder %s3590_s13, 1 }
   0xe   : > { %p4432_p9 = por %p75_p6, %p43_p1  ;;  %p3592_p12 = scmp.ge.s32.totalorder %s4367_s11, 2 }
   0xf   : > { %s4437_s20 = scalar_select %p34_p7, %s4355_s8, %s36_s15  }
  0x10   : > { %p4439_p11 = por %p81_p10, %p49_p3  ;;  %p3750_p13 = scmp.lt.s32.totalorder %s4367_s11, 2 }
  0x11   : > { %s101_s22 = sand.u32 1, %s4355_s8   ;;  %s3734_s24 = sshll.u32 %s4363_s10, 3 }
  0x12   : > { %s3593_s23 = sshll.u32 %s101_s22, 3  ;;  %s110_s27 = scalar_lea.hbm %s7206_s0, %s3734_s24 }
  0x13   : > { %s105_s28 = scalar_lea.vmem [#allocation2], %s3593_s23  ;;  %s112_s30 = sshll.u32 %s110_s27, 4  ;;  %s113_s30 = int_to_ptr.hbm [resolvable:$true] %s112_s30 }
  0x14   : > { %s114_s29 = sshll.u32 %s105_s28, 4  ;;  %p3743_p0 = pnand %p3750_p13, %p4422_p4  ;;  %s115_s29 = int_to_ptr.vmem [resolvable:$true] %s114_s29 }
  0x15   : > { %p3596_p1 = scmp.ge.s32.totalorder %s4367_s11, 1  ;;  %p119_p2 = scmp.lt.s32.totalorder %s4367_s11, 3 }
  0x16   : > { %s102_s2 = scalar_lea.sflag [#allocation3], %s101_s22 }
  0x17   : > { %3745 = dma.hbm_to_vmem [thread:$0]  (!%p3743_p0), %s113_s30, 128, %s115_s29, %s102_s2  }
  0x18   : > { %p120_p3 = pnand %p3596_p1, %p119_p2 }
  0x19   : > { %s4455_s3 = sand.u32 (!%p120_p3), 1, %s4351_s7  }
  0x1a   : > { %123 = sbr.rel (%p120_p3) target bundleno = 1080 (0x438), region = 24  ;;  %s3597_s4 = sshll.u32 (!%p120_p3), %s4455_s3, 3 }
  0x1b   : > { %s126_s5 = scalar_lea.sflag (!%p120_p3), [#allocation3], %s4455_s3  ;;  %s129_s12 = scalar_lea.vmem (!%p120_p3), [#allocation2], %s3597_s4 }
  0x1f   : > { %4338 = dma.done.wait (%p4428_p8), %s126_s5, 128  }
  0x20   : > { %4340 = vsyncadd (%p4428_p8), %s126_s5, 4294967168  ;;  %v156_v0 = vld [vmem:[%s129_s12] sm:$0xff]  ;;  %vm328_vm0 = vcmask 1043456   ;;  %vm231_vm1 = vcmask 31744   ;;  %s3598_s13 = sshll.u32 %s4455_s3, 9  ;;  %s3735_s16 = sshll.u32 %s4359_s9, 9 }
  0x21   : > { %158 = vst [vmem:[#allocation1] ss:$2 sm:$0xff] %v156_v0  ;;  %v1071_v3 = vmul.f32 %v156_v0, %v156_v0  ;;  %s4623_s15 = scalar_lea.vmem [#allocation5], %s3598_s13  ;;  %s3499_s22 = scalar_lea.hbm %s7207_s1, %s3735_s16 }
  0x22   : > { %s3500_s9 = sshll.u32 %s4623_s15, 4  ;;  %s3502_s23 = sshll.u32 %s3499_s22, 4  ;;  %s3501_s9 = int_to_ptr.vmem [resolvable:$true] %s3500_s9  ;;  %s3503_s23 = int_to_ptr.hbm [resolvable:$true] %s3502_s23 }
  0x23   : > { %s3485_s24 = scalar_lea.sflag [#allocation4], %s4455_s3  ;;  %s4299_s25 = sshra.s32 %s3503_s23, 4  ;;  %s4300_s25 = int_to_ptr.hbm [resolvable:$true] %s4299_s25 }
  0x24   : > { %s4301_s26 = scalar_lea.hbm %s4300_s25, 512  ;;  %s4305_s29 = scalar_lea.hbm %s7207_s1, 1024 }
  0x25   : > { %p4302_p4 = scmp.ne.s32.totalorder %s4300_s25, %s4301_s26  ;;  %p4306_p7 = scmp.lt.s32.totalorder %s4300_s25, %s7207_s1 }
  0x26   : > { %p4307_p8 = scmp.lt.s32.totalorder %s4305_s29, %s4301_s26 }
  0x27   : > { %p4303_p5 = pnand %p4302_p4, %p4432_p9 }
  0x28   : > { %v160_v1 = vld.sshfl [vmem:[#allocation1 + $0x8] sm:$0xff pattern:$0x75316420]  ;;  %v159_v2 = vld.sshfl [vmem:[#allocation1] sm:$0xff pattern:$0x75316420]  ;;  %p4308_p10 = por %p4307_p8, %p4306_p7 }
  0x29   : > { %195 = vxpose.xlu0.b32.start.end [1/1] (short) %v160_v1, 128  ;;  %228 = vst [vmem:[#allocation1] ss:$2 sm:$0xff] %v156_v0  ;;  %p4304_p6 = pneg %p4303_p5 }
  0x2b   : > { %p4309_p13 = pnand %p4308_p10, %p4304_p6 }
  0x30   : > { %v229_v4 = vld.sshfl [vmem:[#allocation1] sm:$0xff pattern:$0x75316420]  ;;  %v230_v5 = vld.sshfl [vmem:[#allocation1 + $0x8] sm:$0xff pattern:$0x75316420] }
  0x31   : > { %3736 = vmatpush.msk.msra.mxu2 %vm328_vm0, %v229_v4  ;;  %3599 = vmatpush.msk.msra.mxu0 %vm328_vm0, %v229_v4  ;;  %1073 = vst [vmem:[#allocation1] ss:$2 sm:$0xff] %v1071_v3 }
  0x32   : > { %3737 = vmatpush.msk.msra.mxu3 %vm328_vm0, %v230_v5  ;;  %3632 = vmatpush.msk.msra.mxu1 %vm328_vm0, %v230_v5 }
  0x38   : > { %v1074_v18 = vld.sshfl [vmem:[#allocation1] sm:$0xff pattern:$0x75316420]  ;;  %v1075_v19 = vld.sshfl [vmem:[#allocation1 + $0x8] sm:$0xff pattern:$0x75316420] }
  0x39   : > { %v1078_v21 = vsel %vm328_vm0, %v1074_v18, 0.0  ;;  %v1085_v22 = vsel %vm328_vm0, %v1075_v19, 0.0 }
  0x3a   : > { %v1079_v23 = vrot.slane %v1078_v21, 4  ;;  %v1086_v24 = vrot.slane %v1085_v22, 4 }
  0x3c   : > { %v1080_v26 = vadd.f32 %v1079_v23, %v1078_v21  ;;  %v1087_v27 = vadd.f32 %v1086_v24, %v1085_v22 }
  0x3e   : > { %v1081_v28 = vrot.slane %v1080_v26, 2  ;;  %v1088_v29 = vrot.slane %v1087_v27, 2 }
  0x40   : > { %v1082_v31 = vadd.f32 %v1081_v28, %v1080_v26  ;;  %v1089_v32 = vadd.f32 %v1088_v29, %v1087_v27 }
  0x42   : > { %v1083_v33 = vrot.slane %v1082_v31, 1  ;;  %v1090_v34 = vrot.slane %v1089_v32, 1 }
  0x44   : > { %v1084_v36 = vadd.f32 %v1083_v33, %v1082_v31  ;;  %v1091_v37 = vadd.f32 %v1090_v34, %v1089_v32 }
  0x46   : > { %3803 = vrsqrt.f32 %v1084_v36  ;;  %vm1099_vm2 = vcmp.eq.f32.partialorder %v1084_v36, inf  ;;  %vm1111_vm3 = vcmp.eq.f32.partialorder %v1091_v37, inf  ;;  %vm1101_vm4 = vcmp.eq.f32.partialorder %v1084_v36, 0.0 }
  0x47   : > { %3805 = vrsqrt.f32 %v1091_v37  ;;  %vm1113_vm5 = vcmp.eq.f32.partialorder %v1091_v37, 0.0  ;;  %v1114_v3 = vand.u32 2147483648, %v1091_v37 }
  0x4c   : > { %v3804_v39 = vpop.eup %3803 }
  0x4d   : > { %v3806_v40 = vpop.eup %3805  ;;  %v1093_v41 = vmul.f32 %v3804_v39, %v1084_v36 }
  0x4e   : > { %v1105_v42 = vmul.f32 %v3806_v40, %v1091_v37 }
  0x4f   : > { %v1094_v44 = vmul.f32 %v3804_v39, %v1093_v41 }
  0x50   : > { %v1106_v45 = vmul.f32 %v3806_v40, %v1105_v42 }
  0x51   : > { %v1095_v46 = vmul.f32 0.5, %v1094_v44 }
  0x52   : > { %v1107_v47 = vmul.f32 0.5, %v1106_v45 }
  0x53   : > { %v1096_v51 = vsub.f32 1.5, %v1095_v46 }
  0x54   : > { %v1108_v52 = vsub.f32 1.5, %v1107_v47 }
  0x55   : > { %v1097_v55 = vmul.f32 %v3804_v39, %v1096_v51 }
  0x56   : > { %v1109_v56 = vmul.f32 %v3806_v40, %v1108_v52 }
  0x57   : > { %v1098_v61 = vmul.f32 %v1097_v55, %v1084_v36 }
  0x58   : > { %v1110_v62 = vmul.f32 %v1109_v56, %v1091_v37 }
  0x59   : > { %v1100_v4 = vsel %vm1099_vm2, %v1084_v36, %v1098_v61 }
  0x5a   : > { %v1112_v5 = vsel %vm1111_vm3, %v1091_v37, %v1110_v62 }
  0x5b   : > { %v4574_v21 = vsel %vm1113_vm5, %v1114_v3, %v1112_v5 }
  0xa9   : > { %163 = vxpose.xlu0.b32.start.end [1/1] (short) %v159_v2, 128  ;;  %v1102_v2 = vand.u32 2147483648, %v1084_v36 }
  0xab   : > { %v4572_v19 = vsel %vm1101_vm4, %v1102_v2, %v1100_v4 }
  0xcd   : > { %v4467_v6 = vpop.trf.xlu0 }
  0xce   : > { %3616 = vmatmul.msk.f32.vlgmr.msra.gmra.mxu2 %vm231_vm1, %v4467_v6  ;;  %3649 = vmatmul.msk.f32.vlgmr.msra.gmra.mxu3 %vm231_vm1, %v4467_v6  ;;  %v575_v58 = vmul.f32 %v4467_v6, %v4467_v6 }
  0xd0   : > { %v639_v0 = vsel %vm231_vm1, %v575_v58, 0.0 }
  0xd5   : > { %v212_v7 = vpop.trf.xlu0 }
  0xd6   : > { %3617 = vmatmul.msk.f32.gmra.mxu2 %vm231_vm1, %v212_v7  ;;  %3650 = vmatmul.msk.f32.gmra.mxu3 %vm231_vm1, %v212_v7  ;;  %v576_v8 = vmul.f32 %v212_v7, %v212_v7 }
  0xd8   : > { %v642_v9 = vsel %vm231_vm1, %v576_v8, 0.0 }
  0xd9   : > { %643 = vadd.xlane.f32.xlu2 %v642_v9 }
  0xdd   : > { %v4476_v10 = vpop.trf.xlu0 }
  0xde   : > { %3618 = vmatmul.msk.f32.gmra.mxu2 %vm231_vm1, %v4476_v10  ;;  %3651 = vmatmul.msk.f32.gmra.mxu3 %vm231_vm1, %v4476_v10  ;;  %v577_v33 = vmul.f32 %v4476_v10, %v4476_v10 }
  0xe0   : > { %v645_v36 = vsel %vm231_vm1, %v577_v33, 0.0 }
  0xe5   : > { %v4482_v11 = vpop.trf.xlu0 }
  0xe6   : > { %3619 = vmatmul.msk.f32.gmra.mxu2 %vm231_vm1, %v4482_v11  ;;  %3652 = vmatmul.msk.f32.gmra.mxu3 %vm231_vm1, %v4482_v11  ;;  %v578_v47 = vmul.f32 %v4482_v11, %v4482_v11 }
  0xe8   : > { %v648_v58 = vsel %vm231_vm1, %v578_v47, 0.0 }
  0xed   : > { %v4488_v12 = vpop.trf.xlu0 }
  0xee   : > { %3620 = vmatmul.msk.f32.gmra.mxu2 %vm231_vm1, %v4488_v12  ;;  %3653 = vmatmul.msk.f32.gmra.mxu3 %vm231_vm1, %v4488_v12  ;;  %v579_v61 = vmul.f32 %v4488_v12, %v4488_v12 }
  0xf0   : > { %v651_v12 = vsel %vm231_vm1, %v579_v61, 0.0 }
  0xf5   : > { %v4494_v13 = vpop.trf.xlu0 }
  0xf6   : > { %3621 = vmatmul.msk.f32.gmra.mxu2 %vm231_vm1, %v4494_v13  ;;  %3654 = vmatmul.msk.f32.gmra.mxu3 %vm231_vm1, %v4494_v13 }
  0xfd   : > { %v4500_v14 = vpop.trf.xlu0 }
  0xfe   : > { %3622 = vmatmul.msk.f32.gmra.mxu2 %vm231_vm1, %v4500_v14  ;;  %3655 = vmatmul.msk.f32.gmra.mxu3 %vm231_vm1, %v4500_v14 }
 0x105   : > { %v4506_v15 = vpop.trf.xlu0 }
 0x106   : > { %3623 = vmatmul.msk.f32.gmra.mxu2 %vm231_vm1, %v4506_v15  ;;  %3656 = vmatmul.msk.f32.gmra.mxu3 %vm231_vm1, %v4506_v15 }
 0x10d   : > { %v4512_v16 = vpop.trf.xlu0 }
 0x10e   : > { %3624 = vmatmul.msk.f32.gmra.mxu2 %vm231_vm1, %v4512_v16  ;;  %3657 = vmatmul.msk.f32.gmra.mxu3 %vm231_vm1, %v4512_v16 }
 0x115   : > { %v4518_v17 = vpop.trf.xlu0 }
 0x116   : > { %3625 = vmatmul.msk.f32.gmra.mxu2 %vm231_vm1, %v4518_v17  ;;  %3658 = vmatmul.msk.f32.gmra.mxu3 %vm231_vm1, %v4518_v17 }
 0x11d   : > { %v4524_v20 = vpop.trf.xlu0 }
 0x11e   : > { %3626 = vmatmul.msk.f32.gmra.mxu2 %vm231_vm1, %v4524_v20  ;;  %3659 = vmatmul.msk.f32.gmra.mxu3 %vm231_vm1, %v4524_v20 }
 0x125   : > { %v4532_v25 = vpop.trf.xlu0 }
 0x126   : > { %3627 = vmatmul.msk.f32.gmra.mxu2 %vm231_vm1, %v4532_v25  ;;  %3660 = vmatmul.msk.f32.gmra.mxu3 %vm231_vm1, %v4532_v25 }
 0x12d   : > { %v4538_v30 = vpop.trf.xlu0 }
 0x12e   : > { %3628 = vmatmul.msk.f32.gmra.mxu2 %vm231_vm1, %v4538_v30  ;;  %3661 = vmatmul.msk.f32.gmra.mxu3 %vm231_vm1, %v4538_v30 }
 0x135   : > { %v4544_v35 = vpop.trf.xlu0 }
 0x136   : > { %3629 = vmatmul.msk.f32.gmra.mxu2 %vm231_vm1, %v4544_v35  ;;  %3662 = vmatmul.msk.f32.gmra.mxu3 %vm231_vm1, %v4544_v35 }
 0x13d   : > { %v4550_v38 = vpop.trf.xlu0 }
 0x13e   : > { %3630 = vmatmul.msk.f32.gmra.mxu2 %vm231_vm1, %v4550_v38  ;;  %3663 = vmatmul.msk.f32.gmra.mxu3 %vm231_vm1, %v4550_v38 }
 0x145   : > { %v4556_v43 = vpop.trf.xlu0 }
 0x146   : > { %3631 = vmatmul.msk.f32.gmra.mxu2 %vm231_vm1, %v4556_v43  ;;  %3664 = vmatmul.msk.f32.gmra.mxu3 %vm231_vm1, %v4556_v43 }
 0x14c   : > { %v644_v48 = vpop.xlane.xlu2 %643 }
 0x14d   : > { %3807 = vrsqrt.f32 %v644_v48  ;;  %v179_v49 = vpop.trf.xlu0  ;;  %vm898_vm6 = vcmp.eq.f32.partialorder %v644_v48, inf  ;;  %v901_v22 = vand.u32 2147483648, %v644_v48  ;;  %vm900_vm7 = vcmp.eq.f32.partialorder %v644_v48, 0.0 }
 0x14e   : > { %3600 = vmatmul.msk.f32.vlgmr.msra.gmra.mxu0 %vm231_vm1, %v179_v49  ;;  %3633 = vmatmul.msk.f32.vlgmr.msra.gmra.mxu1 %vm231_vm1, %v179_v49  ;;  %v559_v50 = vmul.f32 %v179_v49, %v179_v49 }
 0x150   : > { %v591_v53 = vsel %vm231_vm1, %v559_v50, 0.0 }
 0x151   : > { %592 = vadd.xlane.f32.xlu1 %v591_v53  ;;  %v4586_v41 = vpop.f32.mrf.mxu2  ;;  %v4588_v44 = vpop.f32.mrf.mxu3 }
 0x153   : > { %v3808_v54 = vpop.eup %3807 }
 0x154   : > { %v892_v57 = vmul.f32 %v3808_v54, %v644_v48 }
 0x155   : > { %v180_v59 = vpop.trf.xlu0 }
 0x156   : > { %v893_v60 = vmul.f32 %v3808_v54, %v892_v57  ;;  %3601 = vmatmul.msk.f32.gmra.mxu0 %vm231_vm1, %v180_v59  ;;  %3634 = vmatmul.msk.f32.gmra.mxu1 %vm231_vm1, %v180_v59  ;;  %v560_v7 = vmul.f32 %v180_v59, %v180_v59 }
 0x158   : > { %v894_v63 = vmul.f32 0.5, %v893_v60  ;;  %v594_v24 = vsel %vm231_vm1, %v560_v7, 0.0 }
 0x159   : > { %640 = vadd.xlane.f32.xlu1 %v639_v0 }
 0x15a   : > { %v895_v1 = vsub.f32 1.5, %v894_v63 }
 0x15c   : > { %v896_v6 = vmul.f32 %v3808_v54, %v895_v1  ;;  %v401_v1 = vpop.f32.mrf.mxu2 }
 0x15d   : > { %v181_v8 = vpop.trf.xlu0 }
 0x15e   : > { %v897_v9 = vmul.f32 %v896_v6, %v644_v48  ;;  %3602 = vmatmul.msk.f32.gmra.mxu0 %vm231_vm1, %v181_v8  ;;  %3635 = vmatmul.msk.f32.gmra.mxu1 %vm231_vm1, %v181_v8  ;;  %v561_v18 = vmul.f32 %v181_v8, %v181_v8  ;;  %v514_v6 = vpop.f32.mrf.mxu3 }
 0x160   : > { %v899_v23 = vsel %vm898_vm6, %v644_v48, %v897_v9  ;;  %v597_v26 = vsel %vm231_vm1, %v561_v18, 0.0 }
 0x161   : > { %v902_v27 = vsel %vm900_vm7, %v901_v22, %v899_v23  ;;  %595 = vadd.xlane.f32.xlu1 %v594_v24  ;;  %598 = vadd.xlane.f32.xlu2 %v597_v26  ;;  %v580_v24 = vmul.f32 %v4494_v13, %v4494_v13 }
 0x162   : > { %v1150_v28 = vmul.f32 %v4572_v19, %v902_v27  ;;  %v1151_v29 = vmul.f32 %v4574_v21, %v902_v27 }
 0x164   : > { %v1214_v31 = vadd.f32 1e-06, %v1150_v28  ;;  %v1215_v32 = vadd.f32 1e-06, %v1151_v29 }
 0x165   : > { %v182_v34 = vpop.trf.xlu0 }
 0x166   : > { %3809 = vrcp.f32 %v1214_v31  ;;  %3603 = vmatmul.msk.f32.gmra.mxu0 %vm231_vm1, %v182_v34  ;;  %3636 = vmatmul.msk.f32.gmra.mxu1 %vm231_vm1, %v182_v34  ;;  %v562_v37 = vmul.f32 %v182_v34, %v182_v34  ;;  %v1765_v50 = vand.u32 2147483648, %v1214_v31  ;;  %v1763_v54 = vand.u32 2147483647, %v1214_v31 }
 0x167   : > { %3811 = vrcp.f32 %v1215_v32  ;;  %v1780_v55 = vand.u32 2147483648, %v1215_v32  ;;  %v1778_v57 = vand.u32 2147483647, %v1215_v32  ;;  %vm1759_vm10 = vweird.f32 %v1214_v31 }
 0x168   : > { %v600_v39 = vsel %vm231_vm1, %v562_v37, 0.0  ;;  %v1766_v11 = vor.u32 1.1754944e-38, %v1765_v50  ;;  %vm1774_vm12 = vweird.f32 %v1215_v32  ;;  %vm1764_vm13 = vcmp.eq.f32.partialorder %v1763_v54, 8.507059e+37 }
 0x169   : > { %646 = vadd.xlane.f32.xlu1 %v645_v36  ;;  %601 = vadd.xlane.f32.xlu2 %v600_v39  ;;  %v1781_v63 = vor.u32 1.1754944e-38, %v1780_v55  ;;  %vm1779_vm15 = vcmp.eq.f32.partialorder %v1778_v57, 8.507059e+37  ;;  %v581_v34 = vmul.f32 %v4500_v14, %v4500_v14 }
 0x16b   : > { %v657_v37 = vsel %vm231_vm1, %v581_v34, 0.0 }
 0x16c   : > { %v3810_v40 = vpop.eup %3809 }
 0x16d   : > { %v3812_v42 = vpop.eup %3811  ;;  %v1755_v10 = vmul.f32 %v3810_v40, %v1214_v31  ;;  %v183_v45 = vpop.trf.xlu0  ;;  %vm1760_vm8 = vweird.f32 %v3810_v40 }
 0x16e   : > { %v1770_v46 = vmul.f32 %v3812_v42, %v1215_v32  ;;  %3604 = vmatmul.msk.f32.gmra.mxu0 %vm231_vm1, %v183_v45  ;;  %3637 = vmatmul.msk.f32.gmra.mxu1 %vm231_vm1, %v183_v45  ;;  %v563_v48 = vmul.f32 %v183_v45, %v183_v45  ;;  %vm1775_vm9 = vweird.f32 %v3812_v42  ;;  %vm1761_vm11 = vmor %vm1759_vm10, %vm1760_vm8  ;;  %v654_v32 = vsel %vm231_vm1, %v580_v24, 0.0 }
 0x16f   : > { %v1756_v49 = vsub.f32 1.0, %v1755_v10  ;;  %vm1776_vm14 = vmor %vm1774_vm12, %vm1775_vm9 }
 0x170   : > { %v1771_v51 = vsub.f32 1.0, %v1770_v46  ;;  %v603_v52 = vsel %vm231_vm1, %v563_v48, 0.0 }
 0x171   : > { %v1757_v53 = vmul.f32 %v3810_v40, %v1756_v49  ;;  %604 = vadd.xlane.f32.xlu1 %v603_v52  ;;  %649 = vadd.xlane.f32.xlu2 %v648_v58  ;;  %v582_v49 = vmul.f32 %v4506_v15, %v4506_v15 }
 0x172   : > { %v1772_v56 = vmul.f32 %v3812_v42, %v1771_v51 }
 0x173   : > { %v1758_v59 = vadd.f32 %v3810_v40, %v1757_v53  ;;  %v660_v15 = vsel %vm231_vm1, %v582_v49, 0.0 }
 0x174   : > { %v1773_v60 = vadd.f32 %v3812_v42, %v1772_v56 }
 0x175   : > { %v1762_v62 = vsel %vm1761_vm11, %v3810_v40, %v1758_v59  ;;  %v184_v0 = vpop.trf.xlu0 }
 0x176   : > { %v1767_v2 = vsel %vm1764_vm13, %v1766_v11, %v1762_v62  ;;  %v1777_v3 = vsel %vm1776_vm14, %v3812_v42, %v1773_v60  ;;  %3605 = vmatmul.msk.f32.gmra.mxu0 %vm231_vm1, %v184_v0  ;;  %3638 = vmatmul.msk.f32.gmra.mxu1 %vm231_vm1, %v184_v0  ;;  %v564_v4 = vmul.f32 %v184_v0, %v184_v0 }
 0x177   : > { %v1768_v5 = vmul.f32 %v1767_v2, %v401_v1  ;;  %v1782_v7 = vsel %vm1779_vm15, %v1781_v63, %v1777_v3  ;;  %v583_v63 = vmul.f32 %v4512_v16, %v4512_v16 }
 0x178   : > { %v1783_v8 = vmul.f32 %v1782_v7, %v514_v6  ;;  %v606_v9 = vsel %vm231_vm1, %v564_v4, 0.0 }
 0x179   : > { %v3699_v18 = vmul.f32 -1.442695, %v1768_v5  ;;  %652 = vadd.xlane.f32.xlu1 %v651_v12  ;;  %607 = vadd.xlane.f32.xlu2 %v606_v9  ;;  %v663_v3 = vsel %vm231_vm1, %v583_v63, 0.0  ;;  %v584_v5 = vmul.f32 %v4518_v17, %v4518_v17  ;;  %v585_v12 = vmul.f32 %v4524_v20, %v4524_v20 }
 0x17a   : > { %v3700_v22 = vmul.f32 -1.442695, %v1783_v8  ;;  %v586_v20 = vmul.f32 %v4532_v25, %v4532_v25 }
 0x17b   : > { %3813 = vpow2.f32 %v3699_v18  ;;  %v666_v8 = vsel %vm231_vm1, %v584_v5, 0.0 }
 0x17c   : > { %3815 = vpow2.f32 %v3700_v22  ;;  %v669_v22 = vsel %vm231_vm1, %v585_v12, 0.0 }
 0x17d   : > { %v185_v23 = vpop.trf.xlu0 }
 0x17e   : > { %3606 = vmatmul.msk.f32.gmra.mxu0 %vm231_vm1, %v185_v23  ;;  %3639 = vmatmul.msk.f32.gmra.mxu1 %vm231_vm1, %v185_v23  ;;  %v565_v26 = vmul.f32 %v185_v23, %v185_v23 }
 0x180   : > { %v609_v27 = vsel %vm231_vm1, %v565_v26, 0.0 }
 0x181   : > { %v3814_v28 = vpop.eup %3813  ;;  %610 = vadd.xlane.f32.xlu1 %v609_v27  ;;  %655 = vadd.xlane.f32.xlu2 %v654_v32  ;;  %v672_v27 = vsel %vm231_vm1, %v586_v20, 0.0 }
 0x182   : > { %v3816_v29 = vpop.eup %3815  ;;  %v2430_v31 = vadd.f32 1.0, %v3814_v28  ;;  %v587_v28 = vmul.f32 %v4538_v30, %v4538_v30  ;;  %v588_v30 = vmul.f32 %v4544_v35, %v4544_v35 }
 0x183   : > { %v2431_v33 = vadd.f32 1.0, %v3816_v29 }
 0x184   : > { %3817 = vrcp.f32 %v2430_v31  ;;  %v2981_v47 = vand.u32 2147483648, %v2430_v31  ;;  %v2979_v52 = vand.u32 2147483647, %v2430_v31  ;;  %vm2975_vm3 = vweird.f32 %v2430_v31 }
 0x185   : > { %3819 = vrcp.f32 %v2431_v33  ;;  %v186_v36 = vpop.trf.xlu0  ;;  %v2996_v53 = vand.u32 2147483648, %v2431_v33  ;;  %v2994_v55 = vand.u32 2147483647, %v2431_v33  ;;  %vm2990_vm5 = vweird.f32 %v2431_v33 }
 0x186   : > { %3607 = vmatmul.msk.f32.gmra.mxu0 %vm231_vm1, %v186_v36  ;;  %3640 = vmatmul.msk.f32.gmra.mxu1 %vm231_vm1, %v186_v36  ;;  %v566_v13 = vmul.f32 %v186_v36, %v186_v36  ;;  %v2982_v58 = vor.u32 1.1754944e-38, %v2981_v47  ;;  %vm2980_vm6 = vcmp.eq.f32.partialorder %v2979_v52, 8.507059e+37  ;;  %v675_v32 = vsel %vm231_vm1, %v587_v28, 0.0 }
 0x187   : > { %v2997_v60 = vor.u32 1.1754944e-38, %v2996_v53  ;;  %vm2995_vm8 = vcmp.eq.f32.partialorder %v2994_v55, 8.507059e+37 }
 0x188   : > { %v612_v39 = vsel %vm231_vm1, %v566_v13, 0.0  ;;  %v678_v13 = vsel %vm231_vm1, %v588_v30, 0.0 }
 0x189   : > { %658 = vadd.xlane.f32.xlu1 %v657_v37  ;;  %613 = vadd.xlane.f32.xlu2 %v612_v39  ;;  %v589_v39 = vmul.f32 %v4550_v38, %v4550_v38  ;;  %v590_v38 = vmul.f32 %v4556_v43, %v4556_v43 }
 0x18a   : > { %v3818_v40 = vpop.eup %3817 }
 0x18b   : > { %v3820_v42 = vpop.eup %3819  ;;  %v2971_v10 = vmul.f32 %v3818_v40, %v2430_v31  ;;  %vm2976_vm0 = vweird.f32 %v3818_v40  ;;  %v681_v35 = vsel %vm231_vm1, %v589_v39, 0.0 }
 0x18c   : > { %v2986_v45 = vmul.f32 %v3820_v42, %v2431_v33  ;;  %vm2991_vm2 = vweird.f32 %v3820_v42  ;;  %vm2977_vm4 = vmor %vm2975_vm3, %vm2976_vm0 }
 0x18d   : > { %v2972_v46 = vsub.f32 1.0, %v2971_v10  ;;  %v187_v14 = vpop.trf.xlu0  ;;  %vm2992_vm7 = vmor %vm2990_vm5, %vm2991_vm2 }
 0x18e   : > { %v2987_v48 = vsub.f32 1.0, %v2986_v45  ;;  %3608 = vmatmul.msk.f32.gmra.mxu0 %vm231_vm1, %v187_v14  ;;  %3641 = vmatmul.msk.f32.gmra.mxu1 %vm231_vm1, %v187_v14  ;;  %v567_v50 = vmul.f32 %v187_v14, %v187_v14 }
 0x18f   : > { %v2973_v51 = vmul.f32 %v3818_v40, %v2972_v46 }
 0x190   : > { %v2988_v54 = vmul.f32 %v3820_v42, %v2987_v48  ;;  %v615_v56 = vsel %vm231_vm1, %v567_v50, 0.0  ;;  %v684_v50 = vsel %vm231_vm1, %v590_v38, 0.0 }
 0x191   : > { %v2974_v57 = vadd.f32 %v3818_v40, %v2973_v51  ;;  %616 = vadd.xlane.f32.xlu1 %v615_v56  ;;  %661 = vadd.xlane.f32.xlu2 %v660_v15 }
 0x192   : > { %v2989_v59 = vadd.f32 %v3820_v42, %v2988_v54 }
 0x193   : > { %v2978_v11 = vsel %vm2977_vm4, %v3818_v40, %v2974_v57 }
 0x194   : > { %v2983_v61 = vsel %vm2980_vm6, %v2982_v58, %v2978_v11  ;;  %v2993_v62 = vsel %vm2992_vm7, %v3820_v42, %v2989_v59 }
 0x195   : > { %3454 = vst [vmem:[%s4623_s15 + $0x110] sm:$0xff] %v2983_v61  ;;  %v2998_v0 = vsel %vm2995_vm8, %v2997_v60, %v2993_v62  ;;  %v188_v1 = vpop.trf.xlu0 }
 0x196   : > { %3455 = vst [vmem:[%s4623_s15 + $0x118] sm:$0xff] %v2998_v0  ;;  %3609 = vmatmul.msk.f32.gmra.mxu0 %vm231_vm1, %v188_v1  ;;  %3642 = vmatmul.msk.f32.gmra.mxu1 %vm231_vm1, %v188_v1  ;;  %v568_v2 = vmul.f32 %v188_v1, %v188_v1 }
 0x198   : > { %v618_v4 = vsel %vm231_vm1, %v568_v2, 0.0 }
 0x199   : > { %664 = vadd.xlane.f32.xlu1 %v663_v3  ;;  %619 = vadd.xlane.f32.xlu2 %v618_v4 }
 0x19d   : > { %v189_v16 = vpop.trf.xlu0 }
 0x19e   : > { %3610 = vmatmul.msk.f32.gmra.mxu0 %vm231_vm1, %v189_v16  ;;  %3643 = vmatmul.msk.f32.gmra.mxu1 %vm231_vm1, %v189_v16  ;;  %v569_v6 = vmul.f32 %v189_v16, %v189_v16 }
 0x1a0   : > { %v621_v7 = vsel %vm231_vm1, %v569_v6, 0.0 }
 0x1a1   : > { %622 = vadd.xlane.f32.xlu1 %v621_v7  ;;  %667 = vadd.xlane.f32.xlu2 %v666_v8 }
 0x1a5   : > { %v190_v9 = vpop.trf.xlu0 }
 0x1a6   : > { %3611 = vmatmul.msk.f32.gmra.mxu0 %vm231_vm1, %v190_v9  ;;  %3644 = vmatmul.msk.f32.gmra.mxu1 %vm231_vm1, %v190_v9  ;;  %v570_v18 = vmul.f32 %v190_v9, %v190_v9 }
 0x1a8   : > { %v624_v17 = vsel %vm231_vm1, %v570_v18, 0.0 }
 0x1a9   : > { %670 = vadd.xlane.f32.xlu1 %v669_v22  ;;  %625 = vadd.xlane.f32.xlu2 %v624_v17 }
 0x1ad   : > { %v191_v23 = vpop.trf.xlu0 }
 0x1ae   : > { %3612 = vmatmul.msk.f32.gmra.mxu0 %vm231_vm1, %v191_v23  ;;  %3645 = vmatmul.msk.f32.gmra.mxu1 %vm231_vm1, %v191_v23  ;;  %v571_v24 = vmul.f32 %v191_v23, %v191_v23 }
 0x1b0   : > { %v627_v26 = vsel %vm231_vm1, %v571_v24, 0.0 }
 0x1b1   : > { %628 = vadd.xlane.f32.xlu1 %v627_v26  ;;  %673 = vadd.xlane.f32.xlu2 %v672_v27 }
 0x1b5   : > { %v192_v29 = vpop.trf.xlu0 }
 0x1b6   : > { %3613 = vmatmul.msk.f32.gmra.mxu0 %vm231_vm1, %v192_v29  ;;  %3646 = vmatmul.msk.f32.gmra.mxu1 %vm231_vm1, %v192_v29  ;;  %v572_v31 = vmul.f32 %v192_v29, %v192_v29 }
 0x1b8   : > { %v630_v25 = vsel %vm231_vm1, %v572_v31, 0.0 }
 0x1b9   : > { %676 = vadd.xlane.f32.xlu1 %v675_v32  ;;  %631 = vadd.xlane.f32.xlu2 %v630_v25 }
 0x1bd   : > { %v193_v33 = vpop.trf.xlu0 }
 0x1be   : > { %3614 = vmatmul.msk.f32.gmra.mxu0 %vm231_vm1, %v193_v33  ;;  %3647 = vmatmul.msk.f32.gmra.mxu1 %vm231_vm1, %v193_v33  ;;  %v573_v34 = vmul.f32 %v193_v33, %v193_v33 }
 0x1c0   : > { %v633_v36 = vsel %vm231_vm1, %v573_v34, 0.0 }
 0x1c1   : > { %634 = vadd.xlane.f32.xlu1 %v633_v36  ;;  %679 = vadd.xlane.f32.xlu2 %v678_v13 }
 0x1c4   : > { %v593_v37 = vpop.xlane.xlu1 %592 }
 0x1c5   : > { %3821 = vrsqrt.f32 %v593_v37  ;;  %v194_v40 = vpop.trf.xlu0  ;;  %vm694_vm9 = vcmp.eq.f32.partialorder %v593_v37, inf  ;;  %v697_v43 = vand.u32 2147483648, %v593_v37  ;;  %vm696_vm10 = vcmp.eq.f32.partialorder %v593_v37, 0.0 }
 0x1c6   : > { %v574_v42 = vmul.f32 %v194_v40, %v194_v40  ;;  %3615 = vmatmul.msk.f32.gmra.mxu0 %vm231_vm1, %v194_v40  ;;  %3648 = vmatmul.msk.f32.gmra.mxu1 %vm231_vm1, %v194_v40 }
 0x1c8   : > { %v636_v10 = vsel %vm231_vm1, %v574_v42, 0.0 }
 0x1c9   : > { %682 = vadd.xlane.f32.xlu1 %v681_v35  ;;  %637 = vadd.xlane.f32.xlu2 %v636_v10 }
 0x1cb   : > { %v3822_v45 = vpop.eup %3821 }
 0x1cc   : > { %v688_v46 = vmul.f32 %v3822_v45, %v593_v37  ;;  %v641_v14 = vpop.xlane.xlu1 %640 }
 0x1cd   : > { %3823 = vrsqrt.f32 %v641_v14  ;;  %vm886_vm1 = vcmp.eq.f32.partialorder %v641_v14, inf  ;;  %v889_v7 = vand.u32 2147483648, %v641_v14  ;;  %vm888_vm11 = vcmp.eq.f32.partialorder %v641_v14, 0.0 }
 0x1ce   : > { %v689_v47 = vmul.f32 %v3822_v45, %v688_v46 }
 0x1d0   : > { %v690_v48 = vmul.f32 0.5, %v689_v47 }
 0x1d1   : > { %685 = vadd.xlane.f32.xlu2 %v684_v50 }
 0x1d2   : > { %v691_v49 = vsub.f32 1.5, %v690_v48 }
 0x1d3   : > { %v3824_v51 = vpop.eup %3823 }
 0x1d4   : > { %v692_v52 = vmul.f32 %v3822_v45, %v691_v49  ;;  %v880_v53 = vmul.f32 %v3824_v51, %v641_v14  ;;  %v4670_v54 = vpop.xlane.xlu1 %595  ;;  %v4672_v55 = vpop.xlane.xlu2 %598 }
 0x1d5   : > { %3825 = vrsqrt.f32 %v4670_v54  ;;  %v709_v22 = vand.u32 2147483648, %v4670_v54  ;;  %vm706_vm12 = vcmp.eq.f32.partialorder %v4670_v54, inf  ;;  %vm718_vm13 = vcmp.eq.f32.partialorder %v4672_v55, inf }
 0x1d6   : > { %v693_v56 = vmul.f32 %v692_v52, %v593_v37  ;;  %v881_v57 = vmul.f32 %v3824_v51, %v880_v53  ;;  %3827 = vrsqrt.f32 %v4672_v55  ;;  %vm708_vm14 = vcmp.eq.f32.partialorder %v4670_v54, 0.0 }
 0x1d7   : > { %vm720_vm15 = vcmp.eq.f32.partialorder %v4672_v55, 0.0  ;;  %v721_v31 = vand.u32 2147483648, %v4672_v55 }
 0x1d8   : > { %v695_v58 = vsel %vm694_vm9, %v593_v37, %v693_v56  ;;  %v882_v59 = vmul.f32 0.5, %v881_v57 }
 0x1d9   : > { %v698_v15 = vsel %vm696_vm10, %v697_v43, %v695_v58 }
 0x1da   : > { %v1116_v11 = vmul.f32 %v4572_v19, %v698_v15  ;;  %v1117_v60 = vmul.f32 %v4574_v21, %v698_v15  ;;  %v883_v61 = vsub.f32 1.5, %v882_v59  ;;  %v350_v59 = vpop.f32.mrf.mxu0 }
 0x1db   : > { %v3826_v62 = vpop.eup %3825 }
 0x1dc   : > { %v3828_v63 = vpop.eup %3827  ;;  %v1180_v0 = vadd.f32 1e-06, %v1116_v11  ;;  %v4678_v1 = vadd.f32 1e-06, %v1117_v60  ;;  %v884_v2 = vmul.f32 %v3824_v51, %v883_v61  ;;  %v700_v3 = vmul.f32 %v3826_v62, %v4670_v54  ;;  %v4683_v6 = vpop.xlane.xlu1 %646 }
 0x1dd   : > { %v712_v4 = vmul.f32 %v3828_v63, %v4672_v55  ;;  %v913_v50 = vand.u32 2147483648, %v4683_v6 }
 0x1de   : > { %3829 = vrcp.f32 %v1180_v0  ;;  %v885_v16 = vmul.f32 %v884_v2, %v641_v14  ;;  %v701_v5 = vmul.f32 %v3826_v62, %v700_v3  ;;  %v1253_v32 = vand.u32 2147483647, %v1180_v0 }
 0x1df   : > { %3831 = vrcp.f32 %v4678_v1  ;;  %v713_v8 = vmul.f32 %v3828_v63, %v712_v4  ;;  %v1255_v36 = vand.u32 2147483648, %v1180_v0  ;;  %v1268_v40 = vand.u32 2147483647, %v4678_v1 }
 0x1e0   : > { %v887_v12 = vsel %vm886_vm1, %v641_v14, %v885_v16  ;;  %v702_v9 = vmul.f32 0.5, %v701_v5  ;;  %3833 = vrsqrt.f32 %v4683_v6  ;;  %v1270_v42 = vand.u32 2147483648, %v4678_v1 }
 0x1e1   : > { %v890_v18 = vsel %vm888_vm11, %v889_v7, %v887_v12  ;;  %v714_v17 = vmul.f32 0.5, %v713_v8  ;;  %vm1249_vm0 = vweird.f32 %v1180_v0  ;;  %vm4705_vm3 = vcmp.eq.f32.partialorder %v1253_v32, 8.507059e+37 }
 0x1e2   : > { %v1148_v20 = vmul.f32 %v4572_v19, %v890_v18  ;;  %v1149_v24 = vmul.f32 %v4574_v21, %v890_v18  ;;  %v703_v26 = vsub.f32 1.5, %v702_v9  ;;  %vm1264_vm4 = vweird.f32 %v4678_v1 }
 0x1e3   : > { %v715_v29 = vsub.f32 1.5, %v714_v17  ;;  %v1256_v47 = vor.u32 1.1754944e-38, %v1255_v36  ;;  %vm4712_vm7 = vcmp.eq.f32.partialorder %v1268_v40, 8.507059e+37  ;;  %v1271_v51 = vor.u32 1.1754944e-38, %v1270_v42  ;;  %v4753_v36 = vpop.xlane.xlu2 %601 }
 0x1e4   : > { %v3830_v23 = vpop.eup %3829  ;;  %v4695_v33 = vadd.f32 1e-06, %v1148_v20  ;;  %v4697_v30 = vadd.f32 1e-06, %v1149_v24  ;;  %v704_v13 = vmul.f32 %v3826_v62, %v703_v26 }
 0x1e5   : > { %v3832_v27 = vpop.eup %3831  ;;  %v1245_v28 = vmul.f32 %v3830_v23, %v1180_v0  ;;  %v716_v37 = vmul.f32 %v3828_v63, %v715_v29  ;;  %vm1250_vm2 = vweird.f32 %v3830_v23  ;;  %v463_v0 = vpop.f32.mrf.mxu1 }
 0x1e6   : > { %v1260_v25 = vmul.f32 %v3832_v27, %v4678_v1  ;;  %3835 = vrcp.f32 %v4695_v33  ;;  %v4702_v35 = vpop.eup %3833  ;;  %vm1265_vm5 = vweird.f32 %v3832_v27  ;;  %v705_v38 = vmul.f32 %v704_v13, %v4670_v54  ;;  %vm1251_vm6 = vmor %vm1249_vm0, %vm1250_vm2 }
 0x1e7   : > { %v1246_v34 = vsub.f32 1.0, %v1245_v28  ;;  %3837 = vrcp.f32 %v4697_v30  ;;  %v717_v48 = vmul.f32 %v716_v37, %v4672_v55  ;;  %v904_v52 = vmul.f32 %v4702_v35, %v4683_v6  ;;  %vm1266_vm8 = vmor %vm1264_vm4, %vm1265_vm5 }
 0x1e8   : > { %v1261_v39 = vsub.f32 1.0, %v1260_v25  ;;  %v1733_v56 = vand.u32 2147483647, %v4695_v33  ;;  %v707_v57 = vsel %vm706_vm12, %v4670_v54, %v705_v38  ;;  %v1735_v3 = vand.u32 2147483648, %v4695_v33 }
 0x1e9   : > { %v1247_v10 = vmul.f32 %v3830_v23, %v1246_v34  ;;  %v719_v43 = vsel %vm718_vm13, %v4672_v55, %v717_v48  ;;  %v710_v60 = vsel %vm708_vm14, %v709_v22, %v707_v57  ;;  %v1750_v5 = vand.u32 2147483648, %v4697_v30 }
 0x1ea   : > { %v1262_v46 = vmul.f32 %v3832_v27, %v1261_v39  ;;  %v722_v61 = vsel %vm720_vm15, %v721_v31, %v719_v43  ;;  %v1118_v54 = vmul.f32 %v4572_v19, %v710_v60  ;;  %v1119_v8 = vmul.f32 %v4574_v21, %v710_v60 }
 0x1eb   : > { %v1248_v14 = vadd.f32 %v3830_v23, %v1247_v10  ;;  %v1120_v12 = vmul.f32 %v4572_v19, %v722_v61  ;;  %v1748_v26 = vand.u32 2147483647, %v4697_v30  ;;  %vm1729_vm1 = vweird.f32 %v4695_v33 }
 0x1ec   : > { %v1263_v49 = vadd.f32 %v3832_v27, %v1262_v46  ;;  %v3836_v58 = vpop.eup %3835  ;;  %v4740_v22 = vadd.f32 1e-06, %v1118_v54  ;;  %v1736_v28 = vor.u32 1.1754944e-38, %v1735_v3  ;;  %vm1744_vm12 = vweird.f32 %v4697_v30 }
 0x1ed   : > { %v1252_v53 = vsel %vm1251_vm6, %v3830_v23, %v1248_v14  ;;  %v3838_v62 = vpop.eup %3837  ;;  %v1725_v2 = vmul.f32 %v3836_v58, %v4695_v33  ;;  %vm1730_vm9 = vweird.f32 %v3836_v58  ;;  %v4742_v23 = vadd.f32 1e-06, %v1119_v8 }
 0x1ee   : > { %v1257_v15 = vsel %vm4705_vm3, %v1256_v47, %v1252_v53  ;;  %v1267_v11 = vsel %vm1266_vm8, %v3832_v27, %v1263_v49  ;;  %v1740_v16 = vmul.f32 %v3838_v62, %v4697_v30  ;;  %v4744_v20 = vadd.f32 1e-06, %v1120_v12  ;;  %vm1731_vm11 = vmor %vm1729_vm1, %vm1730_vm9 }
 0x1ef   : > { %v1258_v63 = vmul.f32 %v1257_v15, %v350_v59  ;;  %v1272_v1 = vsel %vm4712_vm7, %v1271_v51, %v1267_v11  ;;  %v1726_v55 = vsub.f32 1.0, %v1725_v2  ;;  %vm1745_vm10 = vweird.f32 %v3838_v62 }
 0x1f0   : > { %v1273_v4 = vmul.f32 %v1272_v1, %v463_v0  ;;  %v1741_v18 = vsub.f32 1.0, %v1740_v16  ;;  %vm1734_vm13 = vcmp.eq.f32.partialorder %v1733_v56, 8.507059e+37  ;;  %vm1746_vm14 = vmor %vm1744_vm12, %vm1745_vm10  ;;  %v1751_v32 = vor.u32 1.1754944e-38, %v1750_v5 }
 0x1f1   : > { %v3665_v7 = vmul.f32 -1.442695, %v1258_v63  ;;  %v1727_v17 = vmul.f32 %v3836_v58, %v1726_v55  ;;  %vm1749_vm15 = vcmp.eq.f32.partialorder %v1748_v26, 8.507059e+37  ;;  %v905_v33 = vmul.f32 %v4702_v35, %v904_v52 }
 0x1f2   : > { %v3666_v9 = vmul.f32 -1.442695, %v1273_v4  ;;  %v1742_v24 = vmul.f32 %v3838_v62, %v1741_v18  ;;  %v1285_v30 = vand.u32 2147483648, %v4740_v22  ;;  %v1300_v40 = vand.u32 2147483648, %v4742_v23 }
 0x1f3   : > { %3839 = vpow2.f32 %v3665_v7  ;;  %v1728_v27 = vadd.f32 %v3836_v58, %v1727_v17  ;;  %v1121_v38 = vmul.f32 %v4574_v21, %v722_v61  ;;  %v1283_v48 = vand.u32 2147483647, %v4740_v22 }
 0x1f4   : > { %3841 = vpow2.f32 %v3666_v9  ;;  %v1743_v29 = vadd.f32 %v3838_v62, %v1742_v24  ;;  %v4771_v49 = vmul.f32 0.5, %v905_v33  ;;  %v4777_v51 = vor.u32 1.1754944e-38, %v1285_v30  ;;  %v353_v33 = vpop.f32.mrf.mxu0 }
 0x1f5   : > { %3843 = vrcp.f32 %v4740_v22  ;;  %v1732_v31 = vsel %vm1731_vm11, %v3836_v58, %v1728_v27  ;;  %v1298_v52 = vand.u32 2147483647, %v4742_v23  ;;  %v4780_v53 = vor.u32 1.1754944e-38, %v1300_v40 }
 0x1f6   : > { %3845 = vrcp.f32 %v4742_v23  ;;  %v1737_v25 = vsel %vm1734_vm13, %v1736_v28, %v1732_v31  ;;  %v1747_v34 = vsel %vm1746_vm14, %v3838_v62, %v1743_v29  ;;  %vm1279_vm0 = vweird.f32 %v4740_v22 }
 0x1f7   : > { %3847 = vrcp.f32 %v4744_v20  ;;  %v1738_v37 = vmul.f32 %v1737_v25, %v4586_v41  ;;  %v1752_v39 = vsel %vm1749_vm15, %v1751_v32, %v1747_v34  ;;  %v1313_v43 = vand.u32 2147483647, %v4744_v20 }
 0x1f8   : > { %v1753_v45 = vmul.f32 %v1752_v39, %v4588_v44  ;;  %3849 = vrsqrt.f32 %v4753_v36  ;;  %v4789_v11 = vadd.f32 1e-06, %v1121_v38  ;;  %vm1294_vm2 = vweird.f32 %v4742_v23 }
 0x1f9   : > { %v3840_v13 = vpop.eup %3839  ;;  %v3697_v47 = vmul.f32 -1.442695, %v1738_v37  ;;  %v1315_v1 = vand.u32 2147483648, %v4744_v20  ;;  %v907_v2 = vsub.f32 1.5, %v4771_v49  ;;  %vm4803_vm5 = vcmp.eq.f32.partialorder %v1283_v48, 8.507059e+37 }
 0x1fa   : > { %v3842_v42 = vpop.eup %3841  ;;  %v4758_v10 = vadd.f32 1.0, %v3840_v13  ;;  %v3698_v57 = vmul.f32 -1.442695, %v1753_v45  ;;  %vm1309_vm8 = vweird.f32 %v4744_v20  ;;  %vm4825_vm1 = vcmp.eq.f32.partialorder %v1298_v52, 8.507059e+37 }
 0x1fb   : > { %v4761_v46 = vpop.eup %3843  ;;  %v4763_v14 = vadd.f32 1.0, %v3842_v42  ;;  %vm4835_vm13 = vcmp.eq.f32.partialorder %v1313_v43, 8.507059e+37  ;;  %v1330_v37 = vand.u32 2147483648, %v4789_v11  ;;  %v1316_v38 = vor.u32 1.1754944e-38, %v1315_v1 }
 0x1fc   : > { %v4767_v41 = vpop.eup %3845  ;;  %3851 = vrcp.f32 %v4758_v10  ;;  %v2471_v56 = vand.u32 2147483648, %v4758_v10  ;;  %v2469_v58 = vand.u32 2147483647, %v4758_v10  ;;  %v1275_v15 = vmul.f32 %v4761_v46, %v4740_v22 }
 0x1fd   : > { %v4774_v44 = vpop.eup %3847  ;;  %3853 = vrcp.f32 %v4763_v14  ;;  %v2486_v59 = vand.u32 2147483648, %v4763_v14  ;;  %v2484_v60 = vand.u32 2147483647, %v4763_v14  ;;  %v1290_v61 = vmul.f32 %v4767_v41, %v4742_v23 }
 0x1fe   : > { %3855 = vpow2.f32 %v3697_v47  ;;  %v1305_v62 = vmul.f32 %v4774_v44, %v4744_v20  ;;  %v4797_v63 = vpop.eup %3849  ;;  %vm2465_vm3 = vweird.f32 %v4758_v10  ;;  %v1276_v0 = vsub.f32 1.0, %v1275_v15 }
 0x1ff   : > { %3857 = vpow2.f32 %v3698_v57  ;;  %v2472_v4 = vor.u32 1.1754944e-38, %v2471_v56  ;;  %vm2480_vm4 = vweird.f32 %v4763_v14  ;;  %v1291_v5 = vsub.f32 1.0, %v1290_v61 }
 0x200   : > { %v1306_v54 = vsub.f32 1.0, %v1305_v62  ;;  %vm4810_vm6 = vcmp.eq.f32.partialorder %v2469_v58, 8.507059e+37  ;;  %v2487_v12 = vor.u32 1.1754944e-38, %v2486_v59  ;;  %v1277_v9 = vmul.f32 %v4761_v46, %v1276_v0  ;;  %v466_v0 = vpop.f32.mrf.mxu1 }
 0x201   : > { %vm1280_vm7 = vweird.f32 %v4761_v46  ;;  %vm4819_vm9 = vcmp.eq.f32.partialorder %v2484_v60, 8.507059e+37  ;;  %v1292_v26 = vmul.f32 %v4767_v41, %v1291_v5  ;;  %vm1295_vm10 = vweird.f32 %v4767_v41 }
 0x202   : > { %v3852_v3 = vpop.eup %3851  ;;  %3859 = vrcp.f32 %v4789_v11  ;;  %v1278_v31 = vadd.f32 %v4761_v46, %v1277_v9  ;;  %v1307_v32 = vmul.f32 %v4774_v44, %v1306_v54  ;;  %vm1310_vm12 = vweird.f32 %v4774_v44  ;;  %vm4847_vm14 = vmor %vm1279_vm0, %vm1280_vm7 }
 0x203   : > { %v4807_v7 = vpop.eup %3853  ;;  %v2461_v55 = vmul.f32 %v3852_v3, %v4758_v10  ;;  %vm2466_vm11 = vweird.f32 %v3852_v3  ;;  %v1293_v42 = vadd.f32 %v4767_v41, %v1292_v26  ;;  %vm4862_vm0 = vmor %vm1294_vm2, %vm1295_vm10  ;;  %v1328_v56 = vand.u32 2147483647, %v4789_v11 }
 0x204   : > { %v3856_v18 = vpop.eup %3855  ;;  %v2476_v17 = vmul.f32 %v4807_v7, %v4763_v14  ;;  %vm2481_vm15 = vweird.f32 %v4807_v7  ;;  %v1282_v47 = vsel %vm4847_vm14, %v4761_v46, %v1278_v31  ;;  %v1308_v52 = vadd.f32 %v4774_v44, %v1307_v32  ;;  %vm2467_vm7 = vmor %vm2465_vm3, %vm2466_vm11 }
 0x205   : > { %v2462_v28 = vsub.f32 1.0, %v2461_v55  ;;  %v4830_v29 = vadd.f32 1.0, %v3856_v18  ;;  %v3858_v25 = vpop.eup %3857  ;;  %v4876_v58 = vor.u32 1.1754944e-38, %v1330_v37  ;;  %vm910_vm2 = vcmp.eq.f32.partialorder %v4683_v6, inf  ;;  %vm4883_vm10 = vmor %vm2480_vm4, %vm2481_vm15 }
 0x206   : > { %v2477_v34 = vsub.f32 1.0, %v2476_v17  ;;  %v4840_v30 = vadd.f32 1.0, %v3858_v25  ;;  %v1287_v60 = vsel %vm4803_vm5, %v4777_v51, %v1282_v47  ;;  %v1297_v61 = vsel %vm4862_vm0, %v4767_v41, %v1293_v42  ;;  %vm4907_vm5 = vmor %vm1309_vm8, %vm1310_vm12 }
 0x207   : > { %v2463_v39 = vmul.f32 %v3852_v3, %v2462_v28  ;;  %3861 = vrcp.f32 %v4830_v29  ;;  %v2949_v43 = vand.u32 2147483647, %v4830_v29  ;;  %v2951_v23 = vand.u32 2147483648, %v4830_v29  ;;  %v356_v28 = vpop.f32.mrf.mxu0 }
 0x208   : > { %v2478_v45 = vmul.f32 %v4807_v7, %v2477_v34  ;;  %3863 = vrcp.f32 %v4840_v30  ;;  %v4868_v57 = vpop.eup %3859  ;;  %v2966_v10 = vand.u32 2147483648, %v4840_v30  ;;  %vm1324_vm3 = vweird.f32 %v4789_v11 }
 0x209   : > { %v2464_v48 = vadd.f32 %v3852_v3, %v2463_v39  ;;  %vm912_vm11 = vcmp.eq.f32.partialorder %v4683_v6, 0.0  ;;  %vm2945_vm4 = vweird.f32 %v4830_v29  ;;  %v2964_v51 = vand.u32 2147483647, %v4840_v30 }
 0x20a   : > { %v2479_v46 = vadd.f32 %v4807_v7, %v2478_v45  ;;  %v1288_v1 = vmul.f32 %v1287_v60, %v353_v33  ;;  %v1302_v16 = vsel %vm4825_vm1, %v4780_v53, %v1297_v61  ;;  %v1312_v5 = vsel %vm4907_vm5, %v4774_v44, %v1308_v52  ;;  %v469_v52 = vpop.f32.mrf.mxu1 }
 0x20b   : > { %v2468_v59 = vsel %vm2467_vm7, %v3852_v3, %v2464_v48  ;;  %v1320_v20 = vmul.f32 %v4868_v57, %v4789_v11  ;;  %vm4928_vm8 = vcmp.eq.f32.partialorder %v2949_v43, 8.507059e+37  ;;  %v2952_v8 = vor.u32 1.1754944e-38, %v2951_v23 }
 0x20c   : > { %v2473_v14 = vsel %vm4810_vm6, %v2472_v4, %v2468_v59  ;;  %v2483_v62 = vsel %vm4883_vm10, %v4807_v7, %v2479_v46  ;;  %vm4922_vm6 = vcmp.eq.f32.partialorder %v1328_v56, 8.507059e+37  ;;  %v1303_v53 = vmul.f32 %v1302_v16, %v466_v0 }
 0x20d   : > { %v3862_v3 = vpop.eup %3861  ;;  %3420 = vst [vmem:[%s4623_s15] sm:$0xff] %v2473_v14  ;;  %v2488_v4 = vsel %vm4819_vm9, %v2487_v12, %v2483_v62  ;;  %vm2960_vm9 = vweird.f32 %v4840_v30  ;;  %v3667_v12 = vmul.f32 -1.442695, %v1288_v1  ;;  %v2967_v9 = vor.u32 1.1754944e-38, %v2966_v10 }
 0x20e   : > { %3421 = vst [vmem:[%s4623_s15 + $0x8] sm:$0xff] %v2488_v4  ;;  %v2941_v7 = vmul.f32 %v3862_v3, %v4830_v29  ;;  %v3864_v44 = vpop.eup %3863  ;;  %v1317_v18 = vsel %vm4835_vm13, %v1316_v38, %v1312_v5  ;;  %v1321_v17 = vsub.f32 1.0, %v1320_v20  ;;  %v908_v24 = vmul.f32 %v4702_v35, %v907_v2 }
 0x20f   : > { %v2956_v27 = vmul.f32 %v3864_v44, %v4840_v30  ;;  %3865 = vpow2.f32 %v3667_v12  ;;  %vm1325_vm1 = vweird.f32 %v4868_v57  ;;  %v3668_v31 = vmul.f32 -1.442695, %v1303_v53 }
 0x210   : > { %v2942_v26 = vsub.f32 1.0, %v2941_v7  ;;  %v1318_v32 = vmul.f32 %v1317_v18, %v356_v28  ;;  %v1322_v25 = vmul.f32 %v4868_v57, %v1321_v17  ;;  %v909_v34 = vmul.f32 %v908_v24, %v4683_v6  ;;  %vm1326_vm14 = vmor %vm1324_vm3, %vm1325_vm1 }
 0x211   : > { %vm2946_vm12 = vweird.f32 %v3862_v3  ;;  %v2957_v13 = vsub.f32 1.0, %v2956_v27  ;;  %v724_v49 = vmul.f32 %v4797_v63, %v4753_v36  ;;  %3867 = vpow2.f32 %v3668_v31 }
 0x212   : > { %v2943_v33 = vmul.f32 %v3862_v3, %v2942_v26  ;;  %v3669_v35 = vmul.f32 -1.442695, %v1318_v32  ;;  %v1323_v2 = vadd.f32 %v4868_v57, %v1322_v25  ;;  %v911_v37 = vsel %vm910_vm2, %v4683_v6, %v909_v34  ;;  %vm2947_vm15 = vmor %vm2945_vm4, %vm2946_vm12 }
 0x213   : > { %v2958_v40 = vmul.f32 %v3864_v44, %v2957_v13  ;;  %vm2961_vm13 = vweird.f32 %v3864_v44  ;;  %v914_v42 = vsel %vm912_vm11, %v913_v50, %v911_v37  ;;  %v725_v38 = vmul.f32 %v4797_v63, %v724_v49 }
 0x214   : > { %v2944_v39 = vadd.f32 %v3862_v3, %v2943_v33  ;;  %3869 = vpow2.f32 %v3669_v35  ;;  %v1327_v45 = vsel %vm1326_vm14, %v4868_v57, %v1323_v2  ;;  %v1152_v47 = vmul.f32 %v4572_v19, %v914_v42  ;;  %vm2962_vm0 = vmor %vm2960_vm9, %vm2961_vm13 }
 0x215   : > { %v3866_v48 = vpop.eup %3865  ;;  %v2959_v11 = vadd.f32 %v3864_v44, %v2958_v40  ;;  %v1332_v6 = vsel %vm4922_vm6, %v4876_v58, %v1327_v45  ;;  %v1153_v50 = vmul.f32 %v4574_v21, %v914_v42  ;;  %vm2965_vm7 = vcmp.eq.f32.partialorder %v2964_v51, 8.507059e+37 }
 0x216   : > { %v2948_v22 = vsel %vm2947_vm15, %v3862_v3, %v2944_v39  ;;  %v4970_v56 = vadd.f32 1.0, %v3866_v48  ;;  %v1333_v57 = vmul.f32 %v1332_v6, %v469_v52  ;;  %v4972_v46 = vadd.f32 1e-06, %v1152_v47  ;;  %v5045_v52 = vpop.xlane.xlu2 %649 }
 0x217   : > { %v2953_v29 = vsel %vm4928_vm8, %v2952_v8, %v2948_v22  ;;  %v2963_v43 = vsel %vm2962_vm0, %v3864_v44, %v2959_v11  ;;  %v3868_v23 = vpop.eup %3867  ;;  %v726_v59 = vmul.f32 0.5, %v725_v38  ;;  %v4981_v60 = vadd.f32 1e-06, %v1153_v50 }
 0x218   : > { %3452 = vst [vmem:[%s4623_s15 + $0x100] sm:$0xff] %v2953_v29  ;;  %v2968_v58 = vsel %vm2965_vm7, %v2967_v9, %v2963_v43  ;;  %3871 = vrcp.f32 %v4970_v56  ;;  %v4979_v15 = vadd.f32 1.0, %v3868_v23  ;;  %v3670_v10 = vmul.f32 -1.442695, %v1333_v57  ;;  %v404_v23 = vpop.f32.mrf.mxu2 }
 0x219   : > { %3453 = vst [vmem:[%s4623_s15 + $0x108] sm:$0xff] %v2968_v58  ;;  %3873 = vrcp.f32 %v4972_v46  ;;  %v2499_v14 = vand.u32 2147483647, %v4970_v56  ;;  %v2501_v30 = vand.u32 2147483648, %v4970_v56  ;;  %v1795_v51 = vand.u32 2147483648, %v4972_v46 }
 0x21a   : > { %v3870_v61 = vpop.eup %3869  ;;  %3875 = vrcp.f32 %v4979_v15  ;;  %v2516_v0 = vand.u32 2147483648, %v4979_v15  ;;  %v1793_v1 = vand.u32 2147483647, %v4972_v46  ;;  %v727_v41 = vsub.f32 1.5, %v726_v59 }
 0x21b   : > { %v4987_v62 = vadd.f32 1.0, %v3870_v61  ;;  %3877 = vpow2.f32 %v3670_v10  ;;  %v2514_v4 = vand.u32 2147483647, %v4979_v15  ;;  %vm2495_vm2 = vweird.f32 %v4970_v56 }
 0x21c   : > { %3879 = vrcp.f32 %v4981_v60  ;;  %vm4999_vm10 = vcmp.eq.f32.partialorder %v2499_v14, 8.507059e+37  ;;  %vm1789_vm3 = vweird.f32 %v4972_v46  ;;  %v2502_v54 = vor.u32 1.1754944e-38, %v2501_v30 }
 0x21d   : > { %3881 = vrcp.f32 %v4987_v62  ;;  %vm2510_vm11 = vweird.f32 %v4979_v15  ;;  %v1796_v55 = vor.u32 1.1754944e-38, %v1795_v51  ;;  %vm730_vm4 = vcmp.eq.f32.partialorder %v4753_v36, inf }
 0x21e   : > { %v3872_v3 = vpop.eup %3871  ;;  %v2517_v12 = vor.u32 1.1754944e-38, %v2516_v0  ;;  %v2529_v44 = vand.u32 2147483647, %v4987_v62  ;;  %vm5009_vm5 = vcmp.eq.f32.partialorder %v1793_v1, 8.507059e+37  ;;  %v728_v18 = vmul.f32 %v4797_v63, %v727_v41 }
 0x21f   : > { %v4995_v16 = vpop.eup %3873  ;;  %v2491_v5 = vmul.f32 %v3872_v3, %v4970_v56  ;;  %vm732_vm6 = vcmp.eq.f32.partialorder %v4753_v36, 0.0  ;;  %vm2496_vm8 = vweird.f32 %v3872_v3  ;;  %vm5016_vm9 = vcmp.eq.f32.partialorder %v2514_v4, 8.507059e+37 }
 0x220   : > { %v1785_v7 = vmul.f32 %v4995_v16, %v4972_v46  ;;  %v3876_v8 = vpop.eup %3875  ;;  %v2531_v27 = vand.u32 2147483648, %v4987_v62  ;;  %vm1804_vm1 = vweird.f32 %v4981_v60  ;;  %vm2525_vm12 = vweird.f32 %v4987_v62  ;;  %vm2497_vm15 = vmor %vm2495_vm2, %vm2496_vm8 }
 0x221   : > { %v2492_v53 = vsub.f32 1.0, %v2491_v5  ;;  %v3878_v17 = vpop.eup %3877  ;;  %v2506_v24 = vmul.f32 %v3876_v8, %v4979_v15  ;;  %vm1790_vm13 = vweird.f32 %v4995_v16  ;;  %v1808_v25 = vand.u32 2147483647, %v4981_v60  ;;  %v5067_v15 = vpop.xlane.xlu1 %604 }
 0x222   : > { %v1786_v28 = vsub.f32 1.0, %v1785_v7  ;;  %v5022_v31 = vpop.eup %3879  ;;  %v5025_v63 = vadd.f32 1.0, %v3878_v17  ;;  %v1810_v35 = vand.u32 2147483648, %v4981_v60  ;;  %vm5034_vm14 = vcmp.eq.f32.partialorder %v2529_v44, 8.507059e+37  ;;  %vm1791_vm2 = vmor %vm1789_vm3, %vm1790_vm13 }
 0x223   : > { %v2493_v32 = vmul.f32 %v3872_v3, %v2492_v53  ;;  %v3882_v34 = vpop.eup %3881  ;;  %v2507_v33 = vsub.f32 1.0, %v2506_v24  ;;  %v1800_v49 = vmul.f32 %v5022_v31, %v4981_v60  ;;  %v729_v40 = vmul.f32 %v728_v18, %v4753_v36  ;;  %v517_v60 = vpop.f32.mrf.mxu3 }
 0x224   : > { %v1787_v13 = vmul.f32 %v4995_v16, %v1786_v28  ;;  %v2521_v37 = vmul.f32 %v3882_v34, %v4987_v62  ;;  %3883 = vrcp.f32 %v5025_v63  ;;  %vm2511_vm0 = vweird.f32 %v3876_v8 }
 0x225   : > { %v2494_v2 = vadd.f32 %v3872_v3, %v2493_v32  ;;  %v2508_v42 = vmul.f32 %v3876_v8, %v2507_v33  ;;  %v2532_v45 = vor.u32 1.1754944e-38, %v2531_v27  ;;  %v733_v47 = vand.u32 2147483648, %v4753_v36 }
 0x226   : > { %v2522_v48 = vsub.f32 1.0, %v2521_v37  ;;  %v1788_v22 = vadd.f32 %v4995_v16, %v1787_v13  ;;  %v1801_v11 = vsub.f32 1.0, %v1800_v49  ;;  %vm2526_vm7 = vweird.f32 %v3882_v34 }
 0x227   : > { %v2498_v38 = vsel %vm2497_vm15, %v3872_v3, %v2494_v2  ;;  %v2509_v50 = vadd.f32 %v3876_v8, %v2508_v42  ;;  %vm1805_vm8 = vweird.f32 %v5022_v31  ;;  %vm2512_vm15 = vmor %vm2510_vm11, %vm2511_vm0  ;;  %v731_v43 = vsel %vm730_vm4, %v4753_v36, %v729_v40 }
 0x228   : > { %v2503_v6 = vsel %vm4999_vm10, %v2502_v54, %v2498_v38  ;;  %v2523_v29 = vmul.f32 %v3882_v34, %v2522_v48  ;;  %v1792_v56 = vsel %vm1791_vm2, %v4995_v16, %v1788_v22  ;;  %v1802_v57 = vmul.f32 %v5022_v31, %v1801_v11  ;;  %vm1806_vm10 = vmor %vm1804_vm1, %vm1805_vm8 }
 0x229   : > { %3422 = vst [vmem:[%s4623_s15 + $0x10] sm:$0xff] %v2503_v6  ;;  %v2513_v58 = vsel %vm2512_vm15, %v3876_v8, %v2509_v50  ;;  %v1797_v46 = vsel %vm5009_vm5, %v1796_v55, %v1792_v56  ;;  %v734_v59 = vsel %vm732_vm6, %v733_v47, %v731_v43  ;;  %3885 = vrsqrt.f32 %v5045_v52  ;;  %vm2527_vm3 = vmor %vm2525_vm12, %vm2526_vm7  ;;  %v5099_v28 = vpop.xlane.xlu1 %652 }
 0x22a   : > { %v3884_v10 = vpop.eup %3883  ;;  %v2518_v61 = vsel %vm5016_vm9, %v2517_v12, %v2513_v58  ;;  %v2524_v14 = vadd.f32 %v3882_v34, %v2523_v29  ;;  %v1798_v30 = vmul.f32 %v1797_v46, %v404_v23  ;;  %v1803_v51 = vadd.f32 %v5022_v31, %v1802_v57 }
 0x22b   : > { %3423 = vst [vmem:[%s4623_s15 + $0x18] sm:$0xff] %v2518_v61  ;;  %v2536_v36 = vmul.f32 %v3884_v10, %v5025_v63  ;;  %v1811_v0 = vor.u32 1.1754944e-38, %v1810_v35  ;;  %v1122_v1 = vmul.f32 %v4572_v19, %v734_v59  ;;  %v1123_v41 = vmul.f32 %v4574_v21, %v734_v59 }
 0x22c   : > { %v2528_v3 = vsel %vm2527_vm3, %v3882_v34, %v2524_v14  ;;  %v1807_v4 = vsel %vm1806_vm10, %v5022_v31, %v1803_v51  ;;  %vm1809_vm11 = vcmp.eq.f32.partialorder %v1808_v25, 8.507059e+37  ;;  %v3701_v16 = vmul.f32 -1.442695, %v1798_v30 }
 0x22d   : > { %v2533_v5 = vsel %vm5034_vm14, %v2532_v45, %v2528_v3  ;;  %v2537_v20 = vsub.f32 1.0, %v2536_v36  ;;  %v1812_v54 = vsel %vm1809_vm11, %v1811_v0, %v1807_v4  ;;  %v5086_v62 = vadd.f32 1e-06, %v1122_v1  ;;  %v359_v4 = vpop.f32.mrf.mxu0 }
 0x22e   : > { %3424 = vst [vmem:[%s4623_s15 + $0x20] sm:$0xff] %v2533_v5  ;;  %v2546_v7 = vand.u32 2147483648, %v5025_v63  ;;  %v1813_v55 = vmul.f32 %v1812_v54, %v517_v60  ;;  %3887 = vpow2.f32 %v3701_v16  ;;  %v5090_v8 = vadd.f32 1e-06, %v1123_v41 }
 0x22f   : > { %v3886_v53 = vpop.eup %3885  ;;  %v2538_v12 = vmul.f32 %v3884_v10, %v2537_v20  ;;  %vm2541_vm4 = vweird.f32 %v3884_v10  ;;  %v2544_v44 = vand.u32 2147483647, %v5025_v63  ;;  %3889 = vrcp.f32 %v5086_v62 }
 0x230   : > { %v3702_v9 = vmul.f32 -1.442695, %v1813_v55  ;;  %3891 = vrcp.f32 %v5090_v8  ;;  %vm2540_vm5 = vweird.f32 %v5025_v63  ;;  %v2547_v17 = vor.u32 1.1754944e-38, %v2546_v7 }
 0x231   : > { %v2539_v18 = vadd.f32 %v3884_v10, %v2538_v12  ;;  %vm2542_vm6 = vmor %vm2540_vm5, %vm2541_vm4  ;;  %v916_v24 = vmul.f32 %v3886_v53, %v5045_v52  ;;  %vm2545_vm9 = vcmp.eq.f32.partialorder %v2544_v44, 8.507059e+37  ;;  %v1343_v27 = vand.u32 2147483647, %v5086_v62 }
 0x232   : > { %3893 = vpow2.f32 %v3702_v9  ;;  %vm1339_vm1 = vweird.f32 %v5086_v62  ;;  %v1345_v49 = vand.u32 2147483648, %v5086_v62  ;;  %vm922_vm12 = vcmp.eq.f32.partialorder %v5045_v52, inf }
 0x233   : > { %v2543_v26 = vsel %vm2542_vm6, %v3884_v10, %v2539_v18  ;;  %3895 = vrsqrt.f32 %v5067_v15  ;;  %v917_v25 = vmul.f32 %v3886_v53, %v916_v24  ;;  %vm5110_vm13 = vcmp.eq.f32.partialorder %v1343_v27, 8.507059e+37  ;;  %v472_v27 = vpop.f32.mrf.mxu1 }
 0x234   : > { %v3888_v31 = vpop.eup %3887  ;;  %v2548_v32 = vsel %vm2545_vm9, %v2547_v17, %v2543_v26  ;;  %3897 = vrsqrt.f32 %v5099_v28  ;;  %vm1354_vm14 = vweird.f32 %v5090_v8  ;;  %v1358_v37 = vand.u32 2147483647, %v5090_v8 }
 0x235   : > { %v3890_v34 = vpop.eup %3889  ;;  %3425 = vst [vmem:[%s4623_s15 + $0x28] sm:$0xff] %v2548_v32  ;;  %v5102_v33 = vadd.f32 1.0, %v3888_v31  ;;  %v918_v35 = vmul.f32 0.5, %v917_v25  ;;  %vm924_vm0 = vcmp.eq.f32.partialorder %v5045_v52, 0.0  ;;  %v1360_v45 = vand.u32 2147483648, %v5090_v8 }
 0x236   : > { %v3892_v63 = vpop.eup %3891  ;;  %v1335_v13 = vmul.f32 %v3890_v34, %v5086_v62  ;;  %vm1340_vm7 = vweird.f32 %v3890_v34  ;;  %v1346_v57 = vor.u32 1.1754944e-38, %v1345_v49  ;;  %v925_v43 = vand.u32 2147483648, %v5045_v52 }
 0x237   : > { %3899 = vrcp.f32 %v5102_v33  ;;  %v1350_v42 = vmul.f32 %v3892_v63, %v5090_v8  ;;  %v919_v47 = vsub.f32 1.5, %v918_v35  ;;  %v3009_v22 = vand.u32 2147483647, %v5102_v33  ;;  %vm1341_vm15 = vmor %vm1339_vm1, %vm1340_vm7 }
 0x238   : > { %v3894_v39 = vpop.eup %3893  ;;  %v1336_v40 = vsub.f32 1.0, %v1335_v13  ;;  %v3011_v11 = vand.u32 2147483648, %v5102_v33  ;;  %vm1355_vm2 = vweird.f32 %v3892_v63  ;;  %vm3005_vm8 = vweird.f32 %v5102_v33 }
 0x239   : > { %v3896_v38 = vpop.eup %3895  ;;  %v5119_v48 = vadd.f32 1.0, %v3894_v39  ;;  %v1351_v50 = vsub.f32 1.0, %v1350_v42  ;;  %v920_v29 = vmul.f32 %v3886_v53, %v919_v47  ;;  %vm5133_vm10 = vcmp.eq.f32.partialorder %v1358_v37, 8.507059e+37  ;;  %vm1356_vm11 = vmor %vm1354_vm14, %vm1355_vm2  ;;  %v5155_v53 = vpop.xlane.xlu2 %607 }
 0x23a   : > { %v1337_v6 = vmul.f32 %v3890_v34, %v1336_v40  ;;  %v736_v56 = vmul.f32 %v3896_v38, %v5067_v15  ;;  %v5126_v23 = vpop.eup %3897  ;;  %v3012_v14 = vor.u32 1.1754944e-38, %v3011_v11  ;;  %v1361_v51 = vor.u32 1.1754944e-38, %v1360_v45 }
 0x23b   : > { %3901 = vrcp.f32 %v5119_v48  ;;  %v1352_v46 = vmul.f32 %v3892_v63, %v1351_v50  ;;  %v921_v59 = vmul.f32 %v920_v29, %v5045_v52  ;;  %vm5138_vm3 = vcmp.eq.f32.partialorder %v3009_v22, 8.507059e+37 }
 0x23c   : > { %v1338_v58 = vadd.f32 %v3890_v34, %v1337_v6  ;;  %v737_v10 = vmul.f32 %v3896_v38, %v736_v56  ;;  %v3024_v1 = vand.u32 2147483647, %v5119_v48  ;;  %v928_v20 = vmul.f32 %v5126_v23, %v5099_v28 }
 0x23d   : > { %v3900_v61 = vpop.eup %3899  ;;  %v1353_v3 = vadd.f32 %v3892_v63, %v1352_v46  ;;  %v923_v60 = vsel %vm922_vm12, %v5045_v52, %v921_v59  ;;  %3903 = vrsqrt.f32 %v5155_v53  ;;  %vm3020_vm9 = vweird.f32 %v5119_v48 }
 0x23e   : > { %v3001_v36 = vmul.f32 %v3900_v61, %v5102_v33  ;;  %v1342_v41 = vsel %vm1341_vm15, %v3890_v34, %v1338_v58  ;;  %v738_v5 = vmul.f32 0.5, %v737_v10  ;;  %v926_v55 = vsel %vm924_vm0, %v925_v43, %v923_v60 }
 0x23f   : > { %v1347_v16 = vsel %vm5110_vm13, %v1346_v57, %v1342_v41  ;;  %v1357_v7 = vsel %vm1356_vm11, %v3892_v63, %v1353_v3  ;;  %v1154_v44 = vmul.f32 %v4572_v19, %v926_v55  ;;  %v1155_v9 = vmul.f32 %v4574_v21, %v926_v55 }
 0x240   : > { %v3002_v54 = vsub.f32 1.0, %v3001_v36  ;;  %v1348_v62 = vmul.f32 %v1347_v16, %v359_v4  ;;  %v1362_v8 = vsel %vm5133_vm10, %v1361_v51, %v1357_v7  ;;  %v739_v18 = vsub.f32 1.5, %v738_v5 }
 0x241   : > { %v3902_v12 = vpop.eup %3901  ;;  %vm3006_vm4 = vweird.f32 %v3900_v61  ;;  %v1363_v31 = vmul.f32 %v1362_v8, %v472_v27  ;;  %v5162_v52 = vadd.f32 1e-06, %v1154_v44  ;;  %v5164_v32 = vadd.f32 1e-06, %v1155_v9 }
 0x242   : > { %v3003_v17 = vmul.f32 %v3900_v61, %v3002_v54  ;;  %v3016_v24 = vmul.f32 %v3902_v12, %v5119_v48  ;;  %v3671_v26 = vmul.f32 -1.442695, %v1348_v62  ;;  %v3026_v63 = vand.u32 2147483648, %v5119_v48  ;;  %vm3007_vm5 = vmor %vm3005_vm8, %vm3006_vm4 }
 0x243   : > { %v3672_v13 = vmul.f32 -1.442695, %v1363_v31  ;;  %v740_v49 = vmul.f32 %v3896_v38, %v739_v18  ;;  %v929_v35 = vmul.f32 %v5126_v23, %v928_v20  ;;  %vm3021_vm6 = vweird.f32 %v3902_v12  ;;  %v5179_v33 = vpop.eup %3903 }
 0x244   : > { %v3004_v25 = vadd.f32 %v3900_v61, %v3003_v17  ;;  %v3017_v34 = vsub.f32 1.0, %v3016_v24  ;;  %3905 = vpow2.f32 %v3671_v26  ;;  %vm742_vm1 = vcmp.eq.f32.partialorder %v5067_v15, inf  ;;  %vm3022_vm13 = vmor %vm3020_vm9, %vm3021_vm6 }
 0x245   : > { %3907 = vrcp.f32 %v5162_v52  ;;  %vm744_vm12 = vcmp.eq.f32.partialorder %v5067_v15, 0.0  ;;  %v3027_v42 = vor.u32 1.1754944e-38, %v3026_v63  ;;  %v1823_v45 = vand.u32 2147483647, %v5162_v52  ;;  %v407_v63 = vpop.f32.mrf.mxu2 }
 0x246   : > { %v3008_v2 = vsel %vm3007_vm5, %v3900_v61, %v3004_v25  ;;  %v3018_v37 = vmul.f32 %v3902_v12, %v3017_v34  ;;  %3909 = vrcp.f32 %v5164_v32  ;;  %v741_v47 = vmul.f32 %v740_v49, %v5067_v15 }
 0x247   : > { %v3013_v39 = vsel %vm5138_vm3, %v3012_v14, %v3008_v2  ;;  %3911 = vpow2.f32 %v3672_v13  ;;  %v930_v38 = vmul.f32 0.5, %v929_v35  ;;  %vm3025_vm14 = vcmp.eq.f32.partialorder %v3024_v1, 8.507059e+37 }
 0x248   : > { %v3019_v40 = vadd.f32 %v3902_v12, %v3018_v37  ;;  %3456 = vst [vmem:[%s4623_s15 + $0x120] sm:$0xff] %v3013_v39  ;;  %v1825_v48 = vand.u32 2147483648, %v5162_v52  ;;  %v745_v6 = vand.u32 2147483648, %v5067_v15  ;;  %v1838_v57 = vand.u32 2147483647, %v5164_v32 }
 0x249   : > { %v743_v43 = vsel %vm742_vm1, %v5067_v15, %v741_v47  ;;  %vm1819_vm0 = vweird.f32 %v5162_v52  ;;  %v937_v10 = vand.u32 2147483648, %v5099_v28  ;;  %vm5200_vm7 = vcmp.eq.f32.partialorder %v1823_v45, 8.507059e+37 }
 0x24a   : > { %v3906_v22 = vpop.eup %3905  ;;  %v3023_v11 = vsel %vm3022_vm13, %v3902_v12, %v3019_v40  ;;  %v746_v59 = vsel %vm744_vm12, %v745_v6, %v743_v43  ;;  %vm1834_vm2 = vweird.f32 %v5164_v32  ;;  %v1840_v30 = vand.u32 2147483648, %v5164_v32  ;;  %v520_v40 = vpop.f32.mrf.mxu3 }
 0x24b   : > { %v3908_v50 = vpop.eup %3907  ;;  %v3028_v29 = vsel %vm3025_vm14, %v3027_v42, %v3023_v11  ;;  %v5185_v56 = vadd.f32 1.0, %v3906_v22  ;;  %v931_v51 = vsub.f32 1.5, %v930_v38  ;;  %v748_v1 = vmul.f32 %v5179_v33, %v5155_v53 }
 0x24c   : > { %v5191_v58 = vpop.eup %3909  ;;  %3457 = vst [vmem:[%s4623_s15 + $0x128] sm:$0xff] %v3028_v29  ;;  %v1815_v46 = vmul.f32 %v3908_v50, %v5162_v52  ;;  %v1826_v41 = vor.u32 1.1754944e-38, %v1825_v48  ;;  %vm5212_vm8 = vcmp.eq.f32.partialorder %v1838_v57, 8.507059e+37  ;;  %v1124_v4 = vmul.f32 %v4572_v19, %v746_v59 }
 0x24d   : > { %v3912_v61 = vpop.eup %3911  ;;  %3913 = vrcp.f32 %v5185_v56  ;;  %v1830_v15 = vmul.f32 %v5191_v58, %v5164_v32  ;;  %v1125_v16 = vmul.f32 %v4574_v21, %v746_v59  ;;  %v2559_v60 = vand.u32 2147483647, %v5185_v56 }
 0x24e   : > { %v5206_v36 = vadd.f32 1.0, %v3912_v61  ;;  %v1816_v0 = vsub.f32 1.0, %v1815_v46  ;;  %v2561_v5 = vand.u32 2147483648, %v5185_v56  ;;  %vm1820_vm15 = vweird.f32 %v3908_v50 }
 0x24f   : > { %v1831_v54 = vsub.f32 1.0, %v1830_v15  ;;  %v5221_v62 = vadd.f32 1e-06, %v1124_v4  ;;  %v5223_v7 = vadd.f32 1e-06, %v1125_v16  ;;  %vm934_vm10 = vcmp.eq.f32.partialorder %v5099_v28, inf  ;;  %vm1821_vm5 = vmor %vm1819_vm0, %vm1820_vm15 }
 0x250   : > { %3915 = vrcp.f32 %v5206_v36  ;;  %v1817_v20 = vmul.f32 %v3908_v50, %v1816_v0  ;;  %vm1835_vm3 = vweird.f32 %v5191_v58  ;;  %v1841_v55 = vor.u32 1.1754944e-38, %v1840_v30 }
 0x251   : > { %v932_v12 = vmul.f32 %v5126_v23, %v931_v51  ;;  %v749_v8 = vmul.f32 %v5179_v33, %v748_v1  ;;  %v2574_v9 = vand.u32 2147483647, %v5206_v36  ;;  %v1832_v17 = vmul.f32 %v5191_v58, %v1831_v54  ;;  %vm1836_vm1 = vmor %vm1834_vm2, %vm1835_vm3 }
 0x252   : > { %v1818_v18 = vadd.f32 %v3908_v50, %v1817_v20  ;;  %3917 = vrcp.f32 %v5221_v62  ;;  %vm2555_vm11 = vweird.f32 %v5185_v56  ;;  %vm5234_vm4 = vcmp.eq.f32.partialorder %v2559_v60, 8.507059e+37 }
 0x253   : > { %v3914_v44 = vpop.eup %3913  ;;  %v2576_v23 = vand.u32 2147483648, %v5206_v36  ;;  %vm936_vm6 = vcmp.eq.f32.partialorder %v5099_v28, 0.0  ;;  %v2562_v27 = vor.u32 1.1754944e-38, %v2561_v5  ;;  %v1833_v25 = vadd.f32 %v5191_v58, %v1832_v17  ;;  %v5292_v5 = vpop.xlane.xlu2 %655 }
 0x254   : > { %v2551_v24 = vmul.f32 %v3914_v44, %v5185_v56  ;;  %v1822_v31 = vsel %vm1821_vm5, %v3908_v50, %v1818_v18  ;;  %3919 = vrcp.f32 %v5223_v7  ;;  %vm2570_vm9 = vweird.f32 %v5206_v36 }
 0x255   : > { %v1827_v49 = vsel %vm5200_vm7, %v1826_v41, %v1822_v31  ;;  %v933_v52 = vmul.f32 %v932_v12, %v5099_v28  ;;  %vm5254_vm12 = vcmp.eq.f32.partialorder %v2574_v9, 8.507059e+37  ;;  %v1837_v39 = vsel %vm1836_vm1, %v5191_v58, %v1833_v25 }
 0x256   : > { %v3916_v34 = vpop.eup %3915  ;;  %v2552_v13 = vsub.f32 1.0, %v2551_v24  ;;  %v1828_v37 = vmul.f32 %v1827_v49, %v407_v63  ;;  %vm2556_vm13 = vweird.f32 %v3914_v44  ;;  %v2577_v45 = vor.u32 1.1754944e-38, %v2576_v23  ;;  %v362_v24 = vpop.f32.mrf.mxu0 }
 0x257   : > { %v2566_v35 = vmul.f32 %v3916_v34, %v5206_v36  ;;  %v1842_v47 = vsel %vm5212_vm8, %v1841_v55, %v1837_v39  ;;  %v5261_v48 = vmul.f32 0.5, %v749_v8  ;;  %v1373_v29 = vand.u32 2147483647, %v5221_v62  ;;  %vm2557_vm14 = vmor %vm2555_vm11, %vm2556_vm13 }
 0x258   : > { %v2553_v42 = vmul.f32 %v3914_v44, %v2552_v13  ;;  %v3918_v32 = vpop.eup %3917  ;;  %v1843_v22 = vmul.f32 %v1842_v47, %v520_v40  ;;  %v3703_v11 = vmul.f32 -1.442695, %v1828_v37  ;;  %v935_v57 = vsel %vm934_vm10, %v5099_v28, %v933_v52  ;;  %v475_v13 = vpop.f32.mrf.mxu1 }
 0x259   : > { %v2567_v38 = vsub.f32 1.0, %v2566_v35  ;;  %v1365_v50 = vmul.f32 %v3918_v32, %v5221_v62  ;;  %vm2571_vm0 = vweird.f32 %v3916_v34  ;;  %v1375_v14 = vand.u32 2147483648, %v5221_v62 }
 0x25a   : > { %v2554_v6 = vadd.f32 %v3914_v44, %v2553_v42  ;;  %v3920_v43 = vpop.eup %3919  ;;  %3921 = vpow2.f32 %v3703_v11  ;;  %v3704_v46 = vmul.f32 -1.442695, %v1843_v22  ;;  %v938_v56 = vsel %vm936_vm6, %v937_v10, %v935_v57  ;;  %vm2572_vm7 = vmor %vm2570_vm9, %vm2571_vm0 }
 0x25b   : > { %v2568_v58 = vmul.f32 %v3916_v34, %v2567_v38  ;;  %v1366_v61 = vsub.f32 1.0, %v1365_v50  ;;  %v1380_v30 = vmul.f32 %v3920_v43, %v5223_v7  ;;  %vm1370_vm2 = vweird.f32 %v3918_v32 }
 0x25c   : > { %v2558_v59 = vsel %vm2557_vm14, %v3914_v44, %v2554_v6  ;;  %3923 = vpow2.f32 %v3704_v46  ;;  %v1156_v41 = vmul.f32 %v4572_v19, %v938_v56  ;;  %vm1369_vm8 = vweird.f32 %v5221_v62 }
 0x25d   : > { %v2563_v51 = vsel %vm5234_vm4, %v2562_v27, %v2558_v59  ;;  %v2569_v0 = vadd.f32 %v3916_v34, %v2568_v58  ;;  %v1367_v15 = vmul.f32 %v3918_v32, %v1366_v61  ;;  %v1381_v1 = vsub.f32 1.0, %v1380_v30  ;;  %vm1371_vm10 = vmor %vm1369_vm8, %vm1370_vm2  ;;  %v5343_v30 = vpop.xlane.xlu1 %610 }
 0x25e   : > { %3426 = vst [vmem:[%s4623_s15 + $0x30] sm:$0xff] %v2563_v51  ;;  %vm5283_vm15 = vcmp.eq.f32.partialorder %v1373_v29, 8.507059e+37  ;;  %v1157_v28 = vmul.f32 %v4574_v21, %v938_v56  ;;  %v5290_v60 = vadd.f32 1e-06, %v1156_v41  ;;  %v1376_v54 = vor.u32 1.1754944e-38, %v1375_v14 }
 0x25f   : > { %v2573_v3 = vsel %vm2572_vm7, %v3916_v34, %v2569_v0  ;;  %v1368_v36 = vadd.f32 %v3918_v32, %v1367_v15  ;;  %v1382_v16 = vmul.f32 %v3920_v43, %v1381_v1  ;;  %vm1385_vm3 = vweird.f32 %v3920_v43 }
 0x260   : > { %v2578_v10 = vsel %vm5254_vm12, %v2577_v45, %v2573_v3  ;;  %v3922_v20 = vpop.eup %3921  ;;  %v1388_v62 = vand.u32 2147483647, %v5223_v7  ;;  %v1390_v55 = vand.u32 2147483648, %v5223_v7  ;;  %3925 = vrcp.f32 %v5290_v60 }
 0x261   : > { %3427 = vst [vmem:[%s4623_s15 + $0x38] sm:$0xff] %v2578_v10  ;;  %v5297_v12 = vadd.f32 1.0, %v3922_v20  ;;  %v1372_v8 = vsel %vm1371_vm10, %v3918_v32, %v1368_v36  ;;  %v1383_v44 = vadd.f32 %v3920_v43, %v1382_v16  ;;  %vm1384_vm11 = vweird.f32 %v5223_v7 }
 0x262   : > { %v3924_v9 = vpop.eup %3923  ;;  %v1377_v18 = vsel %vm5283_vm15, %v1376_v54, %v1372_v8  ;;  %3927 = vrsqrt.f32 %v5292_v5  ;;  %vm1386_vm4 = vmor %vm1384_vm11, %vm1385_vm3  ;;  %v5307_v26 = vadd.f32 1e-06, %v1157_v28  ;;  %v751_v23 = vsub.f32 1.5, %v5261_v48 }
 0x263   : > { %v5304_v17 = vadd.f32 1.0, %v3924_v9  ;;  %3929 = vrcp.f32 %v5297_v12  ;;  %v1378_v27 = vmul.f32 %v1377_v18, %v362_v24  ;;  %v1387_v31 = vsel %vm1386_vm4, %v3920_v43, %v1383_v44 }
 0x264   : > { %v1391_v25 = vor.u32 1.1754944e-38, %v1390_v55  ;;  %vm1389_vm5 = vcmp.eq.f32.partialorder %v1388_v62, 8.507059e+37  ;;  %v1853_v7 = vand.u32 2147483647, %v5290_v60  ;;  %v3039_v34 = vand.u32 2147483647, %v5297_v12  ;;  %v410_v55 = vpop.f32.mrf.mxu2 }
 0x265   : > { %3931 = vrcp.f32 %v5304_v17  ;;  %v3673_v63 = vmul.f32 -1.442695, %v1378_v27  ;;  %vm754_vm6 = vcmp.eq.f32.partialorder %v5155_v53, inf  ;;  %v752_v2 = vmul.f32 %v5179_v33, %v751_v23 }
 0x266   : > { %v1392_v49 = vsel %vm1389_vm5, %v1391_v25, %v1387_v31  ;;  %v3926_v52 = vpop.eup %3925  ;;  %3933 = vrcp.f32 %v5307_v26  ;;  %v757_v37 = vand.u32 2147483648, %v5155_v53  ;;  %vm1849_vm9 = vweird.f32 %v5290_v60 }
 0x267   : > { %v1393_v35 = vmul.f32 %v1392_v49, %v475_v13  ;;  %3935 = vpow2.f32 %v3673_v63  ;;  %v1845_v40 = vmul.f32 %v3926_v52, %v5290_v60  ;;  %v1855_v42 = vand.u32 2147483648, %v5290_v60 }
 0x268   : > { %v5317_v39 = vpop.eup %3927  ;;  %vm3035_vm1 = vweird.f32 %v5297_v12  ;;  %v3041_v47 = vand.u32 2147483648, %v5297_v12  ;;  %vm5324_vm12 = vcmp.eq.f32.partialorder %v1853_v7, 8.507059e+37  ;;  %vm5329_vm13 = vcmp.eq.f32.partialorder %v3039_v34, 8.507059e+37 }
 0x269   : > { %v3930_v45 = vpop.eup %3929  ;;  %v3674_v32 = vmul.f32 -1.442695, %v1393_v35  ;;  %vm3050_vm14 = vweird.f32 %v5304_v17  ;;  %v1846_v11 = vsub.f32 1.0, %v1845_v40  ;;  %vm756_vm0 = vcmp.eq.f32.partialorder %v5155_v53, 0.0 }
 0x26a   : > { %v3031_v33 = vmul.f32 %v3930_v45, %v5297_v12  ;;  %v3054_v6 = vand.u32 2147483647, %v5304_v17  ;;  %v753_v50 = vmul.f32 %v752_v2, %v5155_v53  ;;  %v940_v29 = vmul.f32 %v5317_v39, %v5292_v5 }
 0x26b   : > { %v3932_v48 = vpop.eup %3931  ;;  %3937 = vpow2.f32 %v3674_v32  ;;  %v1847_v58 = vmul.f32 %v3926_v52, %v1846_v11  ;;  %vm1850_vm7 = vweird.f32 %v3926_v52  ;;  %vm3036_vm2 = vweird.f32 %v3930_v45 }
 0x26c   : > { %v3032_v57 = vsub.f32 1.0, %v3031_v33  ;;  %v3046_v43 = vmul.f32 %v3932_v48, %v5304_v17  ;;  %v5340_v46 = vpop.eup %3933  ;;  %v3042_v59 = vor.u32 1.1754944e-38, %v3041_v47  ;;  %v3056_v61 = vand.u32 2147483648, %v5304_v17  ;;  %vm5351_vm15 = vmor %vm1849_vm9, %vm1850_vm7  ;;  %v523_v33 = vpop.f32.mrf.mxu3 }
 0x26d   : > { %v1856_v14 = vor.u32 1.1754944e-38, %v1855_v42  ;;  %v3936_v51 = vpop.eup %3935  ;;  %v1848_v15 = vadd.f32 %v3926_v52, %v1847_v58  ;;  %v1860_v1 = vmul.f32 %v5340_v46, %v5307_v26  ;;  %vm3051_vm8 = vweird.f32 %v3932_v48  ;;  %vm3037_vm10 = vmor %vm3035_vm1, %vm3036_vm2 }
 0x26e   : > { %v3033_v0 = vmul.f32 %v3930_v45, %v3032_v57  ;;  %v3047_v56 = vsub.f32 1.0, %v3046_v43  ;;  %v5347_v41 = vadd.f32 1.0, %v3936_v51  ;;  %v755_v4 = vsel %vm754_vm6, %v5155_v53, %v753_v50  ;;  %vm3052_vm3 = vmor %vm3050_vm14, %vm3051_vm8 }
 0x26f   : > { %v941_v28 = vmul.f32 %v5317_v39, %v940_v29  ;;  %v1852_v16 = vsel %vm5351_vm15, %v3926_v52, %v1848_v15  ;;  %3939 = vrsqrt.f32 %v5343_v30  ;;  %v3057_v60 = vor.u32 1.1754944e-38, %v3056_v61 }
 0x270   : > { %v3034_v10 = vadd.f32 %v3930_v45, %v3033_v0  ;;  %v3048_v36 = vmul.f32 %v3932_v48, %v3047_v56  ;;  %3941 = vrcp.f32 %v5347_v41  ;;  %v1861_v54 = vsub.f32 1.0, %v1860_v1 }
 0x271   : > { %v3938_v20 = vpop.eup %3937  ;;  %v1870_v62 = vand.u32 2147483648, %v5307_v26  ;;  %v1857_v18 = vsel %vm5324_vm12, %v1856_v14, %v1852_v16  ;;  %v758_v23 = vsel %vm756_vm0, %v757_v37, %v755_v4  ;;  %v942_v27 = vmul.f32 0.5, %v941_v28 }
 0x272   : > { %v3038_v8 = vsel %vm3037_vm10, %v3930_v45, %v3034_v10  ;;  %v3049_v44 = vadd.f32 %v3932_v48, %v3048_v36  ;;  %v5367_v9 = vadd.f32 1.0, %v3938_v20  ;;  %v1858_v24 = vmul.f32 %v1857_v18, %v410_v55 }
 0x273   : > { %v3043_v12 = vsel %vm5329_vm13, %v3042_v59, %v3038_v8  ;;  %vm3055_vm11 = vcmp.eq.f32.partialorder %v3054_v6, 8.507059e+37  ;;  %v1868_v25 = vand.u32 2147483647, %v5307_v26  ;;  %v1862_v34 = vmul.f32 %v5340_v46, %v1861_v54 }
 0x274   : > { %v3053_v31 = vsel %vm3052_vm3, %v3932_v48, %v3049_v44  ;;  %3458 = vst [vmem:[%s4623_s15 + $0x130] sm:$0xff] %v3043_v12  ;;  %3943 = vrcp.f32 %v5367_v9  ;;  %vm1865_vm4 = vweird.f32 %v5340_v46  ;;  %v3705_v63 = vmul.f32 -1.442695, %v1858_v24 }
 0x275   : > { %v3058_v7 = vsel %vm3055_vm11, %v3057_v60, %v3053_v31  ;;  %v5383_v17 = vpop.eup %3939  ;;  %vm1864_vm5 = vweird.f32 %v5307_v26  ;;  %v1871_v53 = vor.u32 1.1754944e-38, %v1870_v62  ;;  %v1126_v13 = vmul.f32 %v4572_v19, %v758_v23 }
 0x276   : > { %3459 = vst [vmem:[%s4623_s15 + $0x138] sm:$0xff] %v3058_v7  ;;  %v1127_v49 = vmul.f32 %v4574_v21, %v758_v23  ;;  %v3942_v52 = vpop.eup %3941  ;;  %v2589_v35 = vand.u32 2147483647, %v5347_v41  ;;  %v1863_v2 = vadd.f32 %v5340_v46, %v1862_v34  ;;  %3945 = vpow2.f32 %v3705_v63  ;;  %vm1866_vm6 = vmor %vm1864_vm5, %vm1865_vm4 }
 0x277   : > { %v943_v37 = vsub.f32 1.5, %v942_v27  ;;  %v2581_v40 = vmul.f32 %v3942_v52, %v5347_v41  ;;  %v2591_v42 = vand.u32 2147483648, %v5347_v41  ;;  %v5395_v26 = vadd.f32 1e-06, %v1126_v13 }
 0x278   : > { %v5397_v45 = vadd.f32 1e-06, %v1127_v49  ;;  %vm2585_vm9 = vweird.f32 %v5347_v41  ;;  %v1867_v47 = vsel %vm1866_vm6, %v5340_v46, %v1863_v2  ;;  %vm1869_vm1 = vcmp.eq.f32.partialorder %v1868_v25, 8.507059e+37 }
 0x279   : > { %vm946_vm12 = vcmp.eq.f32.partialorder %v5292_v5, inf  ;;  %v949_v32 = vand.u32 2147483648, %v5292_v5  ;;  %v2582_v22 = vsub.f32 1.0, %v2581_v40  ;;  %v2604_v11 = vand.u32 2147483647, %v5367_v9 }
 0x27a   : > { %v3944_v38 = vpop.eup %3943  ;;  %v1872_v48 = vsel %vm1869_vm1, %v1871_v53, %v1867_v47  ;;  %3947 = vrcp.f32 %v5395_v26  ;;  %vm5405_vm13 = vcmp.eq.f32.partialorder %v2589_v35, 8.507059e+37  ;;  %v944_v57 = vmul.f32 %v5317_v39, %v943_v37 }
 0x27b   : > { %v2596_v50 = vmul.f32 %v3944_v38, %v5367_v9  ;;  %v1873_v29 = vmul.f32 %v1872_v48, %v523_v33  ;;  %vm948_vm14 = vcmp.eq.f32.partialorder %v5292_v5, 0.0  ;;  %v2583_v43 = vmul.f32 %v3942_v52, %v2582_v22  ;;  %v365_v33 = vpop.f32.mrf.mxu0 }
 0x27c   : > { %vm2586_vm0 = vweird.f32 %v3942_v52  ;;  %v2592_v58 = vor.u32 1.1754944e-38, %v2591_v42  ;;  %3949 = vrcp.f32 %v5397_v45  ;;  %v3946_v46 = vpop.eup %3945  ;;  %vm2600_vm7 = vweird.f32 %v5367_v9 }
 0x27d   : > { %v2597_v59 = vsub.f32 1.0, %v2596_v50  ;;  %v2606_v61 = vand.u32 2147483648, %v5367_v9  ;;  %v3706_v14 = vmul.f32 -1.442695, %v1873_v29  ;;  %v2584_v51 = vadd.f32 %v3942_v52, %v2583_v43  ;;  %vm2587_vm8 = vmor %vm2585_vm9, %vm2586_vm0  ;;  %v478_v29 = vpop.f32.mrf.mxu1 }
 0x27e   : > { %vm5415_vm2 = vcmp.eq.f32.partialorder %v2604_v11, 8.507059e+37  ;;  %v5419_v39 = vadd.f32 1.0, %v3946_v46  ;;  %v760_v56 = vmul.f32 %v5383_v17, %v5343_v30  ;;  %vm2601_vm15 = vweird.f32 %v3944_v38 }
 0x27f   : > { %v2598_v15 = vmul.f32 %v3944_v38, %v2597_v59  ;;  %3951 = vpow2.f32 %v3706_v14  ;;  %v945_v1 = vmul.f32 %v944_v57, %v5292_v5  ;;  %v2588_v4 = vsel %vm2587_vm8, %v3942_v52, %v2584_v51  ;;  %vm2602_vm10 = vmor %vm2600_vm7, %vm2601_vm15 }
 0x280   : > { %v3948_v3 = vpop.eup %3947  ;;  %3953 = vrcp.f32 %v5419_v39  ;;  %v1403_v28 = vand.u32 2147483647, %v5395_v26  ;;  %v1405_v10 = vand.u32 2147483648, %v5395_v26  ;;  %v2593_v36 = vsel %vm5405_vm13, %v2592_v58, %v2588_v4 }
 0x281   : > { %v2599_v16 = vadd.f32 %v3944_v38, %v2598_v15  ;;  %v2607_v41 = vor.u32 1.1754944e-38, %v2606_v61  ;;  %v1395_v20 = vmul.f32 %v3948_v3, %v5395_v26  ;;  %3428 = vst [vmem:[%s4623_s15 + $0x40] sm:$0xff] %v2593_v36  ;;  %vm1399_vm3 = vweird.f32 %v5395_v26 }
 0x282   : > { %v3950_v60 = vpop.eup %3949  ;;  %v1418_v54 = vand.u32 2147483647, %v5397_v45  ;;  %v947_v62 = vsel %vm946_vm12, %v5292_v5, %v945_v1  ;;  %v761_v55 = vmul.f32 %v5383_v17, %v760_v56  ;;  %vm1414_vm11 = vweird.f32 %v5397_v45 }
 0x283   : > { %v2603_v8 = vsel %vm2602_vm10, %v3944_v38, %v2599_v16  ;;  %v1396_v44 = vsub.f32 1.0, %v1395_v20  ;;  %v1410_v18 = vmul.f32 %v3950_v60, %v5397_v45  ;;  %vm5445_vm4 = vcmp.eq.f32.partialorder %v1403_v28, 8.507059e+37 }
 0x284   : > { %v2608_v9 = vsel %vm5415_vm2, %v2607_v41, %v2603_v8  ;;  %v1406_v24 = vor.u32 1.1754944e-38, %v1405_v10  ;;  %v950_v23 = vsel %vm948_vm14, %v949_v32, %v947_v62  ;;  %vm1400_vm5 = vweird.f32 %v3948_v3  ;;  %v5504_v62 = vpop.xlane.xlu1 %658 }
 0x285   : > { %v3952_v27 = vpop.eup %3951  ;;  %3429 = vst [vmem:[%s4623_s15 + $0x48] sm:$0xff] %v2608_v9  ;;  %v1397_v31 = vmul.f32 %v3948_v3, %v1396_v44  ;;  %v1411_v25 = vsub.f32 1.0, %v1410_v18  ;;  %v1158_v7 = vmul.f32 %v4572_v19, %v950_v23  ;;  %vm5455_vm6 = vcmp.eq.f32.partialorder %v1418_v54, 8.507059e+37  ;;  %vm1401_vm1 = vmor %vm1399_vm3, %vm1400_vm5 }
 0x286   : > { %v3954_v34 = vpop.eup %3953  ;;  %v5453_v63 = vadd.f32 1.0, %v3952_v27  ;;  %v1420_v13 = vand.u32 2147483648, %v5397_v45  ;;  %v1159_v49 = vmul.f32 %v4574_v21, %v950_v23  ;;  %vm1415_vm9 = vweird.f32 %v3950_v60 }
 0x287   : > { %v3061_v5 = vmul.f32 %v3954_v34, %v5419_v39  ;;  %v1398_v52 = vadd.f32 %v3948_v3, %v1397_v31  ;;  %v1412_v35 = vmul.f32 %v3950_v60, %v1411_v25  ;;  %v3069_v2 = vand.u32 2147483647, %v5419_v39  ;;  %vm1416_vm13 = vmor %vm1414_vm11, %vm1415_vm9 }
 0x288   : > { %v3071_v37 = vand.u32 2147483648, %v5419_v39  ;;  %3955 = vrcp.f32 %v5453_v63  ;;  %v762_v40 = vmul.f32 0.5, %v761_v55  ;;  %v5468_v38 = vadd.f32 1e-06, %v1158_v7  ;;  %v5519_v7 = vpop.xlane.xlu2 %613 }
 0x289   : > { %v3062_v42 = vsub.f32 1.0, %v3061_v5  ;;  %v1402_v47 = vsel %vm1401_vm1, %v3948_v3, %v1398_v52  ;;  %v1413_v32 = vadd.f32 %v3950_v60, %v1412_v35  ;;  %vm3066_vm12 = vweird.f32 %v3954_v34 }
 0x28a   : > { %v1407_v22 = vsel %vm5445_vm4, %v1406_v24, %v1402_v47  ;;  %v1421_v11 = vor.u32 1.1754944e-38, %v1420_v13  ;;  %v5474_v48 = vadd.f32 1e-06, %v1159_v49  ;;  %3957 = vrcp.f32 %v5468_v38 }
 0x28b   : > { %v3063_v6 = vmul.f32 %v3954_v34, %v3062_v42  ;;  %v1408_v26 = vmul.f32 %v1407_v22, %v365_v33  ;;  %v1417_v50 = vsel %vm1416_vm13, %v3950_v60, %v1413_v32  ;;  %vm3065_vm14 = vweird.f32 %v5419_v39  ;;  %v413_v32 = vpop.f32.mrf.mxu2 }
 0x28c   : > { %v1422_v57 = vsel %vm5455_vm6, %v1421_v11, %v1417_v50  ;;  %v763_v43 = vsub.f32 1.5, %v762_v40  ;;  %3959 = vrcp.f32 %v5474_v48  ;;  %vm3067_vm0 = vmor %vm3065_vm14, %vm3066_vm12  ;;  %v3072_v61 = vor.u32 1.1754944e-38, %v3071_v37 }
 0x28d   : > { %v3064_v58 = vadd.f32 %v3954_v34, %v3063_v6  ;;  %v3675_v46 = vmul.f32 -1.442695, %v1408_v26  ;;  %v1423_v45 = vmul.f32 %v1422_v57, %v478_v29  ;;  %vm3070_vm7 = vcmp.eq.f32.partialorder %v3069_v2, 8.507059e+37  ;;  %v526_v29 = vpop.f32.mrf.mxu3 }
 0x28e   : > { %v3956_v59 = vpop.eup %3955  ;;  %v3084_v39 = vand.u32 2147483647, %v5453_v63  ;;  %v3086_v56 = vand.u32 2147483648, %v5453_v63  ;;  %v764_v4 = vmul.f32 %v5383_v17, %v763_v43  ;;  %vm766_vm2 = vcmp.eq.f32.partialorder %v5343_v30, inf }
 0x28f   : > { %v3068_v14 = vsel %vm3067_vm0, %v3954_v34, %v3064_v58  ;;  %v3076_v51 = vmul.f32 %v3956_v59, %v5453_v63  ;;  %3961 = vpow2.f32 %v3675_v46  ;;  %v3676_v15 = vmul.f32 -1.442695, %v1423_v45 }
 0x290   : > { %v3073_v0 = vsel %vm3070_vm7, %v3072_v61, %v3068_v14  ;;  %v5485_v1 = vpop.eup %3957  ;;  %vm768_vm8 = vcmp.eq.f32.partialorder %v5343_v30, 0.0  ;;  %v769_v10 = vand.u32 2147483648, %v5343_v30  ;;  %vm3080_vm15 = vweird.f32 %v5453_v63 }
 0x291   : > { %v3077_v3 = vsub.f32 1.0, %v3076_v51  ;;  %3460 = vst [vmem:[%s4623_s15 + $0x140] sm:$0xff] %v3073_v0  ;;  %3963 = vpow2.f32 %v3676_v15  ;;  %v1875_v28 = vmul.f32 %v5485_v1, %v5468_v38  ;;  %vm3081_vm10 = vweird.f32 %v3956_v59 }
 0x292   : > { %v5494_v36 = vpop.eup %3959  ;;  %v765_v41 = vmul.f32 %v764_v4, %v5343_v30  ;;  %vm5498_vm3 = vcmp.eq.f32.partialorder %v3084_v39, 8.507059e+37  ;;  %v3087_v20 = vor.u32 1.1754944e-38, %v3086_v56  ;;  %vm1879_vm11 = vweird.f32 %v5468_v38  ;;  %vm3082_vm4 = vmor %vm3080_vm15, %vm3081_vm10 }
 0x293   : > { %v3078_v16 = vmul.f32 %v3956_v59, %v3077_v3  ;;  %v1876_v60 = vsub.f32 1.0, %v1875_v28  ;;  %v1890_v54 = vmul.f32 %v5494_v36, %v5474_v48  ;;  %v1883_v44 = vand.u32 2147483647, %v5468_v38 }
 0x294   : > { %v767_v18 = vsel %vm766_vm2, %v5343_v30, %v765_v41  ;;  %v1885_v31 = vand.u32 2147483648, %v5468_v38  ;;  %3965 = vrsqrt.f32 %v5504_v62  ;;  %vm1880_vm5 = vweird.f32 %v5485_v1 }
 0x295   : > { %v3962_v55 = vpop.eup %3961  ;;  %v3079_v8 = vadd.f32 %v3956_v59, %v3078_v16  ;;  %v1877_v12 = vmul.f32 %v5485_v1, %v1876_v60  ;;  %v1891_v24 = vsub.f32 1.0, %v1890_v54  ;;  %v770_v23 = vsel %vm768_vm8, %v769_v10, %v767_v18  ;;  %vm1881_vm9 = vmor %vm1879_vm11, %vm1880_vm5 }
 0x296   : > { %v5511_v9 = vadd.f32 1.0, %v3962_v55  ;;  %v1128_v25 = vmul.f32 %v4572_v19, %v770_v23  ;;  %v1129_v30 = vmul.f32 %v4574_v21, %v770_v23  ;;  %v1900_v5 = vand.u32 2147483648, %v5474_v48 }
 0x297   : > { %v3083_v27 = vsel %vm3082_vm4, %v3956_v59, %v3079_v8  ;;  %v3964_v34 = vpop.eup %3963  ;;  %v1878_v13 = vadd.f32 %v5485_v1, %v1877_v12  ;;  %v1892_v49 = vmul.f32 %v5494_v36, %v1891_v24  ;;  %vm1895_vm6 = vweird.f32 %v5494_v36 }
 0x298   : > { %v3088_v63 = vsel %vm5498_vm3, %v3087_v20, %v3083_v27  ;;  %3967 = vrcp.f32 %v5511_v9  ;;  %v5527_v53 = vadd.f32 1.0, %v3964_v34  ;;  %v1898_v52 = vand.u32 2147483647, %v5474_v48 }
 0x299   : > { %3461 = vst [vmem:[%s4623_s15 + $0x148] sm:$0xff] %v3088_v63  ;;  %v5534_v35 = vadd.f32 1e-06, %v1128_v25  ;;  %3969 = vrsqrt.f32 %v5519_v7  ;;  %vm1884_vm1 = vcmp.eq.f32.partialorder %v1883_v44, 8.507059e+37  ;;  %v1886_v2 = vor.u32 1.1754944e-38, %v1885_v31 }
 0x29a   : > { %3971 = vrcp.f32 %v5527_v53  ;;  %vm1894_vm12 = vweird.f32 %v5474_v48  ;;  %v1882_v37 = vsel %vm1881_vm9, %v5485_v1, %v1878_v13  ;;  %v1893_v40 = vadd.f32 %v5494_v36, %v1892_v49  ;;  %v5546_v47 = vpop.eup %3965 }
 0x29b   : > { %3973 = vrcp.f32 %v5534_v35  ;;  %v5544_v42 = vadd.f32 1e-06, %v1129_v30  ;;  %v2619_v33 = vand.u32 2147483647, %v5511_v9  ;;  %v2621_v38 = vand.u32 2147483648, %v5511_v9  ;;  %vm1896_vm13 = vmor %vm1894_vm12, %vm1895_vm6 }
 0x29c   : > { %v1887_v22 = vsel %vm1884_vm1, %v1886_v2, %v1882_v37  ;;  %v1901_v11 = vor.u32 1.1754944e-38, %v1900_v5  ;;  %v1897_v26 = vsel %vm1896_vm13, %v5494_v36, %v1893_v40  ;;  %vm1899_vm14 = vcmp.eq.f32.partialorder %v1898_v52, 8.507059e+37 }
 0x29d   : > { %v1888_v6 = vmul.f32 %v1887_v22, %v413_v32  ;;  %v961_v50 = vand.u32 2147483648, %v5504_v62  ;;  %vm2615_vm0 = vweird.f32 %v5511_v9  ;;  %v2634_v43 = vand.u32 2147483647, %v5527_v53 }
 0x29e   : > { %v3968_v48 = vpop.eup %3967  ;;  %v1902_v58 = vsel %vm1899_vm14, %v1901_v11, %v1897_v26  ;;  %3975 = vrcp.f32 %v5544_v42  ;;  %v952_v61 = vmul.f32 %v5546_v47, %v5504_v62  ;;  %vm5562_vm7 = vcmp.eq.f32.partialorder %v2619_v33, 8.507059e+37  ;;  %v5614_v33 = vpop.xlane.xlu2 %661 }
 0x29f   : > { %v2611_v57 = vmul.f32 %v3968_v48, %v5511_v9  ;;  %v5557_v46 = vpop.eup %3969  ;;  %v1903_v45 = vmul.f32 %v1902_v58, %v526_v29  ;;  %v3707_v59 = vmul.f32 -1.442695, %v1888_v6  ;;  %v2622_v39 = vor.u32 1.1754944e-38, %v2621_v38 }
 0x2a0   : > { %v3972_v14 = vpop.eup %3971  ;;  %vm2630_vm2 = vweird.f32 %v5527_v53  ;;  %v2636_v1 = vand.u32 2147483648, %v5527_v53  ;;  %vm2616_vm8 = vweird.f32 %v3968_v48  ;;  %vm5571_vm15 = vcmp.eq.f32.partialorder %v2634_v43, 8.507059e+37 }
 0x2a1   : > { %v2612_v51 = vsub.f32 1.0, %v2611_v57  ;;  %v5567_v56 = vpop.eup %3973  ;;  %v2626_v15 = vmul.f32 %v3972_v14, %v5527_v53  ;;  %3977 = vpow2.f32 %v3707_v59  ;;  %v3708_v3 = vmul.f32 -1.442695, %v1903_v45  ;;  %vm2617_vm3 = vmor %vm2615_vm0, %vm2616_vm8 }
 0x2a2   : > { %v1425_v10 = vmul.f32 %v5567_v56, %v5534_v35  ;;  %vm1429_vm10 = vweird.f32 %v5534_v35  ;;  %v953_v16 = vmul.f32 %v5546_v47, %v952_v61  ;;  %v1433_v20 = vand.u32 2147483647, %v5534_v35 }
 0x2a3   : > { %v2613_v4 = vmul.f32 %v3968_v48, %v2612_v51  ;;  %v2627_v36 = vsub.f32 1.0, %v2626_v15  ;;  %3979 = vpow2.f32 %v3708_v3  ;;  %v772_v60 = vmul.f32 %v5557_v46, %v5519_v7  ;;  %v481_v51 = vpop.f32.mrf.mxu1 }
 0x2a4   : > { %v1426_v17 = vsub.f32 1.0, %v1425_v10  ;;  %v5582_v54 = vpop.eup %3975  ;;  %vm2631_vm11 = vweird.f32 %v3972_v14  ;;  %v1435_v8 = vand.u32 2147483648, %v5534_v35  ;;  %v954_v44 = vmul.f32 0.5, %v953_v16 }
 0x2a5   : > { %v2614_v41 = vadd.f32 %v3968_v48, %v2613_v4  ;;  %v2628_v55 = vmul.f32 %v3972_v14, %v2627_v36  ;;  %vm1430_vm4 = vweird.f32 %v5567_v56  ;;  %v1440_v24 = vmul.f32 %v5582_v54, %v5544_v42  ;;  %vm2632_vm6 = vmor %vm2630_vm2, %vm2631_vm11 }
 0x2a6   : > { %v1427_v12 = vmul.f32 %v5567_v56, %v1426_v17  ;;  %v955_v31 = vsub.f32 1.5, %v954_v44  ;;  %vm958_vm5 = vcmp.eq.f32.partialorder %v5504_v62, inf  ;;  %v773_v25 = vmul.f32 %v5557_v46, %v772_v60  ;;  %vm1431_vm1 = vmor %vm1429_vm10, %vm1430_vm4 }
 0x2a7   : > { %v2618_v18 = vsel %vm2617_vm3, %v3968_v48, %v2614_v41  ;;  %v3978_v23 = vpop.eup %3977  ;;  %v2629_v9 = vadd.f32 %v3972_v14, %v2628_v55  ;;  %v2637_v34 = vor.u32 1.1754944e-38, %v2636_v1  ;;  %v1441_v13 = vsub.f32 1.0, %v1440_v24  ;;  %v5623_v48 = vpop.xlane.xlu1 %616 }
 0x2a8   : > { %v2623_v27 = vsel %vm5562_vm7, %v2622_v39, %v2618_v18  ;;  %v5598_v63 = vadd.f32 1.0, %v3978_v23  ;;  %v1428_v30 = vadd.f32 %v5567_v56, %v1427_v12  ;;  %vm960_vm9 = vcmp.eq.f32.partialorder %v5504_v62, 0.0 }
 0x2a9   : > { %3430 = vst [vmem:[%s4623_s15 + $0x50] sm:$0xff] %v2623_v27  ;;  %v3980_v49 = vpop.eup %3979  ;;  %v2633_v5 = vsel %vm2632_vm6, %v3972_v14, %v2629_v9  ;;  %v1436_v52 = vor.u32 1.1754944e-38, %v1435_v8  ;;  %v1448_v2 = vand.u32 2147483647, %v5544_v42  ;;  %v1450_v37 = vand.u32 2147483648, %v5544_v42 }
 0x2aa   : > { %v2638_v53 = vsel %vm5571_vm15, %v2637_v34, %v2633_v5  ;;  %v5606_v40 = vadd.f32 1.0, %v3980_v49  ;;  %3981 = vrcp.f32 %v5598_v63  ;;  %v956_v32 = vmul.f32 %v5546_v47, %v955_v31  ;;  %v368_v47 = vpop.f32.mrf.mxu0 }
 0x2ab   : > { %3431 = vst [vmem:[%s4623_s15 + $0x58] sm:$0xff] %v2638_v53  ;;  %v1432_v38 = vsel %vm1431_vm1, %v5567_v56, %v1428_v30  ;;  %v1442_v22 = vmul.f32 %v5582_v54, %v1441_v13  ;;  %vm1445_vm12 = vweird.f32 %v5582_v54  ;;  %v774_v11 = vmul.f32 0.5, %v773_v25 }
 0x2ac   : > { %3983 = vrcp.f32 %v5606_v40  ;;  %vm1434_vm13 = vcmp.eq.f32.partialorder %v1433_v20, 8.507059e+37  ;;  %vm1444_vm14 = vweird.f32 %v5544_v42  ;;  %v781_v35 = vand.u32 2147483648, %v5519_v7 }
 0x2ad   : > { %v1437_v6 = vsel %vm1434_vm13, %v1436_v52, %v1432_v38  ;;  %v1443_v26 = vadd.f32 %v5582_v54, %v1442_v22  ;;  %vm1449_vm0 = vcmp.eq.f32.partialorder %v1448_v2, 8.507059e+37  ;;  %3985 = vrsqrt.f32 %v5614_v33  ;;  %vm1446_vm7 = vmor %vm1444_vm14, %vm1445_vm12 }
 0x2ae   : > { %v1438_v29 = vmul.f32 %v1437_v6, %v368_v47  ;;  %v1451_v57 = vor.u32 1.1754944e-38, %v1450_v37  ;;  %v957_v43 = vmul.f32 %v956_v32, %v5504_v62  ;;  %v973_v58 = vand.u32 2147483648, %v5614_v33 }
 0x2af   : > { %vm3095_vm2 = vweird.f32 %v5598_v63  ;;  %v1447_v42 = vsel %vm1446_vm7, %v5582_v54, %v1443_v26  ;;  %v775_v45 = vsub.f32 1.5, %v774_v11  ;;  %3987 = vrsqrt.f32 %v5623_v48 }
 0x2b0   : > { %v3982_v59 = vpop.eup %3981  ;;  %v3099_v61 = vand.u32 2147483647, %v5598_v63  ;;  %v3677_v14 = vmul.f32 -1.442695, %v1438_v29  ;;  %v1452_v0 = vsel %vm1449_vm0, %v1451_v57, %v1447_v42  ;;  %v959_v39 = vsel %vm958_vm5, %v5504_v62, %v957_v43 }
 0x2b1   : > { %vm778_vm8 = vcmp.eq.f32.partialorder %v5519_v7, inf  ;;  %v3091_v56 = vmul.f32 %v3982_v59, %v5598_v63  ;;  %v3101_v15 = vand.u32 2147483648, %v5598_v63  ;;  %v1453_v1 = vmul.f32 %v1452_v0, %v481_v51 }
 0x2b2   : > { %v962_v3 = vsel %vm960_vm9, %v961_v50, %v959_v39  ;;  %vm780_vm15 = vcmp.eq.f32.partialorder %v5519_v7, 0.0  ;;  %v3984_v4 = vpop.eup %3983  ;;  %3989 = vpow2.f32 %v3677_v14  ;;  %v776_v36 = vmul.f32 %v5557_v46, %v775_v45 }
 0x2b3   : > { %v1160_v28 = vmul.f32 %v4572_v19, %v962_v3  ;;  %v1161_v10 = vmul.f32 %v4574_v21, %v962_v3  ;;  %v5647_v16 = vpop.eup %3985  ;;  %v3092_v41 = vsub.f32 1.0, %v3091_v56  ;;  %v3106_v17 = vmul.f32 %v3984_v4, %v5606_v40 }
 0x2b4   : > { %v3114_v20 = vand.u32 2147483647, %v5606_v40  ;;  %v3678_v60 = vmul.f32 -1.442695, %v1453_v1  ;;  %vm3096_vm10 = vweird.f32 %v3982_v59  ;;  %v3116_v62 = vand.u32 2147483648, %v5606_v40 }
 0x2b5   : > { %v5652_v50 = vadd.f32 1e-06, %v1160_v28  ;;  %v5654_v54 = vadd.f32 1e-06, %v1161_v10  ;;  %v5656_v55 = vpop.eup %3987  ;;  %v3093_v8 = vmul.f32 %v3982_v59, %v3092_v41  ;;  %v3107_v44 = vsub.f32 1.0, %v3106_v17  ;;  %vm3097_vm5 = vmor %vm3095_vm2, %vm3096_vm10 }
 0x2b6   : > { %3991 = vpow2.f32 %v3678_v60  ;;  %v777_v46 = vmul.f32 %v776_v36, %v5519_v7  ;;  %vm5659_vm3 = vcmp.eq.f32.partialorder %v3099_v61, 8.507059e+37  ;;  %vm3110_vm11 = vweird.f32 %v5606_v40 }
 0x2b7   : > { %3993 = vrcp.f32 %v5652_v50  ;;  %v964_v12 = vmul.f32 %v5647_v16, %v5614_v33  ;;  %v3094_v24 = vadd.f32 %v3982_v59, %v3093_v8  ;;  %v3108_v23 = vmul.f32 %v3984_v4, %v3107_v44 }
 0x2b8   : > { %vm3111_vm4 = vweird.f32 %v3984_v4  ;;  %3995 = vrcp.f32 %v5654_v54  ;;  %v3990_v27 = vpop.eup %3989  ;;  %v3102_v9 = vor.u32 1.1754944e-38, %v3101_v15  ;;  %vm5671_vm6 = vcmp.eq.f32.partialorder %v3114_v20, 8.507059e+37 }
 0x2b9   : > { %v3117_v25 = vor.u32 1.1754944e-38, %v3116_v62  ;;  %v784_v34 = vmul.f32 %v5656_v55, %v5623_v48  ;;  %v3098_v30 = vsel %vm3097_vm5, %v3982_v59, %v3094_v24  ;;  %v3109_v13 = vadd.f32 %v3984_v4, %v3108_v23  ;;  %vm3112_vm9 = vmor %vm3110_vm11, %vm3111_vm4 }
 0x2ba   : > { %v5677_v49 = vadd.f32 1.0, %v3990_v27  ;;  %v779_v5 = vsel %vm778_vm8, %v5519_v7, %v777_v46  ;;  %v3103_v63 = vsel %vm5659_vm3, %v3102_v9, %v3098_v30  ;;  %v1913_v52 = vand.u32 2147483647, %v5652_v50  ;;  %v529_v30 = vpop.f32.mrf.mxu3 }
 0x2bb   : > { %v782_v2 = vsel %vm780_vm15, %v781_v35, %v779_v5  ;;  %v965_v37 = vmul.f32 %v5647_v16, %v964_v12  ;;  %v3113_v32 = vsel %vm3112_vm9, %v3984_v4, %v3109_v13  ;;  %3462 = vst [vmem:[%s4623_s15 + $0x150] sm:$0xff] %v3103_v63  ;;  %v1915_v38 = vand.u32 2147483648, %v5652_v50  ;;  %v416_v12 = vpop.f32.mrf.mxu2 }
 0x2bc   : > { %v3992_v53 = vpop.eup %3991  ;;  %3997 = vrcp.f32 %v5677_v49  ;;  %v1928_v40 = vand.u32 2147483647, %v5654_v54  ;;  %v3118_v11 = vsel %vm5671_vm6, %v3117_v25, %v3113_v32  ;;  %v1930_v7 = vand.u32 2147483648, %v5654_v54 }
 0x2bd   : > { %v3994_v22 = vpop.eup %3993  ;;  %v5698_v47 = vadd.f32 1.0, %v3992_v53  ;;  %v1130_v35 = vmul.f32 %v4572_v19, %v782_v2  ;;  %3463 = vst [vmem:[%s4623_s15 + $0x158] sm:$0xff] %v3118_v11  ;;  %vm1909_vm1 = vweird.f32 %v5652_v50  ;;  %v1131_v29 = vmul.f32 %v4574_v21, %v782_v2 }
 0x2be   : > { %v3996_v6 = vpop.eup %3995  ;;  %v1905_v26 = vmul.f32 %v3994_v22, %v5652_v50  ;;  %v785_v57 = vmul.f32 %v5656_v55, %v784_v34  ;;  %v2649_v43 = vand.u32 2147483647, %v5677_v49  ;;  %vm5709_vm12 = vcmp.eq.f32.partialorder %v1913_v52, 8.507059e+37 }
 0x2bf   : > { %3999 = vrcp.f32 %v5698_v47  ;;  %vm1924_vm13 = vweird.f32 %v5654_v54  ;;  %v2651_v45 = vand.u32 2147483648, %v5677_v49  ;;  %v1916_v61 = vor.u32 1.1754944e-38, %v1915_v38 }
 0x2c0   : > { %v1906_v59 = vsub.f32 1.0, %v1905_v26  ;;  %v1920_v14 = vmul.f32 %v3996_v6, %v5654_v54  ;;  %vm5716_vm14 = vcmp.eq.f32.partialorder %v1928_v40, 8.507059e+37  ;;  %v1931_v0 = vor.u32 1.1754944e-38, %v1930_v7 }
 0x2c1   : > { %v5720_v39 = vadd.f32 1e-06, %v1130_v35  ;;  %v5722_v56 = vadd.f32 1e-06, %v1131_v29  ;;  %vm2645_vm0 = vweird.f32 %v5677_v49  ;;  %vm1910_vm7 = vweird.f32 %v3994_v22 }
 0x2c2   : > { %v3998_v15 = vpop.eup %3997  ;;  %v1907_v1 = vmul.f32 %v3994_v22, %v1906_v59  ;;  %v1921_v3 = vsub.f32 1.0, %v1920_v14  ;;  %vm5726_vm2 = vcmp.eq.f32.partialorder %v2649_v43, 8.507059e+37  ;;  %v2664_v10 = vand.u32 2147483647, %v5698_v47  ;;  %vm1911_vm10 = vmor %vm1909_vm1, %vm1910_vm7 }
 0x2c3   : > { %v2641_v4 = vmul.f32 %v3998_v15, %v5677_v49  ;;  %4001 = vrcp.f32 %v5720_v39  ;;  %v2652_v36 = vor.u32 1.1754944e-38, %v2651_v45  ;;  %vm1925_vm8 = vweird.f32 %v3996_v6 }
 0x2c4   : > { %v1908_v41 = vadd.f32 %v3994_v22, %v1907_v1  ;;  %v1922_v17 = vmul.f32 %v3996_v6, %v1921_v3  ;;  %vm2660_vm15 = vweird.f32 %v5698_v47  ;;  %4003 = vrcp.f32 %v5722_v56  ;;  %vm1926_vm5 = vmor %vm1924_vm13, %vm1925_vm8 }
 0x2c5   : > { %v4000_v20 = vpop.eup %3999  ;;  %v2642_v60 = vsub.f32 1.0, %v2641_v4  ;;  %v966_v62 = vmul.f32 0.5, %v965_v37  ;;  %v2666_v44 = vand.u32 2147483648, %v5698_v47  ;;  %vm970_vm3 = vcmp.eq.f32.partialorder %v5614_v33, inf }
 0x2c6   : > { %v2656_v8 = vmul.f32 %v4000_v20, %v5698_v47  ;;  %v1912_v46 = vsel %vm1911_vm10, %v3994_v22, %v1908_v41  ;;  %v1923_v18 = vadd.f32 %v3996_v6, %v1922_v17  ;;  %vm2646_vm11 = vweird.f32 %v3998_v15 }
 0x2c7   : > { %v2643_v24 = vmul.f32 %v3998_v15, %v2642_v60  ;;  %vm5739_vm4 = vcmp.eq.f32.partialorder %v2664_v10, 8.507059e+37  ;;  %v1917_v50 = vsel %vm5709_vm12, %v1916_v61, %v1912_v46  ;;  %vm972_vm6 = vcmp.eq.f32.partialorder %v5614_v33, 0.0  ;;  %vm2647_vm1 = vmor %vm2645_vm0, %vm2646_vm11  ;;  %v371_v60 = vpop.f32.mrf.mxu0  ;;  %v5806_v46 = vpop.xlane.xlu1 %664 }
 0x2c8   : > { %v2657_v27 = vsub.f32 1.0, %v2656_v8  ;;  %v1918_v9 = vmul.f32 %v1917_v50, %v416_v12  ;;  %v1927_v31 = vsel %vm1926_vm5, %v3996_v6, %v1923_v18  ;;  %v786_v25 = vmul.f32 0.5, %v785_v57 }
 0x2c9   : > { %v4002_v34 = vpop.eup %4001  ;;  %v2644_v13 = vadd.f32 %v3998_v15, %v2643_v24  ;;  %vm2661_vm9 = vweird.f32 %v4000_v20  ;;  %v1932_v5 = vsel %vm5716_vm14, %v1931_v0, %v1927_v31  ;;  %v967_v63 = vsub.f32 1.5, %v966_v62  ;;  %v484_v24 = vpop.f32.mrf.mxu1 }
 0x2ca   : > { %v2658_v54 = vmul.f32 %v4000_v20, %v2657_v27  ;;  %v1933_v52 = vmul.f32 %v1932_v5, %v529_v30  ;;  %v3709_v2 = vmul.f32 -1.442695, %v1918_v9  ;;  %v1455_v37 = vmul.f32 %v4002_v34, %v5720_v39  ;;  %v5755_v53 = vpop.eup %4003  ;;  %vm2662_vm12 = vmor %vm2660_vm15, %vm2661_vm9  ;;  %v5817_v31 = vpop.xlane.xlu2 %619 }
 0x2cb   : > { %v2648_v32 = vsel %vm2647_vm1, %v3998_v15, %v2644_v13  ;;  %v2667_v38 = vor.u32 1.1754944e-38, %v2666_v44  ;;  %v1463_v40 = vand.u32 2147483647, %v5720_v39  ;;  %v968_v22 = vmul.f32 %v5647_v16, %v967_v63 }
 0x2cc   : > { %v2653_v11 = vsel %vm5726_vm2, %v2652_v36, %v2648_v32  ;;  %v2659_v7 = vadd.f32 %v4000_v20, %v2658_v54  ;;  %4005 = vpow2.f32 %v3709_v2  ;;  %v3710_v49 = vmul.f32 -1.442695, %v1933_v52 }
 0x2cd   : > { %3432 = vst [vmem:[%s4623_s15 + $0x60] sm:$0xff] %v2653_v11  ;;  %v1456_v35 = vsub.f32 1.0, %v1455_v37  ;;  %v1465_v6 = vand.u32 2147483648, %v5720_v39  ;;  %v1470_v26 = vmul.f32 %v5755_v53, %v5722_v56  ;;  %v969_v16 = vmul.f32 %v968_v22, %v5614_v33 }
 0x2ce   : > { %v2663_v29 = vsel %vm2662_vm12, %v4000_v20, %v2659_v7  ;;  %4007 = vpow2.f32 %v3710_v49  ;;  %vm1460_vm13 = vweird.f32 %v4002_v34  ;;  %v787_v57 = vsub.f32 1.5, %v786_v25 }
 0x2cf   : > { %v2668_v43 = vsel %vm5739_vm4, %v2667_v38, %v2663_v29  ;;  %v1457_v42 = vmul.f32 %v4002_v34, %v1456_v35  ;;  %v1471_v45 = vsub.f32 1.0, %v1470_v26  ;;  %v971_v47 = vsel %vm970_vm3, %v5614_v33, %v969_v16 }
 0x2d0   : > { %3433 = vst [vmem:[%s4623_s15 + $0x68] sm:$0xff] %v2668_v43  ;;  %vm1459_vm14 = vweird.f32 %v5720_v39  ;;  %vm5776_vm0 = vcmp.eq.f32.partialorder %v1463_v40, 8.507059e+37  ;;  %v1478_v61 = vand.u32 2147483647, %v5722_v56  ;;  %v974_v14 = vsel %vm972_vm6, %v973_v58, %v971_v47 }
 0x2d1   : > { %v1458_v51 = vadd.f32 %v4002_v34, %v1457_v42  ;;  %v1472_v0 = vmul.f32 %v5755_v53, %v1471_v45  ;;  %v1480_v15 = vand.u32 2147483648, %v5722_v56  ;;  %v1162_v1 = vmul.f32 %v4572_v19, %v974_v14  ;;  %vm1461_vm7 = vmor %vm1459_vm14, %vm1460_vm13 }
 0x2d2   : > { %v4006_v3 = vpop.eup %4005  ;;  %v1466_v39 = vor.u32 1.1754944e-38, %v1465_v6  ;;  %vm1475_vm2 = vweird.f32 %v5755_v53  ;;  %v1163_v4 = vmul.f32 %v4574_v21, %v974_v14  ;;  %v788_v28 = vmul.f32 %v5656_v55, %v787_v57 }
 0x2d3   : > { %v5792_v10 = vadd.f32 1.0, %v4006_v3  ;;  %v1462_v33 = vsel %vm1461_vm7, %v4002_v34, %v1458_v51  ;;  %v1473_v58 = vadd.f32 %v5755_v53, %v1472_v0  ;;  %v5795_v36 = vadd.f32 1e-06, %v1162_v1 }
 0x2d4   : > { %v4008_v41 = vpop.eup %4007  ;;  %v1467_v17 = vsel %vm5776_vm0, %v1466_v39, %v1462_v33  ;;  %vm1474_vm8 = vweird.f32 %v5722_v56  ;;  %v1481_v55 = vor.u32 1.1754944e-38, %v1480_v15  ;;  %v789_v44 = vmul.f32 %v788_v28, %v5623_v48 }
 0x2d5   : > { %v5800_v20 = vadd.f32 1.0, %v4008_v41  ;;  %4009 = vrcp.f32 %v5792_v10  ;;  %vm1476_vm15 = vmor %vm1474_vm8, %vm1475_vm2  ;;  %v1468_v62 = vmul.f32 %v1467_v17, %v371_v60  ;;  %vm1479_vm10 = vcmp.eq.f32.partialorder %v1478_v61, 8.507059e+37 }
 0x2d6   : > { %v1477_v8 = vsel %vm1476_vm15, %v5755_v53, %v1473_v58  ;;  %4011 = vrcp.f32 %v5795_v36  ;;  %v5809_v56 = vadd.f32 1e-06, %v1163_v4  ;;  %vm790_vm3 = vcmp.eq.f32.partialorder %v5623_v48, inf }
 0x2d7   : > { %4013 = vrcp.f32 %v5800_v20  ;;  %v3129_v18 = vand.u32 2147483647, %v5792_v10  ;;  %v3679_v12 = vmul.f32 -1.442695, %v1468_v62  ;;  %v1482_v23 = vsel %vm1479_vm10, %v1481_v55, %v1477_v8 }
 0x2d8   : > { %vm792_vm11 = vcmp.eq.f32.partialorder %v5623_v48, 0.0  ;;  %v3131_v50 = vand.u32 2147483648, %v5792_v10  ;;  %v1483_v27 = vmul.f32 %v1482_v23, %v484_v24  ;;  %v793_v9 = vand.u32 2147483648, %v5623_v48 }
 0x2d9   : > { %4015 = vrsqrt.f32 %v5806_v46  ;;  %v3144_v25 = vand.u32 2147483647, %v5800_v20  ;;  %v791_v34 = vsel %vm790_vm3, %v5623_v48, %v789_v44  ;;  %v985_v30 = vand.u32 2147483648, %v5806_v46 }
 0x2da   : > { %4017 = vpow2.f32 %v3679_v12  ;;  %v3146_v5 = vand.u32 2147483648, %v5800_v20  ;;  %v3680_v63 = vmul.f32 -1.442695, %v1483_v27  ;;  %v1943_v54 = vand.u32 2147483647, %v5795_v36 }
 0x2db   : > { %v4010_v13 = vpop.eup %4009  ;;  %4019 = vrcp.f32 %v5809_v56  ;;  %vm3125_vm4 = vweird.f32 %v5792_v10  ;;  %vm5829_vm5 = vcmp.eq.f32.partialorder %v3129_v18, 8.507059e+37  ;;  %v3132_v32 = vor.u32 1.1754944e-38, %v3131_v50  ;;  %v419_v18 = vpop.f32.mrf.mxu2 }
 0x2dc   : > { %v5825_v52 = vpop.eup %4011  ;;  %v3121_v2 = vmul.f32 %v4010_v13, %v5792_v10  ;;  %4021 = vrsqrt.f32 %v5817_v31  ;;  %vm3140_vm6 = vweird.f32 %v5800_v20  ;;  %vm5838_vm9 = vcmp.eq.f32.partialorder %v3144_v25, 8.507059e+37 }
 0x2dd   : > { %v4014_v53 = vpop.eup %4013  ;;  %4023 = vpow2.f32 %v3680_v63  ;;  %v1935_v38 = vmul.f32 %v5825_v52, %v5795_v36  ;;  %vm1939_vm1 = vweird.f32 %v5795_v36  ;;  %v3147_v49 = vor.u32 1.1754944e-38, %v3146_v5 }
 0x2de   : > { %v3122_v40 = vsub.f32 1.0, %v3121_v2  ;;  %v3136_v22 = vmul.f32 %v4014_v53, %v5800_v20  ;;  %vm5845_vm12 = vcmp.eq.f32.partialorder %v1943_v54, 8.507059e+37  ;;  %v1945_v26 = vand.u32 2147483648, %v5795_v36 }
 0x2df   : > { %v5843_v7 = vpop.eup %4015  ;;  %v1936_v35 = vsub.f32 1.0, %v1935_v38  ;;  %vm3126_vm13 = vweird.f32 %v4010_v13  ;;  %v794_v43 = vsel %vm792_vm11, %v793_v9, %v791_v34  ;;  %vm3141_vm14 = vweird.f32 %v4014_v53 }
 0x2e0   : > { %v4018_v16 = vpop.eup %4017  ;;  %v3123_v29 = vmul.f32 %v4010_v13, %v3122_v40  ;;  %v3137_v57 = vsub.f32 1.0, %v3136_v22  ;;  %vm1954_vm0 = vweird.f32 %v5809_v56  ;;  %v1958_v59 = vand.u32 2147483647, %v5809_v56  ;;  %vm3127_vm7 = vmor %vm3125_vm4, %vm3126_vm13 }
 0x2e1   : > { %v4020_v42 = vpop.eup %4019  ;;  %v5852_v45 = vadd.f32 1.0, %v4018_v16  ;;  %v1937_v47 = vmul.f32 %v5825_v52, %v1936_v35  ;;  %v976_v48 = vmul.f32 %v5843_v7, %v5806_v46  ;;  %vm1940_vm2 = vweird.f32 %v5825_v52  ;;  %vm3142_vm8 = vmor %vm3140_vm6, %vm3141_vm14 }
 0x2e2   : > { %v5857_v61 = vpop.eup %4021  ;;  %v3124_v14 = vadd.f32 %v4010_v13, %v3123_v29  ;;  %v3138_v51 = vmul.f32 %v4014_v53, %v3137_v57  ;;  %v1950_v0 = vmul.f32 %v4020_v42, %v5809_v56  ;;  %v1132_v1 = vmul.f32 %v4572_v19, %v794_v43  ;;  %vm1941_vm15 = vmor %vm1939_vm1, %vm1940_vm2 }
 0x2e3   : > { %v4024_v15 = vpop.eup %4023  ;;  %4025 = vrcp.f32 %v5852_v45  ;;  %v1133_v3 = vmul.f32 %v4574_v21, %v794_v43  ;;  %v1938_v33 = vadd.f32 %v5825_v52, %v1937_v47  ;;  %v1960_v41 = vand.u32 2147483648, %v5809_v56 }
 0x2e4   : > { %v3128_v39 = vsel %vm3127_vm7, %v4010_v13, %v3124_v14  ;;  %v3139_v4 = vadd.f32 %v4014_v53, %v3138_v51  ;;  %v5869_v28 = vadd.f32 1.0, %v4024_v15  ;;  %v1951_v10 = vsub.f32 1.0, %v1950_v0 }
 0x2e5   : > { %v3133_v58 = vsel %vm5829_vm5, %v3132_v32, %v3128_v39  ;;  %v796_v17 = vmul.f32 %v5857_v61, %v5817_v31  ;;  %v1946_v55 = vor.u32 1.1754944e-38, %v1945_v26  ;;  %v977_v20 = vmul.f32 %v5843_v7, %v976_v48  ;;  %v532_v32 = vpop.f32.mrf.mxu3 }
 0x2e6   : > { %v3143_v60 = vsel %vm3142_vm8, %v4014_v53, %v3139_v4  ;;  %3464 = vst [vmem:[%s4623_s15 + $0x160] sm:$0xff] %v3133_v58  ;;  %4027 = vrcp.f32 %v5869_v28  ;;  %v1942_v8 = vsel %vm1941_vm15, %v5825_v52, %v1938_v33  ;;  %v1952_v44 = vmul.f32 %v4020_v42, %v1951_v10 }
 0x2e7   : > { %v3148_v62 = vsel %vm5838_vm9, %v3147_v49, %v3143_v60  ;;  %vm1955_vm10 = vweird.f32 %v4020_v42  ;;  %v1947_v12 = vsel %vm5845_vm12, %v1946_v55, %v1942_v8  ;;  %vm5893_vm3 = vcmp.eq.f32.partialorder %v1958_v59, 8.507059e+37 }
 0x2e8   : > { %3465 = vst [vmem:[%s4623_s15 + $0x168] sm:$0xff] %v3148_v62  ;;  %v5897_v36 = vadd.f32 1e-06, %v1132_v1  ;;  %v5899_v23 = vadd.f32 1e-06, %v1133_v3  ;;  %v1948_v27 = vmul.f32 %v1947_v12, %v419_v18  ;;  %v1953_v9 = vadd.f32 %v4020_v42, %v1952_v44  ;;  %vm1956_vm11 = vmor %vm1954_vm0, %vm1955_vm10 }
 0x2e9   : > { %v4026_v50 = vpop.eup %4025  ;;  %v1961_v25 = vor.u32 1.1754944e-38, %v1960_v41  ;;  %v797_v34 = vmul.f32 %v5857_v61, %v796_v17  ;;  %v2679_v5 = vand.u32 2147483647, %v5852_v45  ;;  %v2681_v63 = vand.u32 2147483648, %v5852_v45 }
 0x2ea   : > { %v2671_v13 = vmul.f32 %v4026_v50, %v5852_v45  ;;  %4029 = vrcp.f32 %v5897_v36  ;;  %v2694_v54 = vand.u32 2147483647, %v5869_v28  ;;  %v1957_v52 = vsel %vm1956_vm11, %v4020_v42, %v1953_v9 }
 0x2eb   : > { %v3711_v2 = vmul.f32 -1.442695, %v1948_v27  ;;  %v978_v37 = vmul.f32 0.5, %v977_v20  ;;  %v2696_v40 = vand.u32 2147483648, %v5869_v28  ;;  %v1962_v22 = vsel %vm5893_vm3, %v1961_v25, %v1957_v52 }
 0x2ec   : > { %v4028_v53 = vpop.eup %4027  ;;  %v2672_v38 = vsub.f32 1.0, %v2671_v13  ;;  %4031 = vrcp.f32 %v5899_v23  ;;  %vm2675_vm4 = vweird.f32 %v5852_v45  ;;  %v1963_v11 = vmul.f32 %v1962_v22, %v532_v32 }
 0x2ed   : > { %v2686_v56 = vmul.f32 %v4028_v53, %v5869_v28  ;;  %4033 = vpow2.f32 %v3711_v2  ;;  %vm2676_vm5 = vweird.f32 %v4026_v50  ;;  %vm5916_vm6 = vcmp.eq.f32.partialorder %v2679_v5, 8.507059e+37  ;;  %v374_v5 = vpop.f32.mrf.mxu0  ;;  %v487_v2 = vpop.f32.mrf.mxu1 }
 0x2ee   : > { %v2673_v49 = vmul.f32 %v4026_v50, %v2672_v38  ;;  %v2682_v6 = vor.u32 1.1754944e-38, %v2681_v63  ;;  %vm982_vm9 = vcmp.eq.f32.partialorder %v5806_v46, inf  ;;  %vm2690_vm1 = vweird.f32 %v5869_v28  ;;  %vm2677_vm0 = vmor %vm2675_vm4, %vm2676_vm5 }
 0x2ef   : > { %v2687_v26 = vsub.f32 1.0, %v2686_v56  ;;  %v3712_v16 = vmul.f32 -1.442695, %v1963_v11  ;;  %v979_v29 = vsub.f32 1.5, %v978_v37  ;;  %vm984_vm12 = vcmp.eq.f32.partialorder %v5806_v46, 0.0 }
 0x2f0   : > { %v4030_v57 = vpop.eup %4029  ;;  %v2674_v43 = vadd.f32 %v4026_v50, %v2673_v49  ;;  %vm5923_vm13 = vcmp.eq.f32.partialorder %v2694_v54, 8.507059e+37  ;;  %v2697_v47 = vor.u32 1.1754944e-38, %v2696_v40  ;;  %vm1489_vm14 = vweird.f32 %v5897_v36 }
 0x2f1   : > { %v2688_v59 = vmul.f32 %v4028_v53, %v2687_v26  ;;  %vm2691_vm7 = vweird.f32 %v4028_v53  ;;  %4035 = vpow2.f32 %v3712_v16  ;;  %v1485_v14 = vmul.f32 %v4030_v57, %v5897_v36 }
 0x2f2   : > { %v4032_v51 = vpop.eup %4031  ;;  %v2678_v0 = vsel %vm2677_vm0, %v4026_v50, %v2674_v43  ;;  %v1493_v48 = vand.u32 2147483647, %v5897_v36  ;;  %v980_v15 = vmul.f32 %v5843_v7, %v979_v29  ;;  %v798_v1 = vmul.f32 0.5, %v797_v34  ;;  %vm2692_vm2 = vmor %vm2690_vm1, %vm2691_vm7 }
 0x2f3   : > { %v4034_v3 = vpop.eup %4033  ;;  %v2683_v39 = vsel %vm5916_vm6, %v2682_v6, %v2678_v0  ;;  %v2689_v4 = vadd.f32 %v4028_v53, %v2688_v59  ;;  %v1486_v45 = vsub.f32 1.0, %v1485_v14  ;;  %v1500_v33 = vmul.f32 %v4032_v51, %v5899_v23 }
 0x2f4   : > { %3434 = vst [vmem:[%s4623_s15 + $0x70] sm:$0xff] %v2683_v39  ;;  %v5939_v58 = vadd.f32 1.0, %v4034_v3  ;;  %v1495_v10 = vand.u32 2147483648, %v5897_v36  ;;  %v1508_v7 = vand.u32 2147483647, %v5899_v23  ;;  %v981_v41 = vmul.f32 %v980_v15, %v5806_v46  ;;  %v5994_v15 = vpop.xlane.xlu2 %667 }
 0x2f5   : > { %v2693_v17 = vsel %vm2692_vm2, %v4028_v53, %v2689_v4  ;;  %v1487_v60 = vmul.f32 %v4030_v57, %v1486_v45  ;;  %vm1490_vm8 = vweird.f32 %v4030_v57  ;;  %v1501_v55 = vsub.f32 1.0, %v1500_v33 }
 0x2f6   : > { %v2698_v20 = vsel %vm5923_vm13, %v2697_v47, %v2693_v17  ;;  %4037 = vrcp.f32 %v5939_v58  ;;  %v1510_v28 = vand.u32 2147483648, %v5899_v23  ;;  %v799_v62 = vsub.f32 1.5, %v798_v1  ;;  %vm1491_vm10 = vmor %vm1489_vm14, %vm1490_vm8 }
 0x2f7   : > { %v4036_v8 = vpop.eup %4035  ;;  %3435 = vst [vmem:[%s4623_s15 + $0x78] sm:$0xff] %v2698_v20  ;;  %v1488_v44 = vadd.f32 %v4030_v57, %v1487_v60  ;;  %v1502_v18 = vmul.f32 %v4032_v51, %v1501_v55  ;;  %vm1505_vm15 = vweird.f32 %v4032_v51  ;;  %v983_v12 = vsel %vm982_vm9, %v5806_v46, %v981_v41 }
 0x2f8   : > { %v5952_v24 = vadd.f32 1.0, %v4036_v8  ;;  %vm1494_vm3 = vcmp.eq.f32.partialorder %v1493_v48, 8.507059e+37  ;;  %vm1504_vm11 = vweird.f32 %v5899_v23  ;;  %v986_v50 = vsel %vm984_vm12, %v985_v30, %v983_v12  ;;  %v6018_v8 = vpop.xlane.xlu1 %622 }
 0x2f9   : > { %v1492_v27 = vsel %vm1491_vm10, %v4030_v57, %v1488_v44  ;;  %v1496_v9 = vor.u32 1.1754944e-38, %v1495_v10  ;;  %v1503_v25 = vadd.f32 %v4032_v51, %v1502_v18  ;;  %v1164_v34 = vmul.f32 %v4572_v19, %v986_v50  ;;  %vm1506_vm4 = vmor %vm1504_vm11, %vm1505_vm15 }
 0x2fa   : > { %4039 = vrcp.f32 %v5952_v24  ;;  %vm1509_vm5 = vcmp.eq.f32.partialorder %v1508_v7, 8.507059e+37  ;;  %v1511_v13 = vor.u32 1.1754944e-38, %v1510_v28  ;;  %v800_v36 = vmul.f32 %v5857_v61, %v799_v62 }
 0x2fb   : > { %v1497_v63 = vsel %vm1494_vm3, %v1496_v9, %v1492_v27  ;;  %v1507_v23 = vsel %vm1506_vm4, %v4032_v51, %v1503_v25  ;;  %v1165_v54 = vmul.f32 %v4574_v21, %v986_v50  ;;  %v5965_v52 = vadd.f32 1e-06, %v1164_v34 }
 0x2fc   : > { %v4038_v46 = vpop.eup %4037  ;;  %v1498_v30 = vmul.f32 %v1497_v63, %v374_v5  ;;  %v1512_v37 = vsel %vm1509_vm5, %v1511_v13, %v1507_v23  ;;  %v3159_v40 = vand.u32 2147483647, %v5939_v58  ;;  %v3161_v61 = vand.u32 2147483648, %v5939_v58 }
 0x2fd   : > { %v3151_v53 = vmul.f32 %v4038_v46, %v5939_v58  ;;  %v1513_v32 = vmul.f32 %v1512_v37, %v487_v2  ;;  %v5968_v38 = vadd.f32 1e-06, %v1165_v54  ;;  %4041 = vrcp.f32 %v5965_v52 }
 0x2fe   : > { %v3681_v22 = vmul.f32 -1.442695, %v1498_v30  ;;  %v801_v49 = vmul.f32 %v800_v36, %v5817_v31  ;;  %v3174_v6 = vand.u32 2147483647, %v5952_v24  ;;  %v3176_v26 = vand.u32 2147483648, %v5952_v24 }
 0x2ff   : > { %v3152_v56 = vsub.f32 1.0, %v3151_v53  ;;  %v3682_v11 = vmul.f32 -1.442695, %v1513_v32  ;;  %4043 = vrcp.f32 %v5968_v38  ;;  %vm3156_vm6 = vweird.f32 %v4038_v46  ;;  %v422_v32 = vpop.f32.mrf.mxu2 }
 0x300   : > { %v4040_v35 = vpop.eup %4039  ;;  %4045 = vpow2.f32 %v3681_v22  ;;  %vm3155_vm9 = vweird.f32 %v5939_v58  ;;  %vm5979_vm1 = vcmp.eq.f32.partialorder %v3159_v40, 8.507059e+37  ;;  %vm802_vm12 = vcmp.eq.f32.partialorder %v5817_v31, inf }
 0x301   : > { %v3153_v16 = vmul.f32 %v4038_v46, %v3152_v56  ;;  %v3166_v29 = vmul.f32 %v4040_v35, %v5952_v24  ;;  %4047 = vpow2.f32 %v3682_v11  ;;  %vm804_vm13 = vcmp.eq.f32.partialorder %v5817_v31, 0.0  ;;  %vm3157_vm14 = vmor %vm3155_vm9, %vm3156_vm6 }
 0x302   : > { %v3162_v42 = vor.u32 1.1754944e-38, %v3161_v61  ;;  %v803_v59 = vsel %vm802_vm12, %v5817_v31, %v801_v49  ;;  %vm3170_vm0 = vweird.f32 %v5952_v24  ;;  %vm5989_vm7 = vcmp.eq.f32.partialorder %v3174_v6, 8.507059e+37  ;;  %v535_v49 = vpop.f32.mrf.mxu3 }
 0x303   : > { %v3154_v43 = vadd.f32 %v4038_v46, %v3153_v16  ;;  %v3167_v47 = vsub.f32 1.0, %v3166_v29  ;;  %v5986_v14 = vpop.eup %4041  ;;  %v3177_v0 = vor.u32 1.1754944e-38, %v3176_v26  ;;  %v805_v48 = vand.u32 2147483648, %v5817_v31 }
 0x304   : > { %vm3171_vm2 = vweird.f32 %v4040_v35  ;;  %v1965_v4 = vmul.f32 %v5986_v14, %v5965_v52  ;;  %vm1969_vm8 = vweird.f32 %v5965_v52  ;;  %v1973_v58 = vand.u32 2147483647, %v5965_v52 }
 0x305   : > { %v5996_v1 = vpop.eup %4043  ;;  %v3158_v3 = vsel %vm3157_vm14, %v4038_v46, %v3154_v43  ;;  %v3168_v39 = vmul.f32 %v4040_v35, %v3167_v47  ;;  %v806_v7 = vsel %vm804_vm13, %v805_v48, %v803_v59  ;;  %4049 = vrsqrt.f32 %v5994_v15  ;;  %vm3172_vm15 = vmor %vm3170_vm0, %vm3171_vm2 }
 0x306   : > { %v4046_v45 = vpop.eup %4045  ;;  %v3163_v33 = vsel %vm5979_vm1, %v3162_v42, %v3158_v3  ;;  %v1980_v10 = vmul.f32 %v5996_v1, %v5968_v38  ;;  %v1966_v55 = vsub.f32 1.0, %v1965_v4  ;;  %v1134_v62 = vmul.f32 %v4572_v19, %v806_v7 }
 0x307   : > { %v4048_v41 = vpop.eup %4047  ;;  %v3169_v17 = vadd.f32 %v4040_v35, %v3168_v39  ;;  %3466 = vst [vmem:[%s4623_s15 + $0x170] sm:$0xff] %v3163_v33  ;;  %v6009_v60 = vadd.f32 1.0, %v4046_v45  ;;  %v1135_v31 = vmul.f32 %v4574_v21, %v806_v7  ;;  %v1975_v18 = vand.u32 2147483648, %v5965_v52 }
 0x308   : > { %v6014_v20 = vadd.f32 1.0, %v4048_v41  ;;  %v1981_v28 = vsub.f32 1.0, %v1980_v10  ;;  %v1988_v12 = vand.u32 2147483647, %v5968_v38  ;;  %vm6026_vm10 = vcmp.eq.f32.partialorder %v1973_v58, 8.507059e+37 }
 0x309   : > { %v3173_v44 = vsel %vm3172_vm15, %v4040_v35, %v3169_v17  ;;  %4051 = vrcp.f32 %v6009_v60  ;;  %v1990_v27 = vand.u32 2147483648, %v5968_v38  ;;  %v1967_v9 = vmul.f32 %v5986_v14, %v1966_v55 }
 0x30a   : > { %v3178_v24 = vsel %vm5989_vm7, %v3177_v0, %v3173_v44  ;;  %4053 = vrcp.f32 %v6014_v20  ;;  %vm1970_vm3 = vweird.f32 %v5986_v14  ;;  %vm1984_vm11 = vweird.f32 %v5968_v38  ;;  %v490_v38 = vpop.f32.mrf.mxu1 }
 0x30b   : > { %3467 = vst [vmem:[%s4623_s15 + $0x178] sm:$0xff] %v3178_v24  ;;  %4055 = vrsqrt.f32 %v6018_v8  ;;  %v1982_v25 = vmul.f32 %v5996_v1, %v1981_v28  ;;  %vm1985_vm4 = vweird.f32 %v5996_v1  ;;  %v6038_v34 = vadd.f32 1e-06, %v1134_v62  ;;  %v6042_v36 = vpop.eup %4049  ;;  %vm1971_vm9 = vmor %vm1969_vm8, %vm1970_vm3 }
 0x30c   : > { %v6040_v13 = vadd.f32 1e-06, %v1135_v31  ;;  %v2709_v5 = vand.u32 2147483647, %v6009_v60  ;;  %v1968_v63 = vadd.f32 %v5986_v14, %v1967_v9  ;;  %v1976_v23 = vor.u32 1.1754944e-38, %v1975_v18  ;;  %vm1986_vm12 = vmor %vm1984_vm11, %vm1985_vm4 }
 0x30d   : > { %vm6046_vm5 = vcmp.eq.f32.partialorder %v1988_v12, 8.507059e+37  ;;  %vm2705_vm6 = vweird.f32 %v6009_v60  ;;  %v1983_v46 = vadd.f32 %v5996_v1, %v1982_v25  ;;  %v1991_v30 = vor.u32 1.1754944e-38, %v1990_v27 }
 0x30e   : > { %4057 = vrcp.f32 %v6038_v34  ;;  %v2711_v37 = vand.u32 2147483648, %v6009_v60  ;;  %vm2720_vm1 = vweird.f32 %v6014_v20  ;;  %v1972_v53 = vsel %vm1971_vm9, %v5986_v14, %v1968_v63 }
 0x30f   : > { %v4052_v2 = vpop.eup %4051  ;;  %4059 = vrcp.f32 %v6040_v13  ;;  %v1977_v61 = vsel %vm6026_vm10, %v1976_v23, %v1972_v53  ;;  %v1987_v22 = vsel %vm1986_vm12, %v5996_v1, %v1983_v46  ;;  %v988_v56 = vmul.f32 %v6042_v36, %v5994_v15 }
 0x310   : > { %v4054_v52 = vpop.eup %4053  ;;  %v2701_v40 = vmul.f32 %v4052_v2, %v6009_v60  ;;  %vm6071_vm13 = vcmp.eq.f32.partialorder %v2709_v5, 8.507059e+37  ;;  %v1978_v6 = vmul.f32 %v1977_v61, %v422_v32  ;;  %v1992_v26 = vsel %vm6046_vm5, %v1991_v30, %v1987_v22  ;;  %v377_v61 = vpop.f32.mrf.mxu0 }
 0x311   : > { %v6069_v11 = vpop.eup %4055  ;;  %v2716_v35 = vmul.f32 %v4054_v52, %v6014_v20  ;;  %v2724_v29 = vand.u32 2147483647, %v6014_v20  ;;  %v2726_v57 = vand.u32 2147483648, %v6014_v20  ;;  %v1993_v43 = vmul.f32 %v1992_v26, %v535_v49  ;;  %v6101_v20 = vpop.xlane.xlu1 %670 }
 0x312   : > { %v2702_v16 = vsub.f32 1.0, %v2701_v40  ;;  %vm2706_vm14 = vweird.f32 %v4052_v2  ;;  %v2712_v42 = vor.u32 1.1754944e-38, %v2711_v37  ;;  %v3713_v59 = vmul.f32 -1.442695, %v1978_v6 }
 0x313   : > { %v2717_v47 = vsub.f32 1.0, %v2716_v35  ;;  %v3714_v0 = vmul.f32 -1.442695, %v1993_v43  ;;  %v989_v48 = vmul.f32 %v6042_v36, %v988_v56  ;;  %v808_v1 = vmul.f32 %v6069_v11, %v6018_v8  ;;  %vm2707_vm2 = vmor %vm2705_vm6, %vm2706_vm14 }
 0x314   : > { %v4058_v14 = vpop.eup %4057  ;;  %v2703_v51 = vmul.f32 %v4052_v2, %v2702_v16  ;;  %vm2721_vm0 = vweird.f32 %v4054_v52  ;;  %4061 = vpow2.f32 %v3713_v59  ;;  %vm6084_vm7 = vcmp.eq.f32.partialorder %v2724_v29, 8.507059e+37 }
 0x315   : > { %v4060_v3 = vpop.eup %4059  ;;  %v2718_v39 = vmul.f32 %v4054_v52, %v2717_v47  ;;  %v1515_v4 = vmul.f32 %v4058_v14, %v6038_v34  ;;  %4063 = vpow2.f32 %v3714_v0  ;;  %v2727_v7 = vor.u32 1.1754944e-38, %v2726_v57  ;;  %vm2722_vm8 = vmor %vm2720_vm1, %vm2721_vm0 }
 0x316   : > { %v2704_v45 = vadd.f32 %v4052_v2, %v2703_v51  ;;  %v1530_v58 = vmul.f32 %v4060_v3, %v6040_v13  ;;  %v1525_v17 = vand.u32 2147483648, %v6038_v34  ;;  %v990_v62 = vmul.f32 0.5, %v989_v48 }
 0x317   : > { %v2719_v10 = vadd.f32 %v4054_v52, %v2718_v39  ;;  %v1516_v41 = vsub.f32 1.0, %v1515_v4  ;;  %v809_v31 = vmul.f32 %v6069_v11, %v808_v1  ;;  %vm1520_vm15 = vweird.f32 %v4058_v14 }
 0x318   : > { %v2708_v55 = vsel %vm2707_vm2, %v4052_v2, %v2704_v45  ;;  %v1531_v28 = vsub.f32 1.0, %v1530_v58  ;;  %v991_v50 = vsub.f32 1.5, %v990_v62  ;;  %vm1519_vm10 = vweird.f32 %v6038_v34 }
 0x319   : > { %v2713_v44 = vsel %vm6071_vm13, %v2712_v42, %v2708_v55  ;;  %v2723_v18 = vsel %vm2722_vm8, %v4054_v52, %v2719_v10  ;;  %v1517_v60 = vmul.f32 %v4058_v14, %v1516_v41  ;;  %v810_v27 = vmul.f32 0.5, %v809_v31  ;;  %vm6110_vm3 = vmor %vm1519_vm10, %vm1520_vm15  ;;  %v425_v55 = vpop.f32.mrf.mxu2 }
 0x31a   : > { %3436 = vst [vmem:[%s4623_s15 + $0x80] sm:$0xff] %v2713_v44  ;;  %v2728_v12 = vsel %vm6084_vm7, %v2727_v7, %v2723_v18  ;;  %v1532_v24 = vmul.f32 %v4060_v3, %v1531_v28  ;;  %v4062_v9 = vpop.eup %4061  ;;  %v1523_v5 = vand.u32 2147483647, %v6038_v34  ;;  %v1540_v63 = vand.u32 2147483648, %v6040_v13 }
 0x31b   : > { %3437 = vst [vmem:[%s4623_s15 + $0x88] sm:$0xff] %v2728_v12  ;;  %v1518_v25 = vadd.f32 %v4058_v14, %v1517_v60  ;;  %v4064_v23 = vpop.eup %4063  ;;  %v6107_v54 = vadd.f32 1.0, %v4062_v9  ;;  %vm1535_vm11 = vweird.f32 %v4060_v3  ;;  %v1538_v2 = vand.u32 2147483647, %v6040_v13 }
 0x31c   : > { %v1533_v30 = vadd.f32 %v4060_v3, %v1532_v24  ;;  %v6115_v37 = vadd.f32 1.0, %v4064_v23  ;;  %vm1534_vm4 = vweird.f32 %v6040_v13  ;;  %4065 = vrsqrt.f32 %v6101_v20  ;;  %v6179_v23 = vpop.xlane.xlu2 %625 }
 0x31d   : > { %v1522_v53 = vsel %vm6110_vm3, %v4058_v14, %v1518_v25  ;;  %4067 = vrcp.f32 %v6107_v54  ;;  %v1526_v34 = vor.u32 1.1754944e-38, %v1525_v17  ;;  %v992_v52 = vmul.f32 %v6042_v36, %v991_v50  ;;  %vm1536_vm6 = vmor %vm1534_vm4, %vm1535_vm11 }
 0x31e   : > { %v811_v32 = vsub.f32 1.5, %v810_v27  ;;  %4069 = vrcp.f32 %v6115_v37  ;;  %vm1524_vm5 = vcmp.eq.f32.partialorder %v1523_v5, 8.507059e+37  ;;  %v1541_v40 = vor.u32 1.1754944e-38, %v1540_v63 }
 0x31f   : > { %v1527_v22 = vsel %vm1524_vm5, %v1526_v34, %v1522_v53  ;;  %v1537_v56 = vsel %vm1536_vm6, %v4060_v3, %v1533_v30  ;;  %vm1539_vm9 = vcmp.eq.f32.partialorder %v1538_v2, 8.507059e+37  ;;  %vm994_vm1 = vcmp.eq.f32.partialorder %v5994_v15, inf }
 0x320   : > { %v1528_v49 = vmul.f32 %v1527_v22, %v377_v61  ;;  %v1542_v13 = vsel %vm1539_vm9, %v1541_v40, %v1537_v56  ;;  %vm996_vm12 = vcmp.eq.f32.partialorder %v5994_v15, 0.0  ;;  %v993_v36 = vmul.f32 %v992_v52, %v5994_v15 }
 0x321   : > { %v1543_v35 = vmul.f32 %v1542_v13, %v490_v38  ;;  %v997_v6 = vand.u32 2147483648, %v5994_v15  ;;  %v812_v26 = vmul.f32 %v6069_v11, %v811_v32  ;;  %vm814_vm13 = vcmp.eq.f32.partialorder %v6018_v8, inf }
 0x322   : > { %v6129_v16 = vpop.eup %4065  ;;  %v3683_v29 = vmul.f32 -1.442695, %v1528_v49  ;;  %vm816_vm14 = vcmp.eq.f32.partialorder %v6018_v8, 0.0  ;;  %v817_v57 = vand.u32 2147483648, %v6018_v8  ;;  %vm3185_vm0 = vweird.f32 %v6107_v54 }
 0x323   : > { %v4068_v43 = vpop.eup %4067  ;;  %v3189_v42 = vand.u32 2147483647, %v6107_v54  ;;  %v3684_v47 = vmul.f32 -1.442695, %v1543_v35  ;;  %v995_v59 = vsel %vm994_vm1, %v5994_v15, %v993_v36  ;;  %v813_v0 = vmul.f32 %v812_v26, %v6018_v8 }
 0x324   : > { %v4070_v14 = vpop.eup %4069  ;;  %v3181_v11 = vmul.f32 %v4068_v43, %v6107_v54  ;;  %4071 = vpow2.f32 %v3683_v29  ;;  %v998_v51 = vsel %vm996_vm12, %v997_v6, %v995_v59  ;;  %v3191_v48 = vand.u32 2147483648, %v6107_v54 }
 0x325   : > { %v3196_v1 = vmul.f32 %v4070_v14, %v6115_v37  ;;  %4073 = vpow2.f32 %v3684_v47  ;;  %v1166_v3 = vmul.f32 %v4572_v19, %v998_v51  ;;  %vm3200_vm7 = vweird.f32 %v6115_v37 }
 0x326   : > { %v3182_v39 = vsub.f32 1.0, %v3181_v11  ;;  %v3204_v4 = vand.u32 2147483647, %v6115_v37  ;;  %v1167_v45 = vmul.f32 %v4574_v21, %v998_v51  ;;  %v3206_v15 = vand.u32 2147483648, %v6115_v37 }
 0x327   : > { %v3197_v33 = vsub.f32 1.0, %v3196_v1  ;;  %v6148_v58 = vadd.f32 1e-06, %v1166_v3  ;;  %v1000_v10 = vmul.f32 %v6129_v16, %v6101_v20  ;;  %vm3186_vm2 = vweird.f32 %v4068_v43 }
 0x328   : > { %v3183_v7 = vmul.f32 %v4068_v43, %v3182_v39  ;;  %v6152_v41 = vadd.f32 1e-06, %v1167_v45  ;;  %v815_v17 = vsel %vm814_vm13, %v6018_v8, %v813_v0  ;;  %vm6157_vm8 = vcmp.eq.f32.partialorder %v3189_v42, 8.507059e+37  ;;  %vm3187_vm3 = vmor %vm3185_vm0, %vm3186_vm2 }
 0x329   : > { %v3198_v28 = vmul.f32 %v4070_v14, %v3197_v33  ;;  %vm3201_vm15 = vweird.f32 %v4070_v14  ;;  %4075 = vrcp.f32 %v6148_v58  ;;  %v3192_v44 = vor.u32 1.1754944e-38, %v3191_v48 }
 0x32a   : > { %v4072_v62 = vpop.eup %4071  ;;  %v3184_v31 = vadd.f32 %v4068_v43, %v3183_v7  ;;  %vm6162_vm10 = vcmp.eq.f32.partialorder %v3204_v4, 8.507059e+37  ;;  %4077 = vrcp.f32 %v6152_v41  ;;  %v818_v50 = vsel %vm816_vm14, %v817_v57, %v815_v17  ;;  %vm3202_vm11 = vmor %vm3200_vm7, %vm3201_vm15 }
 0x32b   : > { %v4074_v60 = vpop.eup %4073  ;;  %v3199_v12 = vadd.f32 %v4070_v14, %v3198_v28  ;;  %v6169_v24 = vadd.f32 1.0, %v4072_v62  ;;  %v1001_v27 = vmul.f32 %v6129_v16, %v1000_v10  ;;  %v3207_v25 = vor.u32 1.1754944e-38, %v3206_v15 }
 0x32c   : > { %v3188_v9 = vsel %vm3187_vm3, %v4068_v43, %v3184_v31  ;;  %v6176_v5 = vadd.f32 1.0, %v4074_v60  ;;  %v2003_v63 = vand.u32 2147483647, %v6148_v58  ;;  %v2005_v8 = vand.u32 2147483648, %v6148_v58  ;;  %v380_v43 = vpop.f32.mrf.mxu0 }
 0x32d   : > { %v3193_v54 = vsel %vm6157_vm8, %v3192_v44, %v3188_v9  ;;  %v3203_v46 = vsel %vm3202_vm11, %v4070_v14, %v3199_v12  ;;  %4079 = vrcp.f32 %v6169_v24  ;;  %v1136_v2 = vmul.f32 %v4572_v19, %v818_v50 }
 0x32e   : > { %v3208_v30 = vsel %vm6162_vm10, %v3207_v25, %v3203_v46  ;;  %3468 = vst [vmem:[%s4623_s15 + $0x180] sm:$0xff] %v3193_v54  ;;  %4081 = vrcp.f32 %v6176_v5  ;;  %v2018_v53 = vand.u32 2147483647, %v6152_v41  ;;  %v1137_v34 = vmul.f32 %v4574_v21, %v818_v50 }
 0x32f   : > { %v4076_v37 = vpop.eup %4075  ;;  %3469 = vst [vmem:[%s4623_s15 + $0x188] sm:$0xff] %v3208_v30  ;;  %v6193_v52 = vmul.f32 0.5, %v1001_v27  ;;  %4083 = vrsqrt.f32 %v6179_v23  ;;  %vm1999_vm4 = vweird.f32 %v6148_v58  ;;  %vm6198_vm5 = vcmp.eq.f32.partialorder %v2003_v63, 8.507059e+37 }
 0x330   : > { %v4078_v32 = vpop.eup %4077  ;;  %v1995_v40 = vmul.f32 %v4076_v37, %v6148_v58  ;;  %vm2014_vm6 = vweird.f32 %v6152_v41  ;;  %v2739_v22 = vand.u32 2147483647, %v6169_v24  ;;  %v2006_v56 = vor.u32 1.1754944e-38, %v2005_v8  ;;  %v538_v58 = vpop.f32.mrf.mxu3 }
 0x331   : > { %v2010_v49 = vmul.f32 %v4078_v32, %v6152_v41  ;;  %v2020_v38 = vand.u32 2147483648, %v6152_v41  ;;  %vm2735_vm9 = vweird.f32 %v6169_v24  ;;  %v2741_v13 = vand.u32 2147483648, %v6169_v24 }
 0x332   : > { %v2754_v35 = vand.u32 2147483647, %v6176_v5  ;;  %v1996_v36 = vsub.f32 1.0, %v1995_v40  ;;  %v6209_v6 = vadd.f32 1e-06, %v1136_v2  ;;  %vm2750_vm1 = vweird.f32 %v6176_v5 }
 0x333   : > { %v4080_v26 = vpop.eup %4079  ;;  %v2756_v29 = vand.u32 2147483648, %v6176_v5  ;;  %v2011_v57 = vsub.f32 1.0, %v2010_v49  ;;  %vm6213_vm12 = vcmp.eq.f32.partialorder %v2018_v53, 8.507059e+37  ;;  %v6217_v42 = vadd.f32 1e-06, %v1137_v34 }
 0x334   : > { %v4082_v47 = vpop.eup %4081  ;;  %v2731_v59 = vmul.f32 %v4080_v26, %v6169_v24  ;;  %v1997_v14 = vmul.f32 %v4076_v37, %v1996_v36  ;;  %vm2000_vm13 = vweird.f32 %v4076_v37  ;;  %4085 = vrcp.f32 %v6209_v6 }
 0x335   : > { %v6221_v11 = vpop.eup %4083  ;;  %vm6223_vm14 = vcmp.eq.f32.partialorder %v2739_v22, 8.507059e+37  ;;  %v2746_v0 = vmul.f32 %v4082_v47, %v6176_v5  ;;  %v2012_v48 = vmul.f32 %v4078_v32, %v2011_v57  ;;  %vm2015_vm0 = vweird.f32 %v4078_v32  ;;  %vm2001_vm2 = vmor %vm1999_vm4, %vm2000_vm13 }
 0x336   : > { %v2732_v1 = vsub.f32 1.0, %v2731_v59  ;;  %v2742_v3 = vor.u32 1.1754944e-38, %v2741_v13  ;;  %vm6228_vm7 = vcmp.eq.f32.partialorder %v2754_v35, 8.507059e+37  ;;  %v1998_v4 = vadd.f32 %v4076_v37, %v1997_v14  ;;  %vm2016_vm15 = vmor %vm2014_vm6, %vm2015_vm0 }
 0x337   : > { %v2747_v45 = vsub.f32 1.0, %v2746_v0  ;;  %v2757_v33 = vor.u32 1.1754944e-38, %v2756_v29  ;;  %v2013_v15 = vadd.f32 %v4078_v32, %v2012_v48  ;;  %4087 = vrcp.f32 %v6217_v42  ;;  %v6274_v29 = vpop.xlane.xlu2 %673 }
 0x338   : > { %v2733_v10 = vmul.f32 %v4080_v26, %v2732_v1  ;;  %vm2736_vm8 = vweird.f32 %v4080_v26  ;;  %v2002_v7 = vsel %vm2001_vm2, %v4076_v37, %v1998_v4  ;;  %v2021_v17 = vor.u32 1.1754944e-38, %v2020_v38 }
 0x339   : > { %v2748_v28 = vmul.f32 %v4082_v47, %v2747_v45  ;;  %vm2751_vm10 = vweird.f32 %v4082_v47  ;;  %v2007_v62 = vsel %vm6198_vm5, %v2006_v56, %v2002_v7  ;;  %v2017_v31 = vsel %vm2016_vm15, %v4078_v32, %v2013_v15  ;;  %vm2737_vm11 = vmor %vm2735_vm9, %vm2736_vm8 }
 0x33a   : > { %v4086_v44 = vpop.eup %4085  ;;  %v2734_v18 = vadd.f32 %v4080_v26, %v2733_v10  ;;  %v2008_v60 = vmul.f32 %v2007_v62, %v425_v55  ;;  %v2022_v12 = vsel %vm6213_vm12, %v2021_v17, %v2017_v31  ;;  %v1003_v50 = vsub.f32 1.5, %v6193_v52  ;;  %vm2752_vm4 = vmor %vm2750_vm1, %vm2751_vm10  ;;  %v493_v10 = vpop.f32.mrf.mxu1 }
 0x33b   : > { %vm1006_vm3 = vcmp.eq.f32.partialorder %v6101_v20, inf  ;;  %v2749_v41 = vadd.f32 %v4082_v47, %v2748_v28  ;;  %v2023_v27 = vmul.f32 %v2022_v12, %v538_v58  ;;  %v1545_v9 = vmul.f32 %v4086_v44, %v6209_v6 }
 0x33c   : > { %v820_v25 = vmul.f32 %v6221_v11, %v6179_v23  ;;  %v2738_v63 = vsel %vm2737_vm11, %v4080_v26, %v2734_v18  ;;  %v3715_v54 = vmul.f32 -1.442695, %v2008_v60  ;;  %v1553_v46 = vand.u32 2147483647, %v6209_v6 }
 0x33d   : > { %v1555_v24 = vand.u32 2147483648, %v6209_v6  ;;  %v4088_v8 = vpop.eup %4087  ;;  %v2743_v30 = vsel %vm6223_vm14, %v2742_v3, %v2738_v63  ;;  %v2753_v2 = vsel %vm2752_vm4, %v4082_v47, %v2749_v41  ;;  %v3716_v37 = vmul.f32 -1.442695, %v2023_v27 }
 0x33e   : > { %v1546_v53 = vsub.f32 1.0, %v1545_v9  ;;  %3438 = vst [vmem:[%s4623_s15 + $0x90] sm:$0xff] %v2743_v30  ;;  %v2758_v34 = vsel %vm6228_vm7, %v2757_v33, %v2753_v2  ;;  %4089 = vpow2.f32 %v3715_v54  ;;  %vm1550_vm5 = vweird.f32 %v4086_v44  ;;  %v6289_v33 = vpop.xlane.xlu1 %628 }
 0x33f   : > { %v1560_v5 = vmul.f32 %v4088_v8, %v6217_v42  ;;  %3439 = vst [vmem:[%s4623_s15 + $0x98] sm:$0xff] %v2758_v34  ;;  %4091 = vpow2.f32 %v3716_v37  ;;  %v1004_v32 = vmul.f32 %v6129_v16, %v1003_v50  ;;  %v821_v40 = vmul.f32 %v6221_v11, %v820_v25 }
 0x340   : > { %v1547_v52 = vmul.f32 %v4086_v44, %v1546_v53  ;;  %vm1549_vm6 = vweird.f32 %v6209_v6  ;;  %vm1008_vm9 = vcmp.eq.f32.partialorder %v6101_v20, 0.0  ;;  %v1009_v22 = vand.u32 2147483648, %v6101_v20 }
 0x341   : > { %v1561_v61 = vsub.f32 1.0, %v1560_v5  ;;  %vm1564_vm1 = vweird.f32 %v6217_v42  ;;  %v1005_v49 = vmul.f32 %v1004_v32, %v6101_v20  ;;  %v822_v38 = vmul.f32 0.5, %v821_v40  ;;  %vm1551_vm12 = vmor %vm1549_vm6, %vm1550_vm5 }
 0x342   : > { %v1548_v56 = vadd.f32 %v4086_v44, %v1547_v52  ;;  %vm1554_vm13 = vcmp.eq.f32.partialorder %v1553_v46, 8.507059e+37  ;;  %v1556_v13 = vor.u32 1.1754944e-38, %v1555_v24  ;;  %vm1565_vm14 = vweird.f32 %v4088_v8 }
 0x343   : > { %v1562_v16 = vmul.f32 %v4088_v8, %v1561_v61  ;;  %v1568_v36 = vand.u32 2147483647, %v6217_v42  ;;  %v1570_v6 = vand.u32 2147483648, %v6217_v42  ;;  %v1007_v26 = vsel %vm1006_vm3, %v6101_v20, %v1005_v49  ;;  %vm1566_vm0 = vmor %vm1564_vm1, %vm1565_vm14 }
 0x344   : > { %v1552_v35 = vsel %vm1551_vm12, %v4086_v44, %v1548_v56  ;;  %v4090_v57 = vpop.eup %4089  ;;  %v1010_v14 = vsel %vm1008_vm9, %v1009_v22, %v1007_v26  ;;  %v823_v51 = vsub.f32 1.5, %v822_v38  ;;  %4093 = vrsqrt.f32 %v6274_v29 }
 0x345   : > { %v1557_v47 = vsel %vm1554_vm13, %v1556_v13, %v1552_v35  ;;  %v1563_v59 = vadd.f32 %v4088_v8, %v1562_v16  ;;  %v4092_v0 = vpop.eup %4091  ;;  %v6278_v48 = vadd.f32 1.0, %v4090_v57  ;;  %v1168_v4 = vmul.f32 %v4572_v19, %v1010_v14 }
 0x346   : > { %v1558_v1 = vmul.f32 %v1557_v47, %v380_v43  ;;  %v6283_v3 = vadd.f32 1.0, %v4092_v0  ;;  %v1571_v20 = vor.u32 1.1754944e-38, %v1570_v6  ;;  %v1169_v45 = vmul.f32 %v4574_v21, %v1010_v14 }
 0x347   : > { %v1567_v39 = vsel %vm1566_vm0, %v4088_v8, %v1563_v59  ;;  %4095 = vrcp.f32 %v6278_v48  ;;  %vm1569_vm7 = vcmp.eq.f32.partialorder %v1568_v36, 8.507059e+37  ;;  %v824_v42 = vmul.f32 %v6221_v11, %v823_v51 }
 0x348   : > { %4097 = vrcp.f32 %v6283_v3  ;;  %v3685_v15 = vmul.f32 -1.442695, %v1558_v1  ;;  %v1572_v7 = vsel %vm1569_vm7, %v1571_v20, %v1567_v39  ;;  %v6293_v55 = vadd.f32 1e-06, %v1168_v4 }
 0x349   : > { %v1573_v17 = vmul.f32 %v1572_v7, %v493_v10  ;;  %4099 = vrsqrt.f32 %v6289_v33  ;;  %v3219_v28 = vand.u32 2147483647, %v6278_v48  ;;  %v3221_v62 = vand.u32 2147483648, %v6278_v48 }
 0x34a   : > { %4101 = vpow2.f32 %v3685_v15  ;;  %v6298_v31 = vadd.f32 1e-06, %v1169_v45  ;;  %v6300_v44 = vpop.eup %4093  ;;  %v3234_v58 = vand.u32 2147483647, %v6283_v3  ;;  %v825_v18 = vmul.f32 %v824_v42, %v6179_v23 }
 0x34b   : > { %v3686_v11 = vmul.f32 -1.442695, %v1573_v17  ;;  %4103 = vrcp.f32 %v6293_v55  ;;  %v3236_v12 = vand.u32 2147483648, %v6283_v3  ;;  %vm826_vm2 = vcmp.eq.f32.partialorder %v6179_v23, inf }
 0x34c   : > { %4105 = vrcp.f32 %v6298_v31  ;;  %vm828_vm8 = vcmp.eq.f32.partialorder %v6179_v23, 0.0  ;;  %v829_v27 = vand.u32 2147483648, %v6179_v23  ;;  %vm3215_vm15 = vweird.f32 %v6278_v48 }
 0x34d   : > { %v4096_v60 = vpop.eup %4095  ;;  %4107 = vpow2.f32 %v3686_v11  ;;  %vm6312_vm10 = vcmp.eq.f32.partialorder %v3219_v28, 8.507059e+37  ;;  %vm3230_vm3 = vweird.f32 %v6283_v3  ;;  %v3222_v46 = vor.u32 1.1754944e-38, %v3221_v62 }
 0x34e   : > { %v4098_v50 = vpop.eup %4097  ;;  %v3211_v41 = vmul.f32 %v4096_v60, %v6278_v48  ;;  %vm6320_vm11 = vcmp.eq.f32.partialorder %v3234_v58, 8.507059e+37  ;;  %v827_v8 = vsel %vm826_vm2, %v6179_v23, %v825_v18  ;;  %v3237_v37 = vor.u32 1.1754944e-38, %v3236_v12 }
 0x34f   : > { %v3226_v25 = vmul.f32 %v4098_v50, %v6283_v3  ;;  %v6318_v63 = vpop.eup %4099  ;;  %v830_v53 = vsel %vm828_vm8, %v829_v27, %v827_v8  ;;  %v1012_v34 = vmul.f32 %v6300_v44, %v6274_v29  ;;  %vm3216_vm4 = vweird.f32 %v4096_v60  ;;  %v541_v8 = vpop.f32.mrf.mxu3 }
 0x350   : > { %v3212_v54 = vsub.f32 1.0, %v3211_v41  ;;  %v4102_v30 = vpop.eup %4101  ;;  %v2033_v40 = vand.u32 2147483647, %v6293_v55  ;;  %vm3231_vm5 = vweird.f32 %v4098_v50  ;;  %v2035_v56 = vand.u32 2147483648, %v6293_v55  ;;  %vm3217_vm9 = vmor %vm3215_vm15, %vm3216_vm4  ;;  %v428_v41 = vpop.f32.mrf.mxu2 }
 0x351   : > { %v3227_v2 = vsub.f32 1.0, %v3226_v25  ;;  %v6327_v5 = vpop.eup %4103  ;;  %v6329_v32 = vadd.f32 1.0, %v4102_v30  ;;  %vm2029_vm6 = vweird.f32 %v6293_v55  ;;  %v1138_v13 = vmul.f32 %v4572_v19, %v830_v53  ;;  %vm3232_vm12 = vmor %vm3230_vm3, %vm3231_vm5 }
 0x352   : > { %v3213_v52 = vmul.f32 %v4096_v60, %v3212_v54  ;;  %v6332_v61 = vpop.eup %4105  ;;  %v2025_v23 = vmul.f32 %v6327_v5, %v6293_v55  ;;  %vm2044_vm1 = vweird.f32 %v6298_v31  ;;  %v1139_v6 = vmul.f32 %v4574_v21, %v830_v53 }
 0x353   : > { %v3228_v22 = vmul.f32 %v4098_v50, %v3227_v2  ;;  %v4108_v49 = vpop.eup %4107  ;;  %4109 = vrcp.f32 %v6329_v32  ;;  %vm6349_vm13 = vcmp.eq.f32.partialorder %v2033_v40, 8.507059e+37  ;;  %v2040_v43 = vmul.f32 %v6332_v61, %v6298_v31 }
 0x354   : > { %v3214_v38 = vadd.f32 %v4096_v60, %v3213_v52  ;;  %v6342_v35 = vadd.f32 1.0, %v4108_v49  ;;  %v2026_v36 = vsub.f32 1.0, %v2025_v23  ;;  %v2048_v47 = vand.u32 2147483647, %v6298_v31 }
 0x355   : > { %v3229_v16 = vadd.f32 %v4098_v50, %v3228_v22  ;;  %v2036_v51 = vor.u32 1.1754944e-38, %v2035_v56  ;;  %v2769_v48 = vand.u32 2147483647, %v6329_v32  ;;  %vm2030_vm14 = vweird.f32 %v6327_v5 }
 0x356   : > { %v3218_v26 = vsel %vm3217_vm9, %v4096_v60, %v3214_v38  ;;  %4111 = vrcp.f32 %v6342_v35  ;;  %v2050_v1 = vand.u32 2147483648, %v6298_v31  ;;  %v2027_v3 = vmul.f32 %v6327_v5, %v2026_v36  ;;  %vm2031_vm15 = vmor %vm2029_vm6, %vm2030_vm14 }
 0x357   : > { %v3223_v59 = vsel %vm6312_vm10, %v3222_v46, %v3218_v26  ;;  %v3233_v14 = vsel %vm3232_vm12, %v4098_v50, %v3229_v16  ;;  %v2041_v39 = vsub.f32 1.0, %v2040_v43  ;;  %v6367_v4 = vadd.f32 1e-06, %v1138_v13 }
 0x358   : > { %v3238_v0 = vsel %vm6320_vm11, %v3237_v37, %v3233_v14  ;;  %3470 = vst [vmem:[%s4623_s15 + $0x190] sm:$0xff] %v3223_v59  ;;  %v6369_v20 = vadd.f32 1e-06, %v1139_v6  ;;  %v2771_v42 = vand.u32 2147483648, %v6329_v32  ;;  %vm6372_vm0 = vcmp.eq.f32.partialorder %v2048_v47, 8.507059e+37 }
 0x359   : > { %3471 = vst [vmem:[%s4623_s15 + $0x198] sm:$0xff] %v3238_v0  ;;  %v4110_v45 = vpop.eup %4109  ;;  %v1013_v10 = vmul.f32 %v6300_v44, %v1012_v34  ;;  %v832_v7 = vmul.f32 %v6318_v63, %v6289_v33  ;;  %v2028_v28 = vadd.f32 %v6327_v5, %v2027_v3  ;;  %v2042_v62 = vmul.f32 %v6332_v61, %v2041_v39 }
 0x35a   : > { %v2761_v17 = vmul.f32 %v4110_v45, %v6329_v32  ;;  %vm2045_vm7 = vweird.f32 %v6332_v61  ;;  %vm2765_vm2 = vweird.f32 %v6329_v32  ;;  %vm6384_vm8 = vcmp.eq.f32.partialorder %v2769_v48, 8.507059e+37 }
 0x35b   : > { %v2051_v11 = vor.u32 1.1754944e-38, %v2050_v1  ;;  %4113 = vrcp.f32 %v6367_v4  ;;  %v2032_v12 = vsel %vm2031_vm15, %v6327_v5, %v2028_v28  ;;  %v2043_v50 = vadd.f32 %v6332_v61, %v2042_v62  ;;  %vm2046_vm10 = vmor %vm2044_vm1, %vm2045_vm7 }
 0x35c   : > { %v4112_v18 = vpop.eup %4111  ;;  %v2762_v60 = vsub.f32 1.0, %v2761_v17  ;;  %4115 = vrcp.f32 %v6369_v20  ;;  %v2772_v27 = vor.u32 1.1754944e-38, %v2771_v42  ;;  %v2037_v25 = vsel %vm6349_vm13, %v2036_v51, %v2032_v12 }
 0x35d   : > { %v2776_v9 = vmul.f32 %v4112_v18, %v6342_v35  ;;  %v1014_v55 = vmul.f32 0.5, %v1013_v10  ;;  %vm2766_vm3 = vweird.f32 %v4110_v45  ;;  %v2038_v46 = vmul.f32 %v2037_v25, %v428_v41  ;;  %v496_v25 = vpop.f32.mrf.mxu1 }
 0x35e   : > { %v2763_v54 = vmul.f32 %v4110_v45, %v2762_v60  ;;  %v2047_v24 = vsel %vm2046_vm10, %v6332_v61, %v2043_v50  ;;  %vm2780_vm11 = vweird.f32 %v6342_v35  ;;  %v833_v37 = vmul.f32 %v6318_v63, %v832_v7  ;;  %vm2767_vm5 = vmor %vm2765_vm2, %vm2766_vm3  ;;  %v6449_v60 = vpop.xlane.xlu1 %676 }
 0x35f   : > { %v2777_v30 = vsub.f32 1.0, %v2776_v9  ;;  %v2052_v2 = vsel %vm6372_vm0, %v2051_v11, %v2047_v24  ;;  %v2786_v34 = vand.u32 2147483648, %v6342_v35  ;;  %v3717_v5 = vmul.f32 -1.442695, %v2038_v46 }
 0x360   : > { %v2764_v53 = vadd.f32 %v4110_v45, %v2763_v54  ;;  %v2053_v31 = vmul.f32 %v2052_v2, %v541_v8  ;;  %vm1018_vm4 = vcmp.eq.f32.partialorder %v6274_v29, inf  ;;  %vm2781_vm6 = vweird.f32 %v4112_v18 }
 0x361   : > { %v4114_v52 = vpop.eup %4113  ;;  %v2778_v40 = vmul.f32 %v4112_v18, %v2777_v30  ;;  %v2784_v61 = vand.u32 2147483647, %v6342_v35  ;;  %v1015_v22 = vsub.f32 1.5, %v1014_v55  ;;  %vm1020_vm9 = vcmp.eq.f32.partialorder %v6274_v29, 0.0  ;;  %vm2782_vm1 = vmor %vm2780_vm11, %vm2781_vm6 }
 0x362   : > { %v4116_v23 = vpop.eup %4115  ;;  %v2768_v56 = vsel %vm2767_vm5, %v4110_v45, %v2764_v53  ;;  %4117 = vpow2.f32 %v3717_v5  ;;  %v3718_v49 = vmul.f32 -1.442695, %v2053_v31  ;;  %v1575_v38 = vmul.f32 %v4114_v52, %v6367_v4 }
 0x363   : > { %v2773_v13 = vsel %vm6384_vm8, %v2772_v27, %v2768_v56  ;;  %v2779_v16 = vadd.f32 %v4112_v18, %v2778_v40  ;;  %v1590_v32 = vmul.f32 %v4116_v23, %v6369_v20  ;;  %v834_v36 = vmul.f32 0.5, %v833_v37 }
 0x364   : > { %3440 = vst [vmem:[%s4623_s15 + $0xa0] sm:$0xff] %v2773_v13  ;;  %v2787_v6 = vor.u32 1.1754944e-38, %v2786_v34  ;;  %4119 = vpow2.f32 %v3718_v49  ;;  %v1576_v26 = vsub.f32 1.0, %v1575_v38  ;;  %v1021_v57 = vand.u32 2147483648, %v6274_v29 }
 0x365   : > { %v2783_v43 = vsel %vm2782_vm1, %v4112_v18, %v2779_v16  ;;  %vm2785_vm12 = vcmp.eq.f32.partialorder %v2784_v61, 8.507059e+37  ;;  %v1591_v47 = vsub.f32 1.0, %v1590_v32  ;;  %v1016_v59 = vmul.f32 %v6300_v44, %v1015_v22 }
 0x366   : > { %v2788_v14 = vsel %vm2785_vm12, %v2787_v6, %v2783_v43  ;;  %v1577_v51 = vmul.f32 %v4114_v52, %v1576_v26  ;;  %vm1580_vm13 = vweird.f32 %v4114_v52  ;;  %v1585_v0 = vand.u32 2147483648, %v6367_v4 }
 0x367   : > { %3441 = vst [vmem:[%s4623_s15 + $0xa8] sm:$0xff] %v2788_v14  ;;  %v1583_v48 = vand.u32 2147483647, %v6367_v4  ;;  %v1592_v35 = vmul.f32 %v4116_v23, %v1591_v47  ;;  %v1017_v1 = vmul.f32 %v1016_v59, %v6274_v29  ;;  %v835_v3 = vsub.f32 1.5, %v834_v36 }
 0x368   : > { %v4118_v39 = vpop.eup %4117  ;;  %v1578_v45 = vadd.f32 %v4114_v52, %v1577_v51  ;;  %vm1579_vm14 = vweird.f32 %v6367_v4  ;;  %vm1595_vm0 = vweird.f32 %v4116_v23  ;;  %v1600_v42 = vand.u32 2147483648, %v6369_v20 }
 0x369   : > { %v6429_v44 = vadd.f32 1.0, %v4118_v39  ;;  %vm6431_vm7 = vmor %vm1579_vm14, %vm1580_vm13  ;;  %v1593_v10 = vadd.f32 %v4116_v23, %v1592_v35  ;;  %v1598_v7 = vand.u32 2147483647, %v6369_v20  ;;  %v1019_v17 = vsel %vm1018_vm4, %v6274_v29, %v1017_v1  ;;  %v383_v29 = vpop.f32.mrf.mxu0 }
 0x36a   : > { %v4120_v28 = vpop.eup %4119  ;;  %v1582_v4 = vsel %vm6431_vm7, %v4114_v52, %v1578_v45  ;;  %v1586_v62 = vor.u32 1.1754944e-38, %v1585_v0  ;;  %vm1594_vm2 = vweird.f32 %v6369_v20  ;;  %v1022_v58 = vsel %vm1020_vm9, %v1021_v57, %v1019_v17  ;;  %v6453_v20 = vpop.xlane.xlu2 %631 }
 0x36b   : > { %v6444_v11 = vadd.f32 1.0, %v4120_v28  ;;  %4121 = vrcp.f32 %v6429_v44  ;;  %vm1584_vm8 = vcmp.eq.f32.partialorder %v1583_v48, 8.507059e+37  ;;  %vm1596_vm15 = vmor %vm1594_vm2, %vm1595_vm0  ;;  %v836_v18 = vmul.f32 %v6318_v63, %v835_v3 }
 0x36c   : > { %v1587_v12 = vsel %vm1584_vm8, %v1586_v62, %v1582_v4  ;;  %v1597_v50 = vsel %vm1596_vm15, %v4116_v23, %v1593_v10  ;;  %v1601_v41 = vor.u32 1.1754944e-38, %v1600_v42  ;;  %v1170_v27 = vmul.f32 %v4572_v19, %v1022_v58 }
 0x36d   : > { %4123 = vrcp.f32 %v6444_v11  ;;  %vm1599_vm10 = vcmp.eq.f32.partialorder %v1598_v7, 8.507059e+37  ;;  %v1588_v9 = vmul.f32 %v1587_v12, %v383_v29  ;;  %vm838_vm3 = vcmp.eq.f32.partialorder %v6289_v33, inf }
 0x36e   : > { %v1602_v55 = vsel %vm1599_vm10, %v1601_v41, %v1597_v50  ;;  %4125 = vrsqrt.f32 %v6449_v60  ;;  %v1171_v54 = vmul.f32 %v4574_v21, %v1022_v58  ;;  %v6458_v46 = vadd.f32 1e-06, %v1170_v27 }
 0x36f   : > { %v1603_v63 = vmul.f32 %v1602_v55, %v496_v25  ;;  %v837_v24 = vmul.f32 %v836_v18, %v6289_v33  ;;  %v3249_v8 = vand.u32 2147483647, %v6429_v44  ;;  %v3251_v30 = vand.u32 2147483648, %v6429_v44 }
 0x370   : > { %v3687_v2 = vmul.f32 -1.442695, %v1588_v9  ;;  %4127 = vrsqrt.f32 %v6453_v20  ;;  %v3264_v53 = vand.u32 2147483647, %v6444_v11  ;;  %v6465_v31 = vadd.f32 1e-06, %v1171_v54 }
 0x371   : > { %v4122_v37 = vpop.eup %4121  ;;  %v3688_v34 = vmul.f32 -1.442695, %v1603_v63  ;;  %4129 = vrcp.f32 %v6458_v46  ;;  %vm840_vm11 = vcmp.eq.f32.partialorder %v6289_v33, 0.0  ;;  %v841_v52 = vand.u32 2147483648, %v6289_v33 }
 0x372   : > { %v3241_v5 = vmul.f32 %v4122_v37, %v6429_v44  ;;  %4131 = vpow2.f32 %v3687_v2  ;;  %v3266_v61 = vand.u32 2147483648, %v6444_v11  ;;  %v839_v22 = vsel %vm838_vm3, %v6289_v33, %v837_v24 }
 0x373   : > { %v4124_v40 = vpop.eup %4123  ;;  %4133 = vpow2.f32 %v3688_v34  ;;  %v1033_v23 = vand.u32 2147483648, %v6449_v60  ;;  %vm3245_vm4 = vweird.f32 %v6429_v44  ;;  %vm6479_vm5 = vcmp.eq.f32.partialorder %v3249_v8, 8.507059e+37 }
 0x374   : > { %v6476_v56 = vpop.eup %4125  ;;  %v3242_v49 = vsub.f32 1.0, %v3241_v5  ;;  %v3256_v13 = vmul.f32 %v4124_v40, %v6444_v11  ;;  %v3252_v16 = vor.u32 1.1754944e-38, %v3251_v30  ;;  %vm3260_vm6 = vweird.f32 %v6444_v11 }
 0x375   : > { %vm6485_vm9 = vcmp.eq.f32.partialorder %v3264_v53, 8.507059e+37  ;;  %4135 = vrcp.f32 %v6465_v31  ;;  %vm3246_vm1 = vweird.f32 %v4122_v37  ;;  %v842_v57 = vsel %vm840_vm11, %v841_v52, %v839_v22 }
 0x376   : > { %v6490_v36 = vpop.eup %4127  ;;  %v3243_v6 = vmul.f32 %v4122_v37, %v3242_v49  ;;  %v3257_v26 = vsub.f32 1.0, %v3256_v13  ;;  %v3267_v47 = vor.u32 1.1754944e-38, %v3266_v61  ;;  %v2063_v59 = vand.u32 2147483647, %v6458_v46  ;;  %vm3247_vm14 = vmor %vm3245_vm4, %vm3246_vm1  ;;  %v431_v49 = vpop.f32.mrf.mxu2 }
 0x377   : > { %v6494_v43 = vpop.eup %4129  ;;  %v1140_v14 = vmul.f32 %v4572_v19, %v842_v57  ;;  %v1024_v51 = vmul.f32 %v6476_v56, %v6449_v60  ;;  %vm3261_vm12 = vweird.f32 %v4124_v40  ;;  %vm2059_vm13 = vweird.f32 %v6458_v46 }
 0x378   : > { %v4132_v0 = vpop.eup %4131  ;;  %v3244_v48 = vadd.f32 %v4122_v37, %v3243_v6  ;;  %v3258_v35 = vmul.f32 %v4124_v40, %v3257_v26  ;;  %v2055_v1 = vmul.f32 %v6494_v43, %v6458_v46  ;;  %v2065_v39 = vand.u32 2147483648, %v6458_v46  ;;  %vm3262_vm0 = vmor %vm3260_vm6, %vm3261_vm12 }
 0x379   : > { %v4134_v33 = vpop.eup %4133  ;;  %v6506_v3 = vadd.f32 1.0, %v4132_v0  ;;  %v2078_v45 = vand.u32 2147483647, %v6465_v31  ;;  %v1141_v42 = vmul.f32 %v4574_v21, %v842_v57  ;;  %v2080_v4 = vand.u32 2147483648, %v6465_v31 }
 0x37a   : > { %v3248_v15 = vsel %vm3247_vm14, %v4122_v37, %v3244_v48  ;;  %v3259_v10 = vadd.f32 %v4124_v40, %v3258_v35  ;;  %v6511_v7 = vadd.f32 1.0, %v4134_v33  ;;  %v2056_v17 = vsub.f32 1.0, %v2055_v1 }
 0x37b   : > { %v6513_v28 = vpop.eup %4135  ;;  %v3253_v44 = vsel %vm6479_vm5, %v3252_v16, %v3248_v15  ;;  %4137 = vrcp.f32 %v6506_v3  ;;  %v6522_v62 = vadd.f32 1e-06, %v1140_v14  ;;  %vm6526_vm7 = vcmp.eq.f32.partialorder %v2063_v59, 8.507059e+37 }
 0x37c   : > { %v3263_v58 = vsel %vm3262_vm0, %v4124_v40, %v3259_v10  ;;  %3472 = vst [vmem:[%s4623_s15 + $0x1a0] sm:$0xff] %v3253_v44  ;;  %4139 = vrcp.f32 %v6511_v7  ;;  %vm2074_vm2 = vweird.f32 %v6465_v31  ;;  %v1025_v12 = vmul.f32 %v6476_v56, %v1024_v51 }
 0x37d   : > { %v3268_v11 = vsel %vm6485_vm9, %v3267_v47, %v3263_v58  ;;  %v2801_v50 = vand.u32 2147483648, %v6506_v3  ;;  %v2066_v41 = vor.u32 1.1754944e-38, %v2065_v39  ;;  %v6535_v27 = vadd.f32 1e-06, %v1141_v42  ;;  %v544_v39 = vpop.f32.mrf.mxu3 }
 0x37e   : > { %3473 = vst [vmem:[%s4623_s15 + $0x1a8] sm:$0xff] %v3268_v11  ;;  %v2799_v29 = vand.u32 2147483647, %v6506_v3  ;;  %v2057_v9 = vmul.f32 %v6494_v43, %v2056_v17  ;;  %vm2060_vm8 = vweird.f32 %v6494_v43  ;;  %v2070_v25 = vmul.f32 %v6513_v28, %v6465_v31 }
 0x37f   : > { %vm6543_vm15 = vcmp.eq.f32.partialorder %v2078_v45, 8.507059e+37  ;;  %v2814_v63 = vand.u32 2147483647, %v6511_v7  ;;  %v2816_v54 = vand.u32 2147483648, %v6511_v7  ;;  %v2081_v24 = vor.u32 1.1754944e-38, %v2080_v4  ;;  %vm2061_vm11 = vmor %vm2059_vm13, %vm2060_vm8 }
 0x380   : > { %4141 = vrcp.f32 %v6522_v62  ;;  %v2058_v8 = vadd.f32 %v6494_v43, %v2057_v9  ;;  %v2071_v30 = vsub.f32 1.0, %v2070_v25  ;;  %v1026_v2 = vmul.f32 0.5, %v1025_v12 }
 0x381   : > { %v6553_v37 = vmul.f32 %v6490_v36, %v6453_v20  ;;  %v4138_v53 = vpop.eup %4137  ;;  %vm2795_vm10 = vweird.f32 %v6506_v3  ;;  %v2802_v34 = vor.u32 1.1754944e-38, %v2801_v50  ;;  %vm2810_vm3 = vweird.f32 %v6511_v7 }
 0x382   : > { %4143 = vrcp.f32 %v6535_v27  ;;  %v4140_v5 = vpop.eup %4139  ;;  %v2791_v52 = vmul.f32 %v4138_v53, %v6506_v3  ;;  %vm6563_vm4 = vcmp.eq.f32.partialorder %v2799_v29, 8.507059e+37  ;;  %v2062_v61 = vsel %vm2061_vm11, %v6494_v43, %v2058_v8 }
 0x383   : > { %v2072_v22 = vmul.f32 %v6513_v28, %v2071_v30  ;;  %vm2075_vm5 = vweird.f32 %v6513_v28  ;;  %vm1030_vm6 = vcmp.eq.f32.partialorder %v6449_v60, inf  ;;  %v2806_v46 = vmul.f32 %v4140_v5, %v6511_v7 }
 0x384   : > { %vm6572_vm9 = vcmp.eq.f32.partialorder %v2814_v63, 8.507059e+37  ;;  %v2817_v13 = vor.u32 1.1754944e-38, %v2816_v54  ;;  %v2067_v16 = vsel %vm6526_vm7, %v2066_v41, %v2062_v61  ;;  %v1613_v32 = vand.u32 2147483647, %v6522_v62  ;;  %vm2076_vm14 = vmor %vm2074_vm2, %vm2075_vm5  ;;  %v6617_v54 = vpop.xlane.xlu2 %679 }
 0x385   : > { %vm1032_vm1 = vcmp.eq.f32.partialorder %v6449_v60, 0.0  ;;  %v2792_v6 = vsub.f32 1.0, %v2791_v52  ;;  %v2068_v26 = vmul.f32 %v2067_v16, %v431_v49  ;;  %v2073_v57 = vadd.f32 %v6513_v28, %v2072_v22 }
 0x386   : > { %vm1609_vm12 = vweird.f32 %v6522_v62  ;;  %v1615_v43 = vand.u32 2147483648, %v6522_v62  ;;  %v4142_v47 = vpop.eup %4141  ;;  %vm2796_vm13 = vweird.f32 %v4138_v53  ;;  %v2807_v59 = vsub.f32 1.0, %v2806_v46  ;;  %v499_v46 = vpop.f32.mrf.mxu1 }
 0x387   : > { %v1628_v14 = vand.u32 2147483647, %v6535_v27  ;;  %v1027_v51 = vsub.f32 1.5, %v1026_v2  ;;  %v2793_v0 = vmul.f32 %v4138_v53, %v2792_v6  ;;  %v2077_v48 = vsel %vm2076_vm14, %v6513_v28, %v2073_v57  ;;  %vm2797_vm7 = vmor %vm2795_vm10, %vm2796_vm13  ;;  %v386_v2 = vpop.f32.mrf.mxu0 }
 0x388   : > { %v3719_v35 = vmul.f32 -1.442695, %v2068_v26  ;;  %v1605_v1 = vmul.f32 %v4142_v47, %v6522_v62  ;;  %v4144_v33 = vpop.eup %4143  ;;  %v2808_v45 = vmul.f32 %v4140_v5, %v2807_v59  ;;  %vm2811_vm0 = vweird.f32 %v4140_v5 }
 0x389   : > { %v2082_v42 = vsel %vm6543_vm15, %v2081_v24, %v2077_v48  ;;  %v1028_v15 = vmul.f32 %v6476_v56, %v1027_v51  ;;  %v2794_v31 = vadd.f32 %v4138_v53, %v2793_v0  ;;  %v1620_v44 = vmul.f32 %v4144_v33, %v6535_v27  ;;  %vm2812_vm2 = vmor %vm2810_vm3, %vm2811_vm0 }
 0x38a   : > { %v2083_v10 = vmul.f32 %v2082_v42, %v544_v39  ;;  %4145 = vpow2.f32 %v3719_v35  ;;  %v1606_v17 = vsub.f32 1.0, %v1605_v1  ;;  %v2809_v28 = vadd.f32 %v4140_v5, %v2808_v45  ;;  %v547_v1 = vpop.f32.mrf.mxu3 }
 0x38b   : > { %v1630_v4 = vand.u32 2147483648, %v6535_v27  ;;  %v1029_v58 = vmul.f32 %v1028_v15, %v6449_v60  ;;  %v2798_v18 = vsel %vm2797_vm7, %v4138_v53, %v2794_v31  ;;  %vm1610_vm8 = vweird.f32 %v4142_v47 }
 0x38c   : > { %v3720_v56 = vmul.f32 -1.442695, %v2083_v10  ;;  %v1607_v12 = vmul.f32 %v4142_v47, %v1606_v17  ;;  %v2803_v11 = vsel %vm6563_vm4, %v2802_v34, %v2798_v18  ;;  %v2813_v3 = vsel %vm2812_vm2, %v4140_v5, %v2809_v28  ;;  %vm1611_vm15 = vmor %vm1609_vm12, %vm1610_vm8 }
 0x38d   : > { %v1621_v50 = vsub.f32 1.0, %v1620_v44  ;;  %v1031_v41 = vsel %vm1030_vm6, %v6449_v60, %v1029_v58  ;;  %3442 = vst [vmem:[%s4623_s15 + $0xb0] sm:$0xff] %v2803_v11  ;;  %v2818_v29 = vsel %vm6572_vm9, %v2817_v13, %v2813_v3  ;;  %vm1614_vm10 = vcmp.eq.f32.partialorder %v1613_v32, 8.507059e+37 }
 0x38e   : > { %4147 = vpow2.f32 %v3720_v56  ;;  %v1608_v9 = vadd.f32 %v4142_v47, %v1607_v12  ;;  %v1034_v7 = vsel %vm1032_vm1, %v1033_v23, %v1031_v41  ;;  %3443 = vst [vmem:[%s4623_s15 + $0xb8] sm:$0xff] %v2818_v29  ;;  %v1616_v25 = vor.u32 1.1754944e-38, %v1615_v43 }
 0x38f   : > { %v1622_v55 = vmul.f32 %v4144_v33, %v1621_v50  ;;  %v1172_v63 = vmul.f32 %v4572_v19, %v1034_v7  ;;  %vm1625_vm3 = vweird.f32 %v4144_v33  ;;  %v1173_v30 = vmul.f32 %v4574_v21, %v1034_v7 }
 0x390   : > { %v4146_v24 = vpop.eup %4145  ;;  %v1612_v8 = vsel %vm1611_vm15, %v4142_v47, %v1608_v9  ;;  %v845_v60 = vmul.f32 %v6490_v36, %v6553_v37  ;;  %vm1624_vm11 = vweird.f32 %v6535_v27  ;;  %4149 = vrsqrt.f32 %v6617_v54 }
 0x391   : > { %v6622_v23 = vadd.f32 1.0, %v4146_v24  ;;  %v1617_v62 = vsel %vm1614_vm10, %v1616_v25, %v1612_v8  ;;  %v1623_v53 = vadd.f32 %v4144_v33, %v1622_v55  ;;  %v6624_v34 = vadd.f32 1e-06, %v1172_v63  ;;  %vm1626_vm4 = vmor %vm1624_vm11, %vm1625_vm3 }
 0x392   : > { %v1618_v5 = vmul.f32 %v1617_v62, %v386_v2  ;;  %vm1629_vm5 = vcmp.eq.f32.partialorder %v1628_v14, 8.507059e+37  ;;  %v1631_v52 = vor.u32 1.1754944e-38, %v1630_v4  ;;  %v6629_v22 = vadd.f32 1e-06, %v1173_v30 }
 0x393   : > { %4151 = vrcp.f32 %v6622_v23  ;;  %v1627_v37 = vsel %vm1626_vm4, %v4144_v33, %v1623_v53  ;;  %v846_v13 = vmul.f32 0.5, %v845_v60  ;;  %v3279_v16 = vand.u32 2147483647, %v6622_v23 }
 0x394   : > { %v4148_v40 = vpop.eup %4147  ;;  %v3689_v61 = vmul.f32 -1.442695, %v1618_v5  ;;  %4153 = vrcp.f32 %v6624_v34  ;;  %v1632_v38 = vsel %vm1629_vm5, %v1631_v52, %v1627_v37  ;;  %v3281_v32 = vand.u32 2147483648, %v6622_v23 }
 0x395   : > { %v6632_v49 = vadd.f32 1.0, %v4148_v40  ;;  %v1633_v27 = vmul.f32 %v1632_v38, %v499_v46  ;;  %v2093_v57 = vand.u32 2147483647, %v6624_v34  ;;  %v2095_v43 = vand.u32 2147483648, %v6624_v34  ;;  %v434_v38 = vpop.f32.mrf.mxu2 }
 0x396   : > { %4155 = vpow2.f32 %v3689_v61  ;;  %v6637_v6 = vpop.eup %4149  ;;  %vm3275_vm6 = vweird.f32 %v6622_v23  ;;  %v847_v59 = vsub.f32 1.5, %v846_v13  ;;  %v853_v14 = vand.u32 2147483648, %v6453_v20 }
 0x397   : > { %4157 = vrcp.f32 %v6632_v49  ;;  %v3690_v26 = vmul.f32 -1.442695, %v1633_v27  ;;  %v3294_v48 = vand.u32 2147483647, %v6632_v49  ;;  %v3296_v35 = vand.u32 2147483648, %v6632_v49 }
 0x398   : > { %4159 = vrcp.f32 %v6629_v22  ;;  %vm6647_vm9 = vcmp.eq.f32.partialorder %v3279_v16, 8.507059e+37  ;;  %v3282_v33 = vor.u32 1.1754944e-38, %v3281_v32  ;;  %vm2089_vm1 = vweird.f32 %v6624_v34 }
 0x399   : > { %v4152_v47 = vpop.eup %4151  ;;  %4161 = vpow2.f32 %v3690_v26  ;;  %vm3290_vm12 = vweird.f32 %v6632_v49  ;;  %vm6654_vm13 = vcmp.eq.f32.partialorder %v2093_v57, 8.507059e+37  ;;  %v2096_v31 = vor.u32 1.1754944e-38, %v2095_v43  ;;  %v6717_v43 = vpop.xlane.xlu1 %634 }
 0x39a   : > { %v4154_v51 = vpop.eup %4153  ;;  %v3271_v0 = vmul.f32 %v4152_v47, %v6622_v23  ;;  %vm850_vm14 = vcmp.eq.f32.partialorder %v6453_v20, inf  ;;  %v848_v44 = vmul.f32 %v6490_v36, %v847_v59  ;;  %v1036_v4 = vmul.f32 %v6637_v6, %v6617_v54 }
 0x39b   : > { %v2085_v39 = vmul.f32 %v4154_v51, %v6624_v34  ;;  %vm3276_vm0 = vweird.f32 %v4152_v47  ;;  %vm6667_vm7 = vcmp.eq.f32.partialorder %v3294_v48, 8.507059e+37  ;;  %v3297_v11 = vor.u32 1.1754944e-38, %v3296_v35 }
 0x39c   : > { %v4156_v45 = vpop.eup %4155  ;;  %v3272_v42 = vsub.f32 1.0, %v3271_v0  ;;  %vm852_vm2 = vcmp.eq.f32.partialorder %v6453_v20, 0.0  ;;  %vm2090_vm8 = vweird.f32 %v4154_v51  ;;  %vm2104_vm15 = vweird.f32 %v6629_v22  ;;  %vm3277_vm10 = vmor %vm3275_vm6, %vm3276_vm0 }
 0x39d   : > { %v4158_v10 = vpop.eup %4157  ;;  %v6659_v17 = vadd.f32 1.0, %v4156_v45  ;;  %v2086_v28 = vsub.f32 1.0, %v2085_v39  ;;  %v2108_v36 = vand.u32 2147483647, %v6629_v22  ;;  %v2110_v3 = vand.u32 2147483648, %v6629_v22  ;;  %vm2091_vm11 = vmor %vm2089_vm1, %vm2090_vm8 }
 0x39e   : > { %v6664_v58 = vpop.eup %4159  ;;  %v3273_v18 = vmul.f32 %v4152_v47, %v3272_v42  ;;  %v3286_v56 = vmul.f32 %v4158_v10, %v6632_v49  ;;  %vm3291_vm3 = vweird.f32 %v4158_v10  ;;  %v849_v55 = vmul.f32 %v848_v44, %v6453_v20 }
 0x39f   : > { %4163 = vrcp.f32 %v6659_v17  ;;  %v4162_v50 = vpop.eup %4161  ;;  %v2087_v9 = vmul.f32 %v4154_v51, %v2086_v28  ;;  %v2100_v7 = vmul.f32 %v6664_v58, %v6629_v22  ;;  %v1037_v63 = vmul.f32 %v6637_v6, %v1036_v4  ;;  %vm3292_vm5 = vmor %vm3290_vm12, %vm3291_vm3 }
 0x3a0   : > { %v3274_v41 = vadd.f32 %v4152_v47, %v3273_v18  ;;  %v3287_v29 = vsub.f32 1.0, %v3286_v56  ;;  %v6681_v25 = vadd.f32 1.0, %v4162_v50  ;;  %vm6691_vm4 = vcmp.eq.f32.partialorder %v2108_v36, 8.507059e+37 }
 0x3a1   : > { %v2088_v30 = vadd.f32 %v4154_v51, %v2087_v9  ;;  %v2101_v60 = vsub.f32 1.0, %v2100_v7  ;;  %v2111_v62 = vor.u32 1.1754944e-38, %v2110_v3  ;;  %v2829_v5 = vand.u32 2147483647, %v6659_v17  ;;  %v6758_v7 = vpop.xlane.xlu1 %682 }
 0x3a2   : > { %v3278_v24 = vsel %vm3277_vm10, %v4152_v47, %v3274_v41  ;;  %v3288_v8 = vmul.f32 %v4158_v10, %v3287_v29  ;;  %4165 = vrcp.f32 %v6681_v25  ;;  %vm2105_vm6 = vweird.f32 %v6664_v58 }
 0x3a3   : > { %v3283_v2 = vsel %vm6647_vm9, %v3282_v33, %v3278_v24  ;;  %v2092_v52 = vsel %vm2091_vm11, %v4154_v51, %v2088_v30  ;;  %v2102_v40 = vmul.f32 %v6664_v58, %v2101_v60  ;;  %v851_v37 = vsel %vm850_vm14, %v6453_v20, %v849_v55  ;;  %vm2106_vm12 = vmor %vm2104_vm15, %vm2105_vm6 }
 0x3a4   : > { %v3289_v53 = vadd.f32 %v4158_v10, %v3288_v8  ;;  %3474 = vst [vmem:[%s4623_s15 + $0x1b0] sm:$0xff] %v3283_v2  ;;  %v2097_v34 = vsel %vm6654_vm13, %v2096_v31, %v2092_v52  ;;  %v1038_v46 = vmul.f32 0.5, %v1037_v63  ;;  %vm2825_vm9 = vweird.f32 %v6659_v17 }
 0x3a5   : > { %v4164_v61 = vpop.eup %4163  ;;  %v2831_v49 = vand.u32 2147483648, %v6659_v17  ;;  %v2098_v32 = vmul.f32 %v2097_v34, %v434_v38  ;;  %v2103_v26 = vadd.f32 %v6664_v58, %v2102_v40  ;;  %v854_v57 = vsel %vm852_vm2, %v853_v14, %v851_v37 }
 0x3a6   : > { %v3293_v13 = vsel %vm3292_vm5, %v4158_v10, %v3289_v53  ;;  %v2821_v27 = vmul.f32 %v4164_v61, %v6659_v17  ;;  %vm6720_vm1 = vcmp.eq.f32.partialorder %v2829_v5, 8.507059e+37  ;;  %v1142_v51 = vmul.f32 %v4572_v19, %v854_v57 }
 0x3a7   : > { %v3298_v16 = vsel %vm6667_vm7, %v3297_v11, %v3293_v13  ;;  %v1143_v0 = vmul.f32 %v4574_v21, %v854_v57  ;;  %vm2826_vm13 = vweird.f32 %v4164_v61  ;;  %v2107_v20 = vsel %vm2106_vm12, %v6664_v58, %v2103_v26 }
 0x3a8   : > { %3475 = vst [vmem:[%s4623_s15 + $0x1b8] sm:$0xff] %v3298_v16  ;;  %v2822_v47 = vsub.f32 1.0, %v2821_v27  ;;  %v4166_v48 = vpop.eup %4165  ;;  %v3721_v14 = vmul.f32 -1.442695, %v2098_v32  ;;  %v1039_v35 = vsub.f32 1.5, %v1038_v46  ;;  %v2112_v45 = vsel %vm6691_vm4, %v2111_v62, %v2107_v20  ;;  %vm2827_vm14 = vmor %vm2825_vm9, %vm2826_vm13 }
 0x3a9   : > { %v2836_v39 = vmul.f32 %v4166_v48, %v6681_v25  ;;  %4167 = vrsqrt.f32 %v6717_v43  ;;  %v2113_v22 = vmul.f32 %v2112_v45, %v547_v1  ;;  %v6735_v42 = vadd.f32 1e-06, %v1142_v51 }
 0x3aa   : > { %v2823_v33 = vmul.f32 %v4164_v61, %v2822_v47  ;;  %4169 = vpow2.f32 %v3721_v14  ;;  %v6737_v15 = vadd.f32 1e-06, %v1143_v0  ;;  %v2832_v10 = vor.u32 1.1754944e-38, %v2831_v49 }
 0x3ab   : > { %v2837_v28 = vsub.f32 1.0, %v2836_v39  ;;  %v2844_v44 = vand.u32 2147483647, %v6681_v25  ;;  %v2846_v4 = vand.u32 2147483648, %v6681_v25  ;;  %v3722_v58 = vmul.f32 -1.442695, %v2113_v22 }
 0x3ac   : > { %v2824_v31 = vadd.f32 %v4164_v61, %v2823_v33  ;;  %4171 = vrcp.f32 %v6735_v42  ;;  %v1040_v18 = vmul.f32 %v6637_v6, %v1039_v35  ;;  %vm2841_vm0 = vweird.f32 %v4166_v48 }
 0x3ad   : > { %v2838_v12 = vmul.f32 %v4166_v48, %v2837_v28  ;;  %4173 = vrcp.f32 %v6737_v15  ;;  %vm2840_vm7 = vweird.f32 %v6681_v25  ;;  %v2847_v50 = vor.u32 1.1754944e-38, %v2846_v4 }
 0x3ae   : > { %v2828_v56 = vsel %vm2827_vm14, %v4164_v61, %v2824_v31  ;;  %4175 = vpow2.f32 %v3722_v58  ;;  %vm2842_vm2 = vmor %vm2840_vm7, %vm2841_vm0  ;;  %v1643_v6 = vand.u32 2147483647, %v6735_v42  ;;  %v1041_v41 = vmul.f32 %v1040_v18, %v6617_v54 }
 0x3af   : > { %v2833_v11 = vsel %vm6720_vm1, %v2832_v10, %v2828_v56  ;;  %v6749_v36 = vpop.eup %4167  ;;  %v2839_v17 = vadd.f32 %v4166_v48, %v2838_v12  ;;  %vm2845_vm8 = vcmp.eq.f32.partialorder %v2844_v44, 8.507059e+37  ;;  %vm1042_vm15 = vcmp.eq.f32.partialorder %v6617_v54, inf  ;;  %v389_v10 = vpop.f32.mrf.mxu0 }
 0x3b0   : > { %3444 = vst [vmem:[%s4623_s15 + $0xc0] sm:$0xff] %v2833_v11  ;;  %v4170_v3 = vpop.eup %4169  ;;  %v1043_v25 = vsel %vm1042_vm15, %v6617_v54, %v1041_v41  ;;  %vm1044_vm10 = vcmp.eq.f32.partialorder %v6617_v54, 0.0  ;;  %v1045_v24 = vand.u32 2147483648, %v6617_v54  ;;  %vm1639_vm3 = vweird.f32 %v6735_v42  ;;  %v502_v56 = vpop.f32.mrf.mxu1 }
 0x3b1   : > { %v2843_v29 = vsel %vm2842_vm2, %v4166_v48, %v2839_v17  ;;  %v6755_v9 = vadd.f32 1.0, %v4170_v3  ;;  %v1645_v30 = vand.u32 2147483648, %v6735_v42  ;;  %v856_v60 = vmul.f32 %v6749_v36, %v6717_v43 }
 0x3b2   : > { %v4172_v55 = vpop.eup %4171  ;;  %v2848_v63 = vsel %vm2845_vm8, %v2847_v50, %v2843_v29  ;;  %vm6770_vm11 = vcmp.eq.f32.partialorder %v1643_v6, 8.507059e+37  ;;  %vm1654_vm4 = vweird.f32 %v6737_v15  ;;  %v1658_v52 = vand.u32 2147483647, %v6737_v15 }
 0x3b3   : > { %v4174_v8 = vpop.eup %4173  ;;  %3445 = vst [vmem:[%s4623_s15 + $0xc8] sm:$0xff] %v2848_v63  ;;  %4177 = vrcp.f32 %v6755_v9  ;;  %v1635_v23 = vmul.f32 %v4172_v55, %v6735_v42  ;;  %v1660_v40 = vand.u32 2147483648, %v6737_v15  ;;  %v1046_v61 = vsel %vm1044_vm10, %v1045_v24, %v1043_v25 }
 0x3b4   : > { %v4176_v2 = vpop.eup %4175  ;;  %v1650_v53 = vmul.f32 %v4174_v8, %v6737_v15  ;;  %4179 = vrsqrt.f32 %v6758_v7  ;;  %v1174_v46 = vmul.f32 %v4572_v19, %v1046_v61  ;;  %v1175_v38 = vmul.f32 %v4574_v21, %v1046_v61 }
 0x3b5   : > { %v6777_v5 = vadd.f32 1.0, %v4176_v2  ;;  %v1636_v34 = vsub.f32 1.0, %v1635_v23  ;;  %vm1640_vm5 = vweird.f32 %v4172_v55  ;;  %vm1655_vm6 = vweird.f32 %v4174_v8 }
 0x3b6   : > { %v1651_v37 = vsub.f32 1.0, %v1650_v53  ;;  %v857_v13 = vmul.f32 %v6749_v36, %v856_v60  ;;  %v6787_v16 = vadd.f32 1e-06, %v1174_v46  ;;  %v6789_v32 = vadd.f32 1e-06, %v1175_v38  ;;  %vm6803_vm1 = vmor %vm1639_vm3, %vm1640_vm5 }
 0x3b7   : > { %4181 = vrcp.f32 %v6777_v5  ;;  %v1637_v27 = vmul.f32 %v4172_v55, %v1636_v34  ;;  %v3309_v26 = vand.u32 2147483647, %v6755_v9  ;;  %v1646_v57 = vor.u32 1.1754944e-38, %v1645_v30  ;;  %vm1656_vm13 = vmor %vm1654_vm4, %vm1655_vm6 }
 0x3b8   : > { %v1652_v49 = vmul.f32 %v4174_v8, %v1651_v37  ;;  %vm6792_vm9 = vcmp.eq.f32.partialorder %v1658_v52, 8.507059e+37  ;;  %v865_v59 = vand.u32 2147483648, %v6717_v43  ;;  %v1661_v35 = vor.u32 1.1754944e-38, %v1660_v40 }
 0x3b9   : > { %v4178_v54 = vpop.eup %4177  ;;  %v1638_v48 = vadd.f32 %v4172_v55, %v1637_v27  ;;  %vm3305_vm12 = vweird.f32 %v6755_v9  ;;  %v3311_v1 = vand.u32 2147483648, %v6755_v9  ;;  %4183 = vrcp.f32 %v6787_v16 }
 0x3ba   : > { %v6797_v51 = vpop.eup %4179  ;;  %v3301_v0 = vmul.f32 %v4178_v54, %v6755_v9  ;;  %v1653_v14 = vadd.f32 %v4174_v8, %v1652_v49  ;;  %v858_v33 = vmul.f32 0.5, %v857_v13  ;;  %4185 = vrcp.f32 %v6789_v32 }
 0x3bb   : > { %v1642_v45 = vsel %vm6803_vm1, %v4172_v55, %v1638_v48  ;;  %vm6816_vm14 = vcmp.eq.f32.partialorder %v3309_v26, 8.507059e+37  ;;  %v1048_v44 = vmul.f32 %v6797_v51, %v6758_v7  ;;  %vm3306_vm0 = vweird.f32 %v4178_v54 }
 0x3bc   : > { %v3302_v39 = vsub.f32 1.0, %v3301_v0  ;;  %v1657_v22 = vsel %vm1656_vm13, %v4174_v8, %v1653_v14  ;;  %v1647_v15 = vsel %vm6770_vm11, %v1646_v57, %v1642_v45  ;;  %v3312_v12 = vor.u32 1.1754944e-38, %v3311_v1  ;;  %vm3307_vm8 = vmor %vm3305_vm12, %vm3306_vm0 }
 0x3bd   : > { %v4182_v42 = vpop.eup %4181  ;;  %v1662_v28 = vsel %vm6792_vm9, %v1661_v35, %v1657_v22  ;;  %v1648_v18 = vmul.f32 %v1647_v15, %v389_v10  ;;  %v3324_v11 = vand.u32 2147483647, %v6777_v5  ;;  %v3326_v17 = vand.u32 2147483648, %v6777_v5  ;;  %v6880_v22 = vpop.xlane.xlu2 %637 }
 0x3be   : > { %v3303_v4 = vmul.f32 %v4178_v54, %v3302_v39  ;;  %v3316_v58 = vmul.f32 %v4182_v42, %v6777_v5  ;;  %v1663_v3 = vmul.f32 %v1662_v28, %v502_v56  ;;  %vm862_vm7 = vcmp.eq.f32.partialorder %v6717_v43, inf  ;;  %v550_v15 = vpop.f32.mrf.mxu3 }
 0x3bf   : > { %v3691_v41 = vmul.f32 -1.442695, %v1648_v18  ;;  %v859_v29 = vsub.f32 1.5, %v858_v33  ;;  %vm864_vm2 = vcmp.eq.f32.partialorder %v6717_v43, 0.0  ;;  %v4184_v55 = vpop.eup %4183  ;;  %vm3320_vm15 = vweird.f32 %v6777_v5 }
 0x3c0   : > { %v3304_v50 = vadd.f32 %v4178_v54, %v3303_v4  ;;  %v3317_v6 = vsub.f32 1.0, %v3316_v58  ;;  %vm3321_vm10 = vweird.f32 %v4182_v42  ;;  %v3692_v63 = vmul.f32 -1.442695, %v1663_v3  ;;  %v4186_v24 = vpop.eup %4185 }
 0x3c1   : > { %v1049_v25 = vmul.f32 %v6797_v51, %v1048_v44  ;;  %4187 = vpow2.f32 %v3691_v41  ;;  %v2115_v60 = vmul.f32 %v4184_v55, %v6787_v16  ;;  %vm6839_vm3 = vcmp.eq.f32.partialorder %v3324_v11, 8.507059e+37  ;;  %vm3322_vm11 = vmor %vm3320_vm15, %vm3321_vm10 }
 0x3c2   : > { %v3308_v8 = vsel %vm3307_vm8, %v4178_v54, %v3304_v50  ;;  %v3318_v30 = vmul.f32 %v4182_v42, %v3317_v6  ;;  %4189 = vpow2.f32 %v3692_v63  ;;  %v2130_v9 = vmul.f32 %v4186_v24, %v6789_v32 }
 0x3c3   : > { %v3313_v2 = vsel %vm6816_vm14, %v3312_v12, %v3308_v8  ;;  %v3327_v53 = vor.u32 1.1754944e-38, %v3326_v17  ;;  %v2116_v52 = vsub.f32 1.0, %v2115_v60  ;;  %v860_v40 = vmul.f32 %v6749_v36, %v859_v29 }
 0x3c4   : > { %v3319_v62 = vadd.f32 %v4182_v42, %v3318_v30  ;;  %3476 = vst [vmem:[%s4623_s15 + $0x1c0] sm:$0xff] %v3313_v2  ;;  %vm2119_vm4 = vweird.f32 %v6787_v16  ;;  %v2123_v61 = vand.u32 2147483647, %v6787_v16  ;;  %v2131_v34 = vsub.f32 1.0, %v2130_v9 }
 0x3c5   : > { %v1050_v37 = vmul.f32 0.5, %v1049_v25  ;;  %v2117_v38 = vmul.f32 %v4184_v55, %v2116_v52  ;;  %vm2120_vm5 = vweird.f32 %v4184_v55  ;;  %v861_v13 = vmul.f32 %v860_v40, %v6717_v43  ;;  %v6921_v52 = vpop.xlane.xlu2 %685 }
 0x3c6   : > { %v3323_v46 = vsel %vm3322_vm11, %v4182_v42, %v3319_v62  ;;  %v2125_v36 = vand.u32 2147483648, %v6787_v16  ;;  %v2132_v49 = vmul.f32 %v4186_v24, %v2131_v34  ;;  %v2138_v5 = vand.u32 2147483647, %v6789_v32  ;;  %vm6865_vm9 = vmor %vm2119_vm4, %vm2120_vm5 }
 0x3c7   : > { %v3328_v27 = vsel %vm6839_vm3, %v3327_v53, %v3323_v46  ;;  %v4188_v54 = vpop.eup %4187  ;;  %v2118_v26 = vadd.f32 %v4184_v55, %v2117_v38  ;;  %vm2135_vm6 = vweird.f32 %v4186_v24  ;;  %v2140_v57 = vand.u32 2147483648, %v6789_v32 }
 0x3c8   : > { %3477 = vst [vmem:[%s4623_s15 + $0x1c8] sm:$0xff] %v3328_v27  ;;  %v863_v47 = vsel %vm862_vm7, %v6717_v43, %v861_v13  ;;  %v4190_v0 = vpop.eup %4189  ;;  %v6861_v48 = vadd.f32 1.0, %v4188_v54  ;;  %v2133_v14 = vadd.f32 %v4186_v24, %v2132_v49  ;;  %v1051_v1 = vsub.f32 1.5, %v1050_v37 }
 0x3c9   : > { %v866_v35 = vsel %vm864_vm2, %v865_v59, %v863_v47  ;;  %v6873_v33 = vadd.f32 1.0, %v4190_v0  ;;  %v2122_v39 = vsel %vm6865_vm9, %v4184_v55, %v2118_v26  ;;  %v2126_v45 = vor.u32 1.1754944e-38, %v2125_v36  ;;  %v437_v59 = vpop.f32.mrf.mxu2 }
 0x3ca   : > { %4191 = vrcp.f32 %v6861_v48  ;;  %vm2134_vm1 = vweird.f32 %v6789_v32  ;;  %v1144_v16 = vmul.f32 %v4572_v19, %v866_v35  ;;  %vm2124_vm12 = vcmp.eq.f32.partialorder %v2123_v61, 8.507059e+37 }
 0x3cb   : > { %4193 = vrcp.f32 %v6873_v33  ;;  %vm2136_vm13 = vmor %vm2134_vm1, %vm2135_vm6  ;;  %vm2139_vm14 = vcmp.eq.f32.partialorder %v2138_v5, 8.507059e+37  ;;  %v2141_v43 = vor.u32 1.1754944e-38, %v2140_v57  ;;  %vm1054_vm0 = vcmp.eq.f32.partialorder %v6758_v7, inf }
 0x3cc   : > { %v2127_v42 = vsel %vm2124_vm12, %v2126_v45, %v2122_v39  ;;  %v2137_v31 = vsel %vm2136_vm13, %v4186_v24, %v2133_v14  ;;  %v1145_v10 = vmul.f32 %v4574_v21, %v866_v35  ;;  %v1052_v32 = vmul.f32 %v6797_v51, %v1051_v1 }
 0x3cd   : > { %v2128_v28 = vmul.f32 %v2127_v42, %v437_v59  ;;  %v2142_v44 = vsel %vm2139_vm14, %v2141_v43, %v2137_v31  ;;  %vm1056_vm7 = vcmp.eq.f32.partialorder %v6758_v7, 0.0  ;;  %4195 = vrsqrt.f32 %v6880_v22 }
 0x3ce   : > { %v2859_v4 = vand.u32 2147483647, %v6861_v48  ;;  %v2143_v58 = vmul.f32 %v2142_v44, %v550_v15  ;;  %v6890_v18 = vadd.f32 1e-06, %v1144_v16  ;;  %v1057_v56 = vand.u32 2147483648, %v6758_v7 }
 0x3cf   : > { %v2861_v12 = vand.u32 2147483648, %v6861_v48  ;;  %v2874_v11 = vand.u32 2147483647, %v6873_v33  ;;  %v3723_v17 = vmul.f32 -1.442695, %v2128_v28  ;;  %v877_v51 = vand.u32 2147483648, %v6880_v22 }
 0x3d0   : > { %v4192_v3 = vpop.eup %4191  ;;  %v3724_v50 = vmul.f32 -1.442695, %v2143_v58  ;;  %4197 = vrcp.f32 %v6890_v18  ;;  %v6897_v6 = vadd.f32 1e-06, %v1145_v10  ;;  %v1053_v41 = vmul.f32 %v1052_v32, %v6758_v7 }
 0x3d1   : > { %v4194_v29 = vpop.eup %4193  ;;  %v2851_v55 = vmul.f32 %v4192_v3, %v6861_v48  ;;  %vm2855_vm2 = vweird.f32 %v6861_v48  ;;  %v2876_v63 = vand.u32 2147483648, %v6873_v33  ;;  %4199 = vpow2.f32 %v3723_v17 }
 0x3d2   : > { %vm6903_vm8 = vcmp.eq.f32.partialorder %v2859_v4, 8.507059e+37  ;;  %v2866_v24 = vmul.f32 %v4194_v29, %v6873_v33  ;;  %vm2870_vm15 = vweird.f32 %v6873_v33  ;;  %4201 = vpow2.f32 %v3724_v50 }
 0x3d3   : > { %v6909_v8 = vpop.eup %4195  ;;  %v2852_v30 = vsub.f32 1.0, %v2851_v55  ;;  %v2862_v60 = vor.u32 1.1754944e-38, %v2861_v12  ;;  %vm6911_vm10 = vcmp.eq.f32.partialorder %v2874_v11, 8.507059e+37  ;;  %v1673_v23 = vand.u32 2147483647, %v6890_v18 }
 0x3d4   : > { %v2867_v9 = vsub.f32 1.0, %v2866_v24  ;;  %v1675_v62 = vand.u32 2147483648, %v6890_v18  ;;  %4203 = vrcp.f32 %v6897_v6  ;;  %v1055_v53 = vsel %vm1054_vm0, %v6758_v7, %v1053_v41 }
 0x3d5   : > { %v2853_v40 = vmul.f32 %v4192_v3, %v2852_v30  ;;  %vm2856_vm3 = vweird.f32 %v4192_v3  ;;  %v2877_v61 = vor.u32 1.1754944e-38, %v2876_v63  ;;  %v1058_v34 = vsel %vm1056_vm7, %v1057_v56, %v1055_v53 }
 0x3d6   : > { %v6925_v37 = vpop.eup %4197  ;;  %v2868_v46 = vmul.f32 %v4194_v29, %v2867_v9  ;;  %vm2871_vm11 = vweird.f32 %v4194_v29  ;;  %v1176_v38 = vmul.f32 %v4572_v19, %v1058_v34  ;;  %v868_v13 = vmul.f32 %v6909_v8, %v6880_v22  ;;  %vm2857_vm5 = vmor %vm2855_vm2, %vm2856_vm3 }
 0x3d7   : > { %v4200_v27 = vpop.eup %4199  ;;  %v2854_v36 = vadd.f32 %v4192_v3, %v2853_v40  ;;  %v1665_v49 = vmul.f32 %v6925_v37, %v6890_v18  ;;  %vm1669_vm4 = vweird.f32 %v6890_v18  ;;  %4205 = vrsqrt.f32 %v6921_v52  ;;  %vm2872_vm9 = vmor %vm2870_vm15, %vm2871_vm11  ;;  %v392_v18 = vpop.f32.mrf.mxu0 }
 0x3d8   : > { %v4202_v7 = vpop.eup %4201  ;;  %v2869_v5 = vadd.f32 %v4194_v29, %v2868_v46  ;;  %v6936_v54 = vadd.f32 1.0, %v4200_v27  ;;  %vm6938_vm6 = vcmp.eq.f32.partialorder %v1673_v23, 8.507059e+37  ;;  %v1676_v57 = vor.u32 1.1754944e-38, %v1675_v62 }
 0x3d9   : > { %v1177_v47 = vmul.f32 %v4574_v21, %v1058_v34  ;;  %v2858_v0 = vsel %vm2857_vm5, %v4192_v3, %v2854_v36  ;;  %v6946_v20 = vadd.f32 1.0, %v4202_v7  ;;  %v1666_v48 = vsub.f32 1.0, %v1665_v49 }
 0x3da   : > { %v1688_v14 = vand.u32 2147483647, %v6897_v6  ;;  %v6949_v35 = vpop.eup %4203  ;;  %v2863_v1 = vsel %vm6903_vm8, %v2862_v60, %v2858_v0  ;;  %v2873_v39 = vsel %vm2872_vm9, %v4194_v29, %v2869_v5  ;;  %4207 = vrcp.f32 %v6936_v54  ;;  %v505_v5 = vpop.f32.mrf.mxu1 }
 0x3db   : > { %v6954_v45 = vadd.f32 1e-06, %v1176_v38  ;;  %3446 = vst [vmem:[%s4623_s15 + $0xd0] sm:$0xff] %v2863_v1  ;;  %v2878_v33 = vsel %vm6911_vm10, %v2877_v61, %v2873_v39  ;;  %4209 = vrcp.f32 %v6946_v20  ;;  %v1690_v16 = vand.u32 2147483648, %v6897_v6 }
 0x3dc   : > { %v869_v43 = vmul.f32 %v6909_v8, %v868_v13  ;;  %3447 = vst [vmem:[%s4623_s15 + $0xd8] sm:$0xff] %v2878_v33  ;;  %v3341_v59 = vand.u32 2147483648, %v6936_v54  ;;  %v1667_v42 = vmul.f32 %v6925_v37, %v1666_v48  ;;  %vm1670_vm1 = vweird.f32 %v6925_v37 }
 0x3dd   : > { %v6966_v31 = vadd.f32 1e-06, %v1177_v47  ;;  %v6968_v10 = vpop.eup %4205  ;;  %v3339_v32 = vand.u32 2147483647, %v6936_v54  ;;  %v1680_v15 = vmul.f32 %v6949_v35, %v6897_v6  ;;  %vm1684_vm12 = vweird.f32 %v6897_v6  ;;  %vm1671_vm0 = vmor %vm1669_vm4, %vm1670_vm1 }
 0x3de   : > { %vm6974_vm13 = vcmp.eq.f32.partialorder %v1688_v14, 8.507059e+37  ;;  %v3354_v44 = vand.u32 2147483647, %v6946_v20  ;;  %v3356_v4 = vand.u32 2147483648, %v6946_v20  ;;  %v1668_v58 = vadd.f32 %v6925_v37, %v1667_v42 }
 0x3df   : > { %4211 = vrcp.f32 %v6954_v45  ;;  %vm3335_vm14 = vweird.f32 %v6936_v54  ;;  %v1681_v56 = vsub.f32 1.0, %v1680_v15  ;;  %v1691_v12 = vor.u32 1.1754944e-38, %v1690_v16 }
 0x3e0   : > { %v870_v11 = vmul.f32 0.5, %v869_v43  ;;  %v4208_v17 = vpop.eup %4207  ;;  %v3342_v3 = vor.u32 1.1754944e-38, %v3341_v59  ;;  %vm3350_vm7 = vweird.f32 %v6946_v20  ;;  %v1672_v50 = vsel %vm1671_vm0, %v6925_v37, %v1668_v58 }
 0x3e1   : > { %vm1685_vm2 = vweird.f32 %v6949_v35  ;;  %4213 = vrcp.f32 %v6966_v31  ;;  %v4210_v41 = vpop.eup %4209  ;;  %v3331_v29 = vmul.f32 %v4208_v17, %v6936_v54  ;;  %vm6990_vm8 = vcmp.eq.f32.partialorder %v3339_v32, 8.507059e+37 }
 0x3e2   : > { %v1677_v63 = vsel %vm6938_vm6, %v1676_v57, %v1672_v50  ;;  %v1682_v25 = vmul.f32 %v6949_v35, %v1681_v56  ;;  %v2153_v24 = vand.u32 2147483647, %v6954_v45  ;;  %v3346_v30 = vmul.f32 %v4210_v41, %v6946_v20  ;;  %vm1686_vm5 = vmor %vm1684_vm12, %vm1685_vm2 }
 0x3e3   : > { %vm6999_vm15 = vcmp.eq.f32.partialorder %v3354_v44, 8.507059e+37  ;;  %v3357_v2 = vor.u32 1.1754944e-38, %v3356_v4  ;;  %v1678_v23 = vmul.f32 %v1677_v63, %v392_v18  ;;  %v2155_v9 = vand.u32 2147483648, %v6954_v45 }
 0x3e4   : > { %v3332_v62 = vsub.f32 1.0, %v3331_v29  ;;  %vm3336_vm10 = vweird.f32 %v4208_v17  ;;  %v1683_v53 = vadd.f32 %v6949_v35, %v1682_v25  ;;  %vm2149_vm3 = vweird.f32 %v6954_v45 }
 0x3e5   : > { %v2168_v40 = vand.u32 2147483647, %v6966_v31  ;;  %vm874_vm11 = vcmp.eq.f32.partialorder %v6880_v22, inf  ;;  %v4212_v61 = vpop.eup %4211  ;;  %v3347_v34 = vsub.f32 1.0, %v3346_v30  ;;  %vm3351_vm4 = vweird.f32 %v4210_v41  ;;  %vm3337_vm1 = vmor %vm3335_vm14, %vm3336_vm10 }
 0x3e6   : > { %v3693_v37 = vmul.f32 -1.442695, %v1678_v23  ;;  %v871_v46 = vsub.f32 1.5, %v870_v11  ;;  %vm876_vm6 = vcmp.eq.f32.partialorder %v6880_v22, 0.0  ;;  %v3333_v38 = vmul.f32 %v4208_v17, %v3332_v62 }
 0x3e7   : > { %v1687_v13 = vsel %vm1686_vm5, %v6949_v35, %v1683_v53  ;;  %v2145_v27 = vmul.f32 %v4212_v61, %v6954_v45  ;;  %vm7015_vm9 = vcmp.eq.f32.partialorder %v2153_v24, 8.507059e+37  ;;  %v4214_v49 = vpop.eup %4213  ;;  %v3348_v7 = vmul.f32 %v4210_v41, %v3347_v34  ;;  %v553_v24 = vpop.f32.mrf.mxu3 }
 0x3e8   : > { %4215 = vpow2.f32 %v3693_v37  ;;  %v1692_v6 = vsel %vm6974_vm13, %v1691_v12, %v1687_v13  ;;  %v2170_v26 = vand.u32 2147483648, %v6966_v31  ;;  %v3334_v57 = vadd.f32 %v4208_v17, %v3333_v38  ;;  %vm3352_vm13 = vmor %vm3350_vm7, %vm3351_vm4 }
 0x3e9   : > { %v1693_v47 = vmul.f32 %v1692_v6, %v505_v5  ;;  %v2146_v0 = vsub.f32 1.0, %v2145_v27  ;;  %v2160_v48 = vmul.f32 %v4214_v49, %v6966_v31  ;;  %v3349_v14 = vadd.f32 %v4210_v41, %v3348_v7 }
 0x3ea   : > { %vm2150_vm12 = vweird.f32 %v4212_v61  ;;  %v872_v35 = vmul.f32 %v6909_v8, %v871_v46  ;;  %v1060_v1 = vmul.f32 %v6968_v10, %v6921_v52  ;;  %v3338_v39 = vsel %vm3337_vm1, %v4208_v17, %v3334_v57 }
 0x3eb   : > { %v3694_v33 = vmul.f32 -1.442695, %v1693_v47  ;;  %v2147_v16 = vmul.f32 %v4212_v61, %v2146_v0  ;;  %v2161_v43 = vsub.f32 1.0, %v2160_v48  ;;  %v3343_v54 = vsel %vm6990_vm8, %v3342_v3, %v3338_v39  ;;  %vm2151_vm14 = vmor %vm2149_vm3, %vm2150_vm12 }
 0x3ec   : > { %v3353_v59 = vsel %vm3352_vm13, %v4210_v41, %v3349_v14  ;;  %v873_v42 = vmul.f32 %v872_v35, %v6880_v22  ;;  %v1061_v8 = vmul.f32 %v6968_v10, %v1060_v1  ;;  %3478 = vst [vmem:[%s4623_s15 + $0x1d0] sm:$0xff] %v3343_v54  ;;  %v2156_v44 = vor.u32 1.1754944e-38, %v2155_v9  ;;  %v440_v41 = vpop.f32.mrf.mxu2 }
 0x3ed   : > { %v3358_v32 = vsel %vm6999_vm15, %v3357_v2, %v3353_v59  ;;  %4217 = vpow2.f32 %v3694_v33  ;;  %v2148_v15 = vadd.f32 %v4212_v61, %v2147_v16  ;;  %v2162_v28 = vmul.f32 %v4214_v49, %v2161_v43 }
 0x3ee   : > { %v4216_v20 = vpop.eup %4215  ;;  %3479 = vst [vmem:[%s4623_s15 + $0x1d8] sm:$0xff] %v3358_v32  ;;  %vm2165_vm0 = vweird.f32 %v4214_v49  ;;  %v875_v4 = vsel %vm874_vm11, %v6880_v22, %v873_v42  ;;  %v1062_v58 = vmul.f32 0.5, %v1061_v8  ;;  %vm2164_vm7 = vweird.f32 %v6966_v31 }
 0x3ef   : > { %v7046_v56 = vadd.f32 1.0, %v4216_v20  ;;  %v2152_v12 = vsel %vm2151_vm14, %v4212_v61, %v2148_v15  ;;  %v2163_v11 = vadd.f32 %v4214_v49, %v2162_v28  ;;  %v878_v17 = vsel %vm876_vm6, %v877_v51, %v875_v4  ;;  %vm2166_vm2 = vmor %vm2164_vm7, %vm2165_vm0 }
 0x3f0   : > { %v2157_v45 = vsel %vm7015_vm9, %v2156_v44, %v2152_v12  ;;  %v1146_v3 = vmul.f32 %v4572_v19, %v878_v17  ;;  %v1147_v50 = vmul.f32 %v4574_v21, %v878_v17  ;;  %vm2169_vm8 = vcmp.eq.f32.partialorder %v2168_v40, 8.507059e+37 }
 0x3f1   : > { %4219 = vrcp.f32 %v7046_v56  ;;  %v2171_v29 = vor.u32 1.1754944e-38, %v2170_v26  ;;  %v1063_v55 = vsub.f32 1.5, %v1062_v58  ;;  %v2158_v18 = vmul.f32 %v2157_v45, %v440_v41 }
 0x3f2   : > { %v2167_v63 = vsel %vm2166_vm2, %v4214_v49, %v2163_v11  ;;  %v7058_v22 = vadd.f32 1e-06, %v1146_v3  ;;  %v7060_v51 = vadd.f32 1e-06, %v1147_v50  ;;  %v2889_v23 = vand.u32 2147483647, %v7046_v56 }
 0x3f3   : > { %v4218_v25 = vpop.eup %4217  ;;  %v2172_v31 = vsel %vm2169_vm8, %v2171_v29, %v2167_v63  ;;  %v3725_v2 = vmul.f32 -1.442695, %v2158_v18  ;;  %v2891_v9 = vand.u32 2147483648, %v7046_v56  ;;  %v1064_v62 = vmul.f32 %v6968_v10, %v1063_v55  ;;  %v395_v55 = vpop.f32.mrf.mxu0 }
 0x3f4   : > { %v7062_v30 = vadd.f32 1.0, %v4218_v25  ;;  %v2173_v60 = vmul.f32 %v2172_v31, %v553_v24  ;;  %4221 = vrcp.f32 %v7058_v22  ;;  %vm1066_vm15 = vcmp.eq.f32.partialorder %v6921_v52, inf }
 0x3f5   : > { %4223 = vrcp.f32 %v7060_v51  ;;  %vm2885_vm10 = vweird.f32 %v7046_v56  ;;  %vm1068_vm3 = vcmp.eq.f32.partialorder %v6921_v52, 0.0  ;;  %v1069_v34 = vand.u32 2147483648, %v6921_v52 }
 0x3f6   : > { %4225 = vrcp.f32 %v7062_v30  ;;  %v3726_v40 = vmul.f32 -1.442695, %v2173_v60  ;;  %vm7075_vm11 = vcmp.eq.f32.partialorder %v2889_v23, 8.507059e+37  ;;  %v2892_v10 = vor.u32 1.1754944e-38, %v2891_v9 }
 0x3f7   : > { %v4220_v53 = vpop.eup %4219  ;;  %4227 = vpow2.f32 %v3725_v2  ;;  %v1065_v13 = vmul.f32 %v1064_v62, %v6921_v52  ;;  %vm1699_vm4 = vweird.f32 %v7058_v22  ;;  %v1703_v49 = vand.u32 2147483647, %v7058_v22 }
 0x3f8   : > { %v2881_v61 = vmul.f32 %v4220_v53, %v7046_v56  ;;  %4229 = vpow2.f32 %v3726_v40  ;;  %v1705_v7 = vand.u32 2147483648, %v7058_v22  ;;  %vm2886_vm5 = vweird.f32 %v4220_v53 }
 0x3f9   : > { %v1067_v57 = vsel %vm1066_vm15, %v6921_v52, %v1065_v13  ;;  %vm2900_vm6 = vweird.f32 %v7062_v30  ;;  %v2904_v1 = vand.u32 2147483647, %v7062_v30  ;;  %v2906_v39 = vand.u32 2147483648, %v7062_v30  ;;  %vm2887_vm9 = vmor %vm2885_vm10, %vm2886_vm5 }
 0x3fa   : > { %v4222_v37 = vpop.eup %4221  ;;  %v2882_v46 = vsub.f32 1.0, %v2881_v61  ;;  %v1070_v14 = vsel %vm1068_vm3, %v1069_v34, %v1067_v57  ;;  %vm7114_vm14 = vcmp.eq.f32.partialorder %v1703_v49, 8.507059e+37  ;;  %v1706_v4 = vor.u32 1.1754944e-38, %v1705_v7 }
 0x3fb   : > { %v7080_v27 = vpop.eup %4223  ;;  %v1695_v36 = vmul.f32 %v4222_v37, %v7058_v22  ;;  %vm1700_vm1 = vweird.f32 %v4222_v37  ;;  %v1178_v52 = vmul.f32 %v4572_v19, %v1070_v14  ;;  %v1179_v28 = vmul.f32 %v4574_v21, %v1070_v14 }
 0x3fc   : > { %v4226_v5 = vpop.eup %4225  ;;  %v2883_v6 = vmul.f32 %v4220_v53, %v2882_v46  ;;  %v1710_v26 = vmul.f32 %v7080_v27, %v7060_v51  ;;  %vm7109_vm13 = vcmp.eq.f32.partialorder %v2904_v1, 8.507059e+37  ;;  %v2907_v58 = vor.u32 1.1754944e-38, %v2906_v39  ;;  %vm1701_vm0 = vmor %vm1699_vm4, %vm1700_vm1 }
 0x3fd   : > { %v4228_v47 = vpop.eup %4227  ;;  %v2896_v0 = vmul.f32 %v4226_v5, %v7062_v30  ;;  %v1696_v48 = vsub.f32 1.0, %v1695_v36  ;;  %vm2901_vm12 = vweird.f32 %v4226_v5  ;;  %v1718_v21 = vand.u32 2147483647, %v7060_v51 }
 0x3fe   : > { %v2884_v35 = vadd.f32 %v4220_v53, %v2883_v6  ;;  %v7097_v33 = vadd.f32 1.0, %v4228_v47  ;;  %v4230_v16 = vpop.eup %4229  ;;  %v1711_v59 = vsub.f32 1.0, %v1710_v26  ;;  %vm2902_vm7 = vmor %vm2900_vm6, %vm2901_vm12  ;;  %vm1715_vm2 = vweird.f32 %v7080_v27 }
 0x3ff   : > { %v2897_v43 = vsub.f32 1.0, %v2896_v0  ;;  %v1697_v54 = vmul.f32 %v4222_v37, %v1696_v48  ;;  %v7101_v8 = vadd.f32 1.0, %v4230_v16  ;;  %v1720_v11 = vand.u32 2147483648, %v7060_v51 }
 0x400   : > { %v2888_v42 = vsel %vm2887_vm9, %v4220_v53, %v2884_v35  ;;  %4231 = vrcp.f32 %v7097_v33  ;;  %v1712_v12 = vmul.f32 %v7080_v27, %v1711_v59  ;;  %v7127_v17 = vadd.f32 1e-06, %v1178_v52  ;;  %v508_v53 = vpop.f32.mrf.mxu1 }
 0x401   : > { %v2893_v32 = vsel %vm7075_vm11, %v2892_v10, %v2888_v42  ;;  %v2898_v15 = vmul.f32 %v4226_v5, %v2897_v43  ;;  %4233 = vrcp.f32 %v7101_v8  ;;  %v1698_v56 = vadd.f32 %v4222_v37, %v1697_v54 }
 0x402   : > { %3448 = vst [vmem:[%s4623_s15 + $0xe0] sm:$0xff] %v2893_v32  ;;  %vm1714_vm8 = vweird.f32 %v7060_v51  ;;  %v7130_v50 = vadd.f32 1e-06, %v1179_v28  ;;  %v1713_v63 = vadd.f32 %v7080_v27, %v1712_v12  ;;  %4235 = vrcp.f32 %v7127_v17  ;;  %v443_v28 = vpop.f32.mrf.mxu2 }
 0x403   : > { %v2899_v19 = vadd.f32 %v4226_v5, %v2898_v15  ;;  %v1702_v3 = vsel %vm1701_vm0, %v4222_v37, %v1698_v56  ;;  %vm1716_vm15 = vmor %vm1714_vm8, %vm1715_vm2  ;;  %vm1719_vm10 = vcmp.eq.f32.partialorder %v1718_v21, 8.507059e+37  ;;  %v1721_v31 = vor.u32 1.1754944e-38, %v1720_v11  ;;  %v556_v11 = vpop.f32.mrf.mxu3 }
 0x404   : > { %v1707_v18 = vsel %vm7114_vm14, %v1706_v4, %v1702_v3  ;;  %v1717_v24 = vsel %vm1716_vm15, %v7080_v27, %v1713_v63  ;;  %4237 = vrcp.f32 %v7130_v50  ;;  %v3369_v60 = vand.u32 2147483647, %v7097_v33 }
 0x405   : > { %v2903_v45 = vsel %vm2902_vm7, %v4226_v5, %v2899_v19  ;;  %v1708_v25 = vmul.f32 %v1707_v18, %v395_v55  ;;  %v3371_v9 = vand.u32 2147483648, %v7097_v33  ;;  %v3386_v62 = vand.u32 2147483648, %v7101_v8 }
 0x406   : > { %v4232_v41 = vpop.eup %4231  ;;  %v2908_v29 = vsel %vm7109_vm13, %v2907_v58, %v2903_v45  ;;  %v1722_v40 = vsel %vm1719_vm10, %v1721_v31, %v1717_v24  ;;  %vm3365_vm11 = vweird.f32 %v7097_v33  ;;  %v3384_v38 = vand.u32 2147483647, %v7101_v8 }
 0x407   : > { %3449 = vst [vmem:[%s4623_s15 + $0xe8] sm:$0xff] %v2908_v29  ;;  %v3361_v22 = vmul.f32 %v4232_v41, %v7097_v33  ;;  %v4234_v51 = vpop.eup %4233  ;;  %v3695_v23 = vmul.f32 -1.442695, %v1708_v25  ;;  %vm3366_vm3 = vweird.f32 %v4232_v41  ;;  %v1723_v37 = vmul.f32 %v1722_v40, %v508_v53 }
 0x408   : > { %v3376_v2 = vmul.f32 %v4234_v51, %v7101_v8  ;;  %v4236_v46 = vpop.eup %4235  ;;  %vm3381_vm4 = vweird.f32 %v4234_v51  ;;  %vm3367_vm5 = vmor %vm3365_vm11, %vm3366_vm3  ;;  %vm3370_vm6 = vcmp.eq.f32.partialorder %v3369_v60, 8.507059e+37  ;;  %v3372_v7 = vor.u32 1.1754944e-38, %v3371_v9 }
 0x409   : > { %v3362_v30 = vsub.f32 1.0, %v3361_v22  ;;  %4239 = vpow2.f32 %v3695_v23  ;;  %v3696_v27 = vmul.f32 -1.442695, %v1723_v37  ;;  %v2175_v36 = vmul.f32 %v4236_v46, %v7127_v17 }
 0x40a   : > { %v3377_v34 = vsub.f32 1.0, %v3376_v2  ;;  %v4238_v49 = vpop.eup %4237  ;;  %vm3380_vm9 = vweird.f32 %v7101_v8  ;;  %v3387_v5 = vor.u32 1.1754944e-38, %v3386_v62  ;;  %v2183_v0 = vand.u32 2147483647, %v7127_v17 }
 0x40b   : > { %v3363_v61 = vmul.f32 %v4232_v41, %v3362_v30  ;;  %4241 = vpow2.f32 %v3696_v27  ;;  %v2176_v57 = vsub.f32 1.0, %v2175_v36  ;;  %vm3382_vm1 = vmor %vm3380_vm9, %vm3381_vm4  ;;  %v2185_v48 = vand.u32 2147483648, %v7127_v17 }
 0x40c   : > { %v3378_v13 = vmul.f32 %v4234_v51, %v3377_v34  ;;  %v2190_v14 = vmul.f32 %v4238_v49, %v7130_v50  ;;  %vm3385_vm12 = vcmp.eq.f32.partialorder %v3384_v38, 8.507059e+37  ;;  %vm2180_vm13 = vweird.f32 %v4236_v46 }
 0x40d   : > { %v3364_v10 = vadd.f32 %v4232_v41, %v3363_v61  ;;  %v2177_v39 = vmul.f32 %v4236_v46, %v2176_v57  ;;  %vm2179_vm14 = vweird.f32 %v7127_v17  ;;  %vm2184_vm7 = vcmp.eq.f32.partialorder %v2183_v0, 8.507059e+37 }
 0x40e   : > { %v3379_v26 = vadd.f32 %v4234_v51, %v3378_v13  ;;  %v2191_v43 = vsub.f32 1.0, %v2190_v14  ;;  %vm2181_vm0 = vmor %vm2179_vm14, %vm2180_vm13  ;;  %v2186_v59 = vor.u32 1.1754944e-38, %v2185_v48  ;;  %v2200_v42 = vand.u32 2147483648, %v7130_v50 }
 0x40f   : > { %v3368_v6 = vsel %vm3367_vm5, %v4232_v41, %v3364_v10  ;;  %v4240_v35 = vpop.eup %4239  ;;  %v2178_v54 = vadd.f32 %v4236_v46, %v2177_v39  ;;  %vm2195_vm2 = vweird.f32 %v4238_v49  ;;  %v2198_v15 = vand.u32 2147483647, %v7130_v50 }
 0x410   : > { %v3373_v47 = vsel %vm3370_vm6, %v3372_v7, %v3368_v6  ;;  %v3383_v1 = vsel %vm3382_vm1, %v4234_v51, %v3379_v26  ;;  %v2426_v16 = vadd.f32 1.0, %v4240_v35  ;;  %v2192_v32 = vmul.f32 %v4238_v49, %v2191_v43 }
 0x411   : > { %3480 = vst [vmem:[%s4623_s15 + $0x1e0] sm:$0xff] %v3373_v47  ;;  %v3388_v33 = vsel %vm3385_vm12, %v3387_v5, %v3383_v1  ;;  %v4242_v8 = vpop.eup %4241  ;;  %v2182_v52 = vsel %vm2181_vm0, %v4236_v46, %v2178_v54  ;;  %vm2194_vm8 = vweird.f32 %v7130_v50  ;;  %v2201_v58 = vor.u32 1.1754944e-38, %v2200_v42 }
 0x412   : > { %3481 = vst [vmem:[%s4623_s15 + $0x1e8] sm:$0xff] %v3388_v33  ;;  %4243 = vrcp.f32 %v2426_v16  ;;  %v2427_v20 = vadd.f32 1.0, %v4242_v8  ;;  %v2187_v44 = vsel %vm2184_vm7, %v2186_v59, %v2182_v52  ;;  %v2193_v19 = vadd.f32 %v4238_v49, %v2192_v32  ;;  %vm2196_vm15 = vmor %vm2194_vm8, %vm2195_vm2 }
 0x413   : > { %v2188_v4 = vmul.f32 %v2187_v44, %v443_v28  ;;  %vm2199_vm10 = vcmp.eq.f32.partialorder %v2198_v15, 8.507059e+37  ;;  %v2919_v18 = vand.u32 2147483647, %v2426_v16  ;;  %v2921_v63 = vand.u32 2147483648, %v2426_v16 }
 0x414   : > { %4245 = vrcp.f32 %v2427_v20  ;;  %v2197_v56 = vsel %vm2196_vm15, %v4238_v49, %v2193_v19  ;;  %vm2915_vm11 = vweird.f32 %v2426_v16  ;;  %v2936_v30 = vand.u32 2147483648, %v2427_v20 }
 0x415   : > { %v3727_v21 = vmul.f32 -1.442695, %v2188_v4  ;;  %v2202_v17 = vsel %vm2199_vm10, %v2201_v58, %v2197_v56  ;;  %vm2920_vm5 = vcmp.eq.f32.partialorder %v2919_v18, 8.507059e+37  ;;  %v2922_v31 = vor.u32 1.1754944e-38, %v2921_v63 }
 0x416   : > { %v2203_v3 = vmul.f32 %v2202_v17, %v556_v11  ;;  %v2934_v9 = vand.u32 2147483647, %v2427_v20  ;;  %vm2930_vm9 = vweird.f32 %v2427_v20  ;;  %v2937_v61 = vor.u32 1.1754944e-38, %v2936_v30 }
 0x417   : > { %4247 = vpow2.f32 %v3727_v21 }
 0x418   : > { %v4244_v12 = vpop.eup %4243  ;;  %v3728_v29 = vmul.f32 -1.442695, %v2203_v3  ;;  %vm2935_vm12 = vcmp.eq.f32.partialorder %v2934_v9, 8.507059e+37 }
 0x419   : > { %v2911_v45 = vmul.f32 %v4244_v12, %v2426_v16  ;;  %vm2916_vm3 = vweird.f32 %v4244_v12 }
 0x41a   : > { %v4246_v55 = vpop.eup %4245  ;;  %4249 = vpow2.f32 %v3728_v29  ;;  %vm2917_vm4 = vmor %vm2915_vm11, %vm2916_vm3 }
 0x41b   : > { %v2912_v41 = vsub.f32 1.0, %v2911_v45  ;;  %v2926_v50 = vmul.f32 %v4246_v55, %v2427_v20  ;;  %vm2931_vm6 = vweird.f32 %v4246_v55 }
 0x41c   : > { %vm2932_vm1 = vmor %vm2930_vm9, %vm2931_vm6 }
 0x41d   : > { %v2913_v22 = vmul.f32 %v4244_v12, %v2912_v41  ;;  %v4248_v25 = vpop.eup %4247  ;;  %v2927_v24 = vsub.f32 1.0, %v2926_v50 }
 0x41e   : > { %v2458_v60 = vadd.f32 1.0, %v4248_v25 }
 0x41f   : > { %v2914_v51 = vadd.f32 %v4244_v12, %v2913_v22  ;;  %v2928_v23 = vmul.f32 %v4246_v55, %v2927_v24 }
 0x420   : > { %4251 = vrcp.f32 %v2458_v60  ;;  %v4250_v53 = vpop.eup %4249  ;;  %v3399_v36 = vand.u32 2147483647, %v2458_v60  ;;  %v3401_v49 = vand.u32 2147483648, %v2458_v60  ;;  %vm3395_vm14 = vweird.f32 %v2458_v60 }
 0x421   : > { %v2918_v2 = vsel %vm2917_vm4, %v4244_v12, %v2914_v51  ;;  %v2929_v40 = vadd.f32 %v4246_v55, %v2928_v23  ;;  %v2459_v34 = vadd.f32 1.0, %v4250_v53 }
 0x422   : > { %v2923_v62 = vsel %vm2920_vm5, %v2922_v31, %v2918_v2  ;;  %vm3400_vm7 = vcmp.eq.f32.partialorder %v3399_v36, 8.507059e+37  ;;  %v3402_v57 = vor.u32 1.1754944e-38, %v3401_v49 }
 0x423   : > { %3450 = vst [vmem:[%s4623_s15 + $0xf0] sm:$0xff] %v2923_v62  ;;  %v2933_v37 = vsel %vm2932_vm1, %v4246_v55, %v2929_v40  ;;  %4253 = vrcp.f32 %v2459_v34  ;;  %v3416_v47 = vand.u32 2147483648, %v2459_v34  ;;  %v3414_v14 = vand.u32 2147483647, %v2459_v34 }
 0x424   : > { %v2938_v46 = vsel %vm2935_vm12, %v2937_v61, %v2933_v37  ;;  %vm3410_vm8 = vweird.f32 %v2459_v34 }
 0x425   : > { %3451 = vst [vmem:[%s4623_s15 + $0xf8] sm:$0xff] %v2938_v46  ;;  %v3417_v39 = vor.u32 1.1754944e-38, %v3416_v47  ;;  %vm3415_vm10 = vcmp.eq.f32.partialorder %v3414_v14, 8.507059e+37 }
 0x426   : > { %v4252_v38 = vpop.eup %4251 }
 0x427   : > { %v3391_v10 = vmul.f32 %v4252_v38, %v2458_v60  ;;  %vm3396_vm13 = vweird.f32 %v4252_v38 }
 0x428   : > { %vm3397_vm0 = vmor %vm3395_vm14, %vm3396_vm13 }
 0x429   : > { %v3392_v13 = vsub.f32 1.0, %v3391_v10  ;;  %v4254_v27 = vpop.eup %4253 }
 0x42a   : > { %v3406_v5 = vmul.f32 %v4254_v27, %v2459_v34  ;;  %vm3411_vm2 = vweird.f32 %v4254_v27 }
 0x42b   : > { %v3393_v7 = vmul.f32 %v4252_v38, %v3392_v13  ;;  %vm3412_vm15 = vmor %vm3410_vm8, %vm3411_vm2 }
 0x42c   : > { %v3407_v26 = vsub.f32 1.0, %v3406_v5 }
 0x42d   : > { %v3394_v6 = vadd.f32 %v4252_v38, %v3393_v7 }
 0x42e   : > { %v3408_v48 = vmul.f32 %v4254_v27, %v3407_v26 }
 0x42f   : > { %v3398_v0 = vsel %vm3397_vm0, %v4252_v38, %v3394_v6 }
 0x430   : > { %v3403_v35 = vsel %vm3400_vm7, %v3402_v57, %v3398_v0  ;;  %v3409_v1 = vadd.f32 %v4254_v27, %v3408_v48 }
 0x431   : > { %3482 = vst [vmem:[%s4623_s15 + $0x1f0] sm:$0xff] %v3403_v35 }
 0x432   : > { %v3413_v33 = vsel %vm3412_vm15, %v4254_v27, %v3409_v1 }
 0x433   : > { %v3418_v16 = vsel %vm3415_vm10, %v3417_v39, %v3413_v33 }
 0x434   : > { %3483 = vst [vmem:[%s4623_s15 + $0x1f8] sm:$0xff] %v3418_v16 }
 0x435   : > { %4312 = shalt.err (!%p4309_p13)
}
 0x436   : > { %s4369_s3 = smov 256   ;;  %s4370_s4 = smov 16  }
 0x437   : > { %3740 = dma.vmem_to_hbm [thread:$0]  (%p4432_p9), %s3501_s9, 8192, %s3503_s23, %s3485_s24, %s4369_s3, %s4369_s3, %s4370_s4  }
 0x438 PF: > { %s3517_s5 = sand.u32 1, %s4347_s6   ;;  %p3747_p0 = pnand %p3592_p12, %p4439_p11 }
 0x439   : > { %s3518_s12 = scalar_lea.sflag [#allocation4], %s3517_s5 }
 0x43a   : > { %p3748_p1 = pneg %p3747_p0 }
 0x43c   : > { %4342 = dma.done.wait (%p3748_p1), %s3518_s12, 8192  }
 0x43d   : > { %4344 = vsyncadd (%p3748_p1), %s3518_s12, 4294959104  ;;  %s17_s11 = sadd.s32 1, %s4367_s11   ;;  %s7400_s6 = smov %s4351_s7 }
 0x43e   : > { %p14_p2 = scmp.ge.s32.totalorder %s17_s11, 4   ;;  %s7401_s7 = smov %s4355_s8 }
 0x43f   : > { %s7402_s8 = smov %s4437_s20  ;;  %s7403_s9 = smov %s4363_s10 }
 0x440   : > { %s7404_s10 = smov %s7406_s14  ;;  %16 = sbr.rel (!%p14_p2) target bundleno = 6 (0x6), region = 70 }
 0x445   :  { %3524 = vsyncpa [#allocation3], 1 }
 0x446   :  { %3526 = vsyncpa [#allocation3 + $0x1], 1 }
 0x447   :  { %3527 = vsyncpa [#allocation4], 1 }
 0x448   :  { %3529 = vsyncpa [#allocation4 + $0x1], 1 }

</bundles_post_ra>
